<compile_context>
chip_gen: v7x
topology: tpu7x:2x2x1
jax: 0.10.0
libtpu: 0.0.40
codegen_flags: <defaults>
</compile_context>

<pallas_src>
import functools

import jax
import jax.numpy as jnp
import numpy as np
from jax.experimental import pallas as pl
from jax.experimental.pallas import tpu as pltpu

FC1_TK = 2048          # K tile for the fc1 reduction
FC1_CORE_SPLIT = 2     # split fc1's K across 2 cores (v7x megacore)


def _round_up(x, m):
    return (x + m - 1) // m * m


def _pick_tm(m, target=2048, align=8):
    """Largest multiple-of-`align` divisor of m that is <= target."""
    assert m % align == 0
    best = align
    d = align
    while d <= min(target, m):
        if m % d == 0:
            best = d
        d += align
    return best


# ---------------------------------------------------------------------------
# Pallas kernel 1: single-block-K matmul with fused bias + optional ReLU.
# Used for both convs (im2col GEMM, K=75/150, N=6/16) and fc2/fc3.
# No accumulator scratch, no pl.when phases: K and N fit in one block.
# ---------------------------------------------------------------------------
def _matmul_bias_single_kernel(a_ref, w_ref, b_ref, o_ref, *, relu):
    out = jnp.dot(a_ref[...], w_ref[...],
                  preferred_element_type=jnp.float32) + b_ref[...]
    if relu:
        out = jnp.maximum(out, 0.0)
    o_ref[...] = out.astype(o_ref.dtype)


def matmul_bias_fused(a, w, b, *, relu, tm_target=2048):
    """act(a @ w + b); a:[M,K] f32, w:[K,N], b:[N]. K and N as full blocks."""
    M, K = a.shape
    K2, N = w.shape
    assert K == K2
    Mp = _round_up(M, 8)
    a_p = a if Mp == M else jnp.pad(a, ((0, Mp - M), (0, 0)))
    tm = _pick_tm(Mp, tm_target)
    b2 = b.reshape(1, N)

    out = pl.pallas_call(
        functools.partial(_matmul_bias_single_kernel, relu=relu),
        out_shape=jax.ShapeDtypeStruct((Mp, N), jnp.float32),
        grid_spec=pltpu.PrefetchScalarGridSpec(
            num_scalar_prefetch=0,
            grid=(Mp // tm,),
            in_specs=[
                pl.BlockSpec((tm, K), lambda i: (i, 0)),   # full-K block
                pl.BlockSpec((K, N), lambda i: (0, 0)),    # weight resident
                pl.BlockSpec((1, N), lambda i: (0, 0)),
            ],
            out_specs=pl.BlockSpec((tm, N), lambda i: (i, 0)),  # lane = real N
        ),
        compiler_params=pltpu.CompilerParams(
            dimension_semantics=("parallel",)),
    )(a_p, w, b2)
    return out if Mp == M else out[:M]


# ---------------------------------------------------------------------------
# Pallas kernel 2: K-split partial-sum matmul (fc1).
# Grid = (core_split, M_blocks, K_blocks_per_core). Output block accumulates
# in-place across the "arbitrary" K axis; partials are summed outside.
# ---------------------------------------------------------------------------
def _matmul_partial_kernel(a_ref, w_ref, o_ref):
    @pl.when(pl.program_id(2) == 0)
    def _():
        o_ref[...] = jnp.zeros_like(o_ref)

    o_ref[0] += jnp.dot(a_ref[...], w_ref[...].astype(jnp.float32),
                        preferred_element_type=jnp.float32)


def matmul_bias_ksplit(a, w, b, *, relu, tk=FC1_TK, n_split=FC1_CORE_SPLIT):
    """act(a @ w + b); a:[M,Kp] f32 (K already padded), w:[Kp,N] (bf16 ok)."""
    M, Kp = a.shape
    Kp2, N = w.shape
    assert Kp == Kp2 and Kp % (tk * n_split) == 0
    Mp = _round_up(M, 8)
    a_p = a if Mp == M else jnp.pad(a, ((0, Mp - M), (0, 0)))
    tm = Mp                      # batch dim is tiny here
    kb = Kp // tk // n_split     # K blocks per core

    partial = pl.pallas_call(
        _matmul_partial_kernel,
        out_shape=jax.ShapeDtypeStruct((n_split, Mp, N), jnp.float32),
        grid_spec=pltpu.PrefetchScalarGridSpec(
            num_scalar_prefetch=0,
            grid=(n_split, Mp // tm, kb),
            in_specs=[
                pl.BlockSpec((tm, tk), lambda c, i, k: (i, c * kb + k)),
                pl.BlockSpec((tk, N), lambda c, i, k: (c * kb + k, 0)),
            ],
            out_specs=pl.BlockSpec((1, tm, N), lambda c, i, k: (c, i, 0)),
        ),
        compiler_params=pltpu.CompilerParams(
            dimension_semantics=("parallel", "parallel", "arbitrary")),
    )(a_p, w)

    out = partial.sum(axis=0)[:M] + b[None, :]
    if relu:
        out = jnp.maximum(out, 0.0)
    return out


# ---------------------------------------------------------------------------
# Glue: im2col, conv-as-matmul, max pooling.
# ---------------------------------------------------------------------------
def _im2col(x_nhwc, kh, kw):
    # x: [N,H,W,C] -> patches [N,Ho,Wo, kh*kw*C], feature order (kh, kw, c)
    N, H, W, C = x_nhwc.shape
    Ho, Wo = H - kh + 1, W - kw + 1
    cols = []
    for i in range(kh):
        for j in range(kw):
            cols.append(x_nhwc[:, i:i + Ho, j:j + Wo, :])
    return jnp.concatenate(cols, axis=-1), Ho, Wo


def conv2d_relu(x_nhwc, w_mat, bias, *, kh, kw):
    # w_mat is the pre-reshaped [kh*kw*I, O] matrix (stride 1, VALID padding).
    patches, Ho, Wo = _im2col(x_nhwc, kh, kw)
    N = x_nhwc.shape[0]
    K, O = w_mat.shape
    a = patches.reshape(N * Ho * Wo, K)
    out = matmul_bias_fused(a, w_mat, bias, relu=True)
    return out.reshape(N, Ho, Wo, O)


def maxpool2x2(x_nhwc):
    # MaxPool2d(2, 2), floor mode (matches PyTorch default)
    N, H, W, C = x_nhwc.shape
    Ho, Wo = H // 2, W // 2
    x = x_nhwc[:, :Ho * 2, :Wo * 2, :]
    return jnp.max(x.reshape(N, Ho, 2, Wo, 2, C), axis=(2, 4))


# ---------------------------------------------------------------------------
# Parameter preprocessing (done ONCE, outside the forward).
# ---------------------------------------------------------------------------
def preprocess_params(params):
    prep = {}
    for name in ("conv1", "conv2"):
        w = params[f"{name}_w"]                 # [O, I, kh, kw] (PyTorch)
        O, I, kh, kw = w.shape
        # reorder to (kh, kw, I, O) -> matmul matrix matching im2col order
        prep[f"{name}_w"] = jnp.transpose(w, (2, 3, 1, 0)).reshape(kh * kw * I, O)
        prep[f"{name}_b"] = params[f"{name}_b"]
    # fc weights pre-transposed to [K, N]; fc1 K-padded once + bf16 streamed.
    fc1_w = params["fc1_w"].T                   # [44944, 120]
    K = fc1_w.shape[0]
    Kp = _round_up(K, FC1_TK * FC1_CORE_SPLIT)  # 45056
    prep["fc1_w"] = jnp.pad(fc1_w, ((0, Kp - K), (0, 0))).astype(jnp.bfloat16)
    prep["fc1_b"] = params["fc1_b"]
    prep["fc2_w"] = params["fc2_w"].T
    prep["fc2_b"] = params["fc2_b"]
    prep["fc3_w"] = params["fc3_w"].T
    prep["fc3_b"] = params["fc3_b"]
    return prep


# ---------------------------------------------------------------------------
# Net forward (Pallas path) and pure-JAX reference.
# ---------------------------------------------------------------------------
def net_forward(prep, x_nchw):
    x = jnp.transpose(x_nchw, (0, 2, 3, 1))  # NCHW -> NHWC (channels -> lanes)
    x = maxpool2x2(conv2d_relu(x, prep["conv1_w"], prep["conv1_b"], kh=5, kw=5))
    x = maxpool2x2(conv2d_relu(x, prep["conv2_w"], prep["conv2_b"], kh=5, kw=5))
    N = x.shape[0]
    # torch.flatten(x, 1) flattens in (C, H, W) order; match it from NHWC.
    x = jnp.transpose(x, (0, 3, 1, 2)).reshape(N, -1)  # [N, 16*53*53]
    # fc1: pad activations K once to match the pre-padded bf16 weight.
    Kp = prep["fc1_w"].shape[0]
    x = jnp.pad(x, ((0, 0), (0, Kp - x.shape[1])))
    x = matmul_bias_ksplit(x, prep["fc1_w"], prep["fc1_b"], relu=True)
    x = matmul_bias_fused(x, prep["fc2_w"], prep["fc2_b"], relu=True)
    x = matmul_bias_fused(x, prep["fc3_w"], prep["fc3_b"], relu=False)
    return x


def net_forward_ref(params, x_nchw):
    dn = ("NCHW", "OIHW", "NCHW")
    x = jax.lax.conv_general_dilated(x_nchw, params["conv1_w"], (1, 1),
                                     "VALID", dimension_numbers=dn)
    x = jax.nn.relu(x + params["conv1_b"][None, :, None, None])
    x = jax.lax.reduce_window(x, -jnp.inf, jax.lax.max,
                              (1, 1, 2, 2), (1, 1, 2, 2), "VALID")
    x = jax.lax.conv_general_dilated(x, params["conv2_w"], (1, 1),
                                     "VALID", dimension_numbers=dn)
    x = jax.nn.relu(x + params["conv2_b"][None, :, None, None])
    x = jax.lax.reduce_window(x, -jnp.inf, jax.lax.max,
                              (1, 1, 2, 2), (1, 1, 2, 2), "VALID")
    x = x.reshape(x.shape[0], -1)
    x = jax.nn.relu(x @ params["fc1_w"].T + params["fc1_b"])
    x = jax.nn.relu(x @ params["fc2_w"].T + params["fc2_b"])
    return x @ params["fc3_w"].T + params["fc3_b"]


def init_params(key, num_classes=3):
    ks = jax.random.split(key, 6)

    def w(k, shape, fan_in):
        return (jax.random.normal(k, shape, jnp.float32)
                * np.sqrt(2.0 / fan_in).astype(np.float32))

    return {
        "conv1_w": w(ks[0], (6, 3, 5, 5), 3 * 25),
        "conv1_b": jnp.zeros((6,), jnp.float32),
        "conv2_w": w(ks[1], (16, 6, 5, 5), 6 * 25),
        "conv2_b": jnp.zeros((16,), jnp.float32),
        "fc1_w": w(ks[2], (120, 16 * 53 * 53), 16 * 53 * 53),
        "fc1_b": jnp.zeros((120,), jnp.float32),
        "fc2_w": w(ks[3], (84, 120), 120),
        "fc2_b": jnp.zeros((84,), jnp.float32),
        "fc3_w": w(ks[4], (num_classes, 84), 84),
        "fc3_b": jnp.zeros((num_classes,), jnp.float32),
    }


if __name__ == "__main__":
    key = jax.random.PRNGKey(0)
    pkey, xkey = jax.random.split(key)
    params = init_params(pkey, num_classes=3)
    prep = preprocess_params(params)  # one-time weight layout prep

    # fc1 expects 16*53*53 features, which pins the input to 3x224x224 (NCHW).
    x = jax.random.normal(xkey, (2, 3, 224, 224), jnp.float32)

    fwd = jax.jit(net_forward)
    out = jax.block_until_ready(fwd(prep, x))
    assert out.shape == (2, 3), out.shape

    ref = jax.block_until_ready(net_forward_ref(params, x))
    # fc1's 44944-wide weight is streamed in bf16 (f32 accumulation), so allow
    # a slightly looser tolerance than pure-f32.
    assert np.allclose(np.asarray(out), np.asarray(ref), rtol=1e-2, atol=1e-2), (
        np.max(np.abs(np.asarray(out) - np.asarray(ref))))

    print("KERNEL_OK")
</pallas_src>

<mosaic_0001>
module attributes {stable_mosaic.version = 11 : i64} {
  func.func @_matmul_bias_single_kernel(%arg0: i32, %arg1: memref<1936x75xf32, #tpu.memory_space<vmem>>, %arg2: memref<75x6xf32, #tpu.memory_space<vmem>>, %arg3: memref<1x6xf32, #tpu.memory_space<vmem>>, %arg4: memref<1936x6xf32, #tpu.memory_space<vmem>>) attributes {dimension_semantics = [#tpu.dimension_semantics<parallel>], iteration_bounds = array<i64: 50>, scalar_prefetch = 0 : i64, scratch_operands = 0 : i64, tpu.core_type = #tpu.core_type<tc>, window_params = [{transform_indices = @transform_0, window_bounds = array<i64: 1936, 75>}, {pipeline_mode = #tpu.pipeline_mode<synchronous>, transform_indices = @transform_1, window_bounds = array<i64: 75, 6>}, {pipeline_mode = #tpu.pipeline_mode<synchronous>, transform_indices = @transform_2, window_bounds = array<i64: 1, 6>}, {transform_indices = @transform_3, window_bounds = array<i64: 1936, 6>}]} {
    %c0 = arith.constant 0 : index
    %c0_0 = arith.constant 0 : index
    %0 = vector.load %arg1[%c0, %c0_0] : memref<1936x75xf32, #tpu.memory_space<vmem>>, vector<1936x75xf32>
    %c0_1 = arith.constant 0 : index
    %c0_2 = arith.constant 0 : index
    %1 = vector.load %arg2[%c0_1, %c0_2] : memref<75x6xf32, #tpu.memory_space<vmem>>, vector<75x6xf32>
    %cst = arith.constant dense<0.000000e+00> : vector<1936x6xf32>
    %2 = tpu.matmul %0, %1, %cst {dimension_numbers = #tpu.dot_dimension_numbers<[1], [0], [0], [1], [0, 0, 1, 1], [], []>} : vector<1936x75xf32>, vector<75x6xf32>, vector<1936x6xf32> -> vector<1936x6xf32>
    %c0_3 = arith.constant 0 : index
    %c0_4 = arith.constant 0 : index
    %3 = vector.load %arg3[%c0_3, %c0_4] : memref<1x6xf32, #tpu.memory_space<vmem>>, vector<1x6xf32>
    %4 = vector.broadcast %3 : vector<1x6xf32> to vector<1936x6xf32>
    %5 = arith.addf %2, %4 : vector<1936x6xf32>
    %cst_5 = arith.constant 0.000000e+00 : f32
    %6 = vector.broadcast %cst_5 : f32 to vector<1936x6xf32>
    %7 = arith.maximumf %5, %6 : vector<1936x6xf32>
    %c0_6 = arith.constant 0 : index
    %c0_7 = arith.constant 0 : index
    %8 = vector.load %arg4[%c0_6, %c0_7] : memref<1936x6xf32, #tpu.memory_space<vmem>>, vector<1936x6xf32>
    tpu.vector_store %arg4[%c0_6, %c0_7], %7 {strides = array<i32>} : memref<1936x6xf32, #tpu.memory_space<vmem>>, vector<1936x6xf32>,
    return
  }
  func.func @transform_0(%arg0: i32) -> (i32, i32) {
    %c0_i32 = arith.constant 0 : i32
    %c0_i32_0 = arith.constant 0 : i32
    return %arg0, %c0_i32 : i32, i32
  }
  func.func @transform_1(%arg0: i32) -> (i32, i32) {
    %c0_i32 = arith.constant 0 : i32
    %c0_i32_0 = arith.constant 0 : i32
    %c0_i32_1 = arith.constant 0 : i32
    return %c0_i32, %c0_i32_0 : i32, i32
  }
  func.func @transform_2(%arg0: i32) -> (i32, i32) {
    %c0_i32 = arith.constant 0 : i32
    %c0_i32_0 = arith.constant 0 : i32
    %c0_i32_1 = arith.constant 0 : i32
    return %c0_i32, %c0_i32_0 : i32, i32
  }
  func.func @transform_3(%arg0: i32) -> (i32, i32) {
    %c0_i32 = arith.constant 0 : i32
    %c0_i32_0 = arith.constant 0 : i32
    return %arg0, %c0_i32 : i32, i32
  }
}

module attributes {stable_mosaic.version = 11 : i64} {
  func.func @_matmul_bias_single_kernel(%arg0: i32, %arg1: memref<424x150xf32, #tpu.memory_space<vmem>>, %arg2: memref<150x16xf32, #tpu.memory_space<vmem>>, %arg3: memref<1x16xf32, #tpu.memory_space<vmem>>, %arg4: memref<424x16xf32, #tpu.memory_space<vmem>>) attributes {dimension_semantics = [#tpu.dimension_semantics<parallel>], iteration_bounds = array<i64: 53>, scalar_prefetch = 0 : i64, scratch_operands = 0 : i64, tpu.core_type = #tpu.core_type<tc>, window_params = [{transform_indices = @transform_0, window_bounds = array<i64: 424, 150>}, {pipeline_mode = #tpu.pipeline_mode<synchronous>, transform_indices = @transform_1, window_bounds = array<i64: 150, 16>}, {pipeline_mode = #tpu.pipeline_mode<synchronous>, transform_indices = @transform_2, window_bounds = array<i64: 1, 16>}, {transform_indices = @transform_3, window_bounds = array<i64: 424, 16>}]} {
    %c0 = arith.constant 0 : index
    %c0_0 = arith.constant 0 : index
    %0 = vector.load %arg1[%c0, %c0_0] : memref<424x150xf32, #tpu.memory_space<vmem>>, vector<424x150xf32>
    %c0_1 = arith.constant 0 : index
    %c0_2 = arith.constant 0 : index
    %1 = vector.load %arg2[%c0_1, %c0_2] : memref<150x16xf32, #tpu.memory_space<vmem>>, vector<150x16xf32>
    %cst = arith.constant dense<0.000000e+00> : vector<424x16xf32>
    %2 = tpu.matmul %0, %1, %cst {dimension_numbers = #tpu.dot_dimension_numbers<[1], [0], [0], [1], [0, 0, 1, 1], [], []>} : vector<424x150xf32>, vector<150x16xf32>, vector<424x16xf32> -> vector<424x16xf32>
    %c0_3 = arith.constant 0 : index
    %c0_4 = arith.constant 0 : index
    %3 = vector.load %arg3[%c0_3, %c0_4] : memref<1x16xf32, #tpu.memory_space<vmem>>, vector<1x16xf32>
    %4 = vector.broadcast %3 : vector<1x16xf32> to vector<424x16xf32>
    %5 = arith.addf %2, %4 : vector<424x16xf32>
    %cst_5 = arith.constant 0.000000e+00 : f32
    %6 = vector.broadcast %cst_5 : f32 to vector<424x16xf32>
    %7 = arith.maximumf %5, %6 : vector<424x16xf32>
    %c0_6 = arith.constant 0 : index
    %c0_7 = arith.constant 0 : index
    %8 = vector.load %arg4[%c0_6, %c0_7] : memref<424x16xf32, #tpu.memory_space<vmem>>, vector<424x16xf32>
    tpu.vector_store %arg4[%c0_6, %c0_7], %7 {strides = array<i32>} : memref<424x16xf32, #tpu.memory_space<vmem>>, vector<424x16xf32>,
    return
  }
  func.func @transform_0(%arg0: i32) -> (i32, i32) {
    %c0_i32 = arith.constant 0 : i32
    %c0_i32_0 = arith.constant 0 : i32
    return %arg0, %c0_i32 : i32, i32
  }
  func.func @transform_1(%arg0: i32) -> (i32, i32) {
    %c0_i32 = arith.constant 0 : i32
    %c0_i32_0 = arith.constant 0 : i32
    %c0_i32_1 = arith.constant 0 : i32
    return %c0_i32, %c0_i32_0 : i32, i32
  }
  func.func @transform_2(%arg0: i32) -> (i32, i32) {
    %c0_i32 = arith.constant 0 : i32
    %c0_i32_0 = arith.constant 0 : i32
    %c0_i32_1 = arith.constant 0 : i32
    return %c0_i32, %c0_i32_0 : i32, i32
  }
  func.func @transform_3(%arg0: i32) -> (i32, i32) {
    %c0_i32 = arith.constant 0 : i32
    %c0_i32_0 = arith.constant 0 : i32
    return %arg0, %c0_i32 : i32, i32
  }
}

module attributes {stable_mosaic.version = 11 : i64} {
  func.func @_matmul_partial_kernel(%arg0: i32, %arg1: i32, %arg2: i32, %arg3: memref<8x2048xf32, #tpu.memory_space<vmem>>, %arg4: memref<2048x120xbf16, #tpu.memory_space<vmem>>, %arg5: memref<1x8x120xf32, #tpu.memory_space<vmem>>) attributes {dimension_semantics = [#tpu.dimension_semantics<parallel>, #tpu.dimension_semantics<parallel>, #tpu.dimension_semantics<arbitrary>], iteration_bounds = array<i64: 2, 1, 11>, scalar_prefetch = 0 : i64, scratch_operands = 0 : i64, tpu.core_type = #tpu.core_type<tc>, window_params = [{transform_indices = @transform_0, window_bounds = array<i64: 8, 2048>}, {transform_indices = @transform_1, window_bounds = array<i64: 2048, 120>}, {transform_indices = @transform_2, window_bounds = array<i64: 1, 8, 120>}]} {
    %c0_i32 = arith.constant 0 : i32
    %0 = arith.cmpi eq, %arg2, %c0_i32 : i32
    %1 = arith.extui %0 : i1 to i32
    %c0_i32_0 = arith.constant 0 : i32
    %2 = arith.cmpi ne, %1, %c0_i32_0 : i32
    scf.if %2 {
      %cst_10 = arith.constant 0.000000e+00 : f32
      %13 = vector.broadcast %cst_10 : f32 to vector<1x8x120xf32>
      %c0_11 = arith.constant 0 : index
      %c0_12 = arith.constant 0 : index
      %c0_13 = arith.constant 0 : index
      %14 = vector.load %arg5[%c0_11, %c0_12, %c0_13] : memref<1x8x120xf32, #tpu.memory_space<vmem>>, vector<1x8x120xf32>
      tpu.vector_store %arg5[%c0_11, %c0_12, %c0_13], %13 {strides = array<i32>} : memref<1x8x120xf32, #tpu.memory_space<vmem>>, vector<1x8x120xf32>,
    } else {
    }
    %c0 = arith.constant 0 : index
    %c0_1 = arith.constant 0 : index
    %c0_2 = arith.constant 0 : index
    %3 = vector.load %arg5[%c0, %c0_1, %c0_2] : memref<1x8x120xf32, #tpu.memory_space<vmem>>, vector<1x8x120xf32>
    %4 = vector.shape_cast %3 : vector<1x8x120xf32> to vector<8x120xf32>
    %c0_3 = arith.constant 0 : index
    %c0_4 = arith.constant 0 : index
    %5 = vector.load %arg3[%c0_3, %c0_4] : memref<8x2048xf32, #tpu.memory_space<vmem>>, vector<8x2048xf32>
    %c0_5 = arith.constant 0 : index
    %c0_6 = arith.constant 0 : index
    %6 = vector.load %arg4[%c0_5, %c0_6] : memref<2048x120xbf16, #tpu.memory_space<vmem>>, vector<2048x120xbf16>
    %7 = arith.extf %6 : vector<2048x120xbf16> to vector<2048x120xf32>
    %cst = arith.constant dense<0.000000e+00> : vector<8x120xf32>
    %8 = tpu.matmul %5, %7, %cst {dimension_numbers = #tpu.dot_dimension_numbers<[1], [0], [0], [1], [0, 0, 1, 1], [], []>} : vector<8x2048xf32>, vector<2048x120xf32>, vector<8x120xf32> -> vector<8x120xf32>
    %9 = arith.addf %4, %8 : vector<8x120xf32>
    %c0_7 = arith.constant 0 : index
    %c0_8 = arith.constant 0 : index
    %c0_9 = arith.constant 0 : index
    %10 = vector.load %arg5[%c0_7, %c0_8, %c0_9] : memref<1x8x120xf32, #tpu.memory_space<vmem>>, vector<1x8x120xf32>
    %11 = vector.shape_cast %10 : vector<1x8x120xf32> to vector<8x120xf32>
    %12 = vector.shape_cast %9 : vector<8x120xf32> to vector<1x8x120xf32>
    tpu.vector_store %arg5[%c0_7, %c0_8, %c0_9], %12 {strides = array<i32>} : memref<1x8x120xf32, #tpu.memory_space<vmem>>, vector<1x8x120xf32>,
    return
  }
  func.func @transform_0(%arg0: i32, %arg1: i32, %arg2: i32) -> (i32, i32) {
    %c11_i32 = arith.constant 11 : i32
    %0 = arith.muli %arg0, %c11_i32 : i32
    %1 = arith.addi %0, %arg2 : i32
    %c0_i32 = arith.constant 0 : i32
    return %arg1, %1 : i32, i32
  }
  func.func @transform_1(%arg0: i32, %arg1: i32, %arg2: i32) -> (i32, i32) {
    %c11_i32 = arith.constant 11 : i32
    %0 = arith.muli %arg0, %c11_i32 : i32
    %1 = arith.addi %0, %arg2 : i32
    %c0_i32 = arith.constant 0 : i32
    %c0_i32_0 = arith.constant 0 : i32
    return %1, %c0_i32 : i32, i32
  }
  func.func @transform_2(%arg0: i32, %arg1: i32, %arg2: i32) -> (i32, i32, i32) {
    %c0_i32 = arith.constant 0 : i32
    %c0_i32_0 = arith.constant 0 : i32
    return %arg0, %arg1, %c0_i32 : i32, i32, i32
  }
}

module attributes {stable_mosaic.version = 11 : i64} {
  func.func @_matmul_bias_single_kernel(%arg0: i32, %arg1: memref<8x120xf32, #tpu.memory_space<vmem>>, %arg2: memref<120x84xf32, #tpu.memory_space<vmem>>, %arg3: memref<1x84xf32, #tpu.memory_space<vmem>>, %arg4: memref<8x84xf32, #tpu.memory_space<vmem>>) attributes {dimension_semantics = [#tpu.dimension_semantics<parallel>], iteration_bounds = array<i64: 1>, scalar_prefetch = 0 : i64, scratch_operands = 0 : i64, tpu.core_type = #tpu.core_type<tc>, window_params = [{transform_indices = @transform_0, window_bounds = array<i64: 8, 120>}, {pipeline_mode = #tpu.pipeline_mode<synchronous>, transform_indices = @transform_1, window_bounds = array<i64: 120, 84>}, {pipeline_mode = #tpu.pipeline_mode<synchronous>, transform_indices = @transform_2, window_bounds = array<i64: 1, 84>}, {transform_indices = @transform_3, window_bounds = array<i64: 8, 84>}]} {
    %c0 = arith.constant 0 : index
    %c0_0 = arith.constant 0 : index
    %0 = vector.load %arg1[%c0, %c0_0] : memref<8x120xf32, #tpu.memory_space<vmem>>, vector<8x120xf32>
    %c0_1 = arith.constant 0 : index
    %c0_2 = arith.constant 0 : index
    %1 = vector.load %arg2[%c0_1, %c0_2] : memref<120x84xf32, #tpu.memory_space<vmem>>, vector<120x84xf32>
    %cst = arith.constant dense<0.000000e+00> : vector<8x84xf32>
    %2 = tpu.matmul %0, %1, %cst {dimension_numbers = #tpu.dot_dimension_numbers<[1], [0], [0], [1], [0, 0, 1, 1], [], []>} : vector<8x120xf32>, vector<120x84xf32>, vector<8x84xf32> -> vector<8x84xf32>
    %c0_3 = arith.constant 0 : index
    %c0_4 = arith.constant 0 : index
    %3 = vector.load %arg3[%c0_3, %c0_4] : memref<1x84xf32, #tpu.memory_space<vmem>>, vector<1x84xf32>
    %4 = vector.broadcast %3 : vector<1x84xf32> to vector<8x84xf32>
    %5 = arith.addf %2, %4 : vector<8x84xf32>
    %cst_5 = arith.constant 0.000000e+00 : f32
    %6 = vector.broadcast %cst_5 : f32 to vector<8x84xf32>
    %7 = arith.maximumf %5, %6 : vector<8x84xf32>
    %c0_6 = arith.constant 0 : index
    %c0_7 = arith.constant 0 : index
    %8 = vector.load %arg4[%c0_6, %c0_7] : memref<8x84xf32, #tpu.memory_space<vmem>>, vector<8x84xf32>
    tpu.vector_store %arg4[%c0_6, %c0_7], %7 {strides = array<i32>} : memref<8x84xf32, #tpu.memory_space<vmem>>, vector<8x84xf32>,
    return
  }
  func.func @transform_0(%arg0: i32) -> (i32, i32) {
    %c0_i32 = arith.constant 0 : i32
    %c0_i32_0 = arith.constant 0 : i32
    return %arg0, %c0_i32 : i32, i32
  }
  func.func @transform_1(%arg0: i32) -> (i32, i32) {
    %c0_i32 = arith.constant 0 : i32
    %c0_i32_0 = arith.constant 0 : i32
    %c0_i32_1 = arith.constant 0 : i32
    return %c0_i32, %c0_i32_0 : i32, i32
  }
  func.func @transform_2(%arg0: i32) -> (i32, i32) {
    %c0_i32 = arith.constant 0 : i32
    %c0_i32_0 = arith.constant 0 : i32
    %c0_i32_1 = arith.constant 0 : i32
    return %c0_i32, %c0_i32_0 : i32, i32
  }
  func.func @transform_3(%arg0: i32) -> (i32, i32) {
    %c0_i32 = arith.constant 0 : i32
    %c0_i32_0 = arith.constant 0 : i32
    return %arg0, %c0_i32 : i32, i32
  }
}

module attributes {stable_mosaic.version = 11 : i64} {
  func.func @_matmul_bias_single_kernel(%arg0: i32, %arg1: memref<8x84xf32, #tpu.memory_space<vmem>>, %arg2: memref<84x3xf32, #tpu.memory_space<vmem>>, %arg3: memref<1x3xf32, #tpu.memory_space<vmem>>, %arg4: memref<8x3xf32, #tpu.memory_space<vmem>>) attributes {dimension_semantics = [#tpu.dimension_semantics<parallel>], iteration_bounds = array<i64: 1>, scalar_prefetch = 0 : i64, scratch_operands = 0 : i64, tpu.core_type = #tpu.core_type<tc>, window_params = [{transform_indices = @transform_0, window_bounds = array<i64: 8, 84>}, {pipeline_mode = #tpu.pipeline_mode<synchronous>, transform_indices = @transform_1, window_bounds = array<i64: 84, 3>}, {pipeline_mode = #tpu.pipeline_mode<synchronous>, transform_indices = @transform_2, window_bounds = array<i64: 1, 3>}, {transform_indices = @transform_3, window_bounds = array<i64: 8, 3>}]} {
    %c0 = arith.constant 0 : index
    %c0_0 = arith.constant 0 : index
    %0 = vector.load %arg1[%c0, %c0_0] : memref<8x84xf32, #tpu.memory_space<vmem>>, vector<8x84xf32>
    %c0_1 = arith.constant 0 : index
    %c0_2 = arith.constant 0 : index
    %1 = vector.load %arg2[%c0_1, %c0_2] : memref<84x3xf32, #tpu.memory_space<vmem>>, vector<84x3xf32>
    %cst = arith.constant dense<0.000000e+00> : vector<8x3xf32>
    %2 = tpu.matmul %0, %1, %cst {dimension_numbers = #tpu.dot_dimension_numbers<[1], [0], [0], [1], [0, 0, 1, 1], [], []>} : vector<8x84xf32>, vector<84x3xf32>, vector<8x3xf32> -> vector<8x3xf32>
    %c0_3 = arith.constant 0 : index
    %c0_4 = arith.constant 0 : index
    %3 = vector.load %arg3[%c0_3, %c0_4] : memref<1x3xf32, #tpu.memory_space<vmem>>, vector<1x3xf32>
    %4 = vector.broadcast %3 : vector<1x3xf32> to vector<8x3xf32>
    %5 = arith.addf %2, %4 : vector<8x3xf32>
    %c0_5 = arith.constant 0 : index
    %c0_6 = arith.constant 0 : index
    %6 = vector.load %arg4[%c0_5, %c0_6] : memref<8x3xf32, #tpu.memory_space<vmem>>, vector<8x3xf32>
    tpu.vector_store %arg4[%c0_5, %c0_6], %5 {strides = array<i32>} : memref<8x3xf32, #tpu.memory_space<vmem>>, vector<8x3xf32>,
    return
  }
  func.func @transform_0(%arg0: i32) -> (i32, i32) {
    %c0_i32 = arith.constant 0 : i32
    %c0_i32_0 = arith.constant 0 : i32
    return %arg0, %c0_i32 : i32, i32
  }
  func.func @transform_1(%arg0: i32) -> (i32, i32) {
    %c0_i32 = arith.constant 0 : i32
    %c0_i32_0 = arith.constant 0 : i32
    %c0_i32_1 = arith.constant 0 : i32
    return %c0_i32, %c0_i32_0 : i32, i32
  }
  func.func @transform_2(%arg0: i32) -> (i32, i32) {
    %c0_i32 = arith.constant 0 : i32
    %c0_i32_0 = arith.constant 0 : i32
    %c0_i32_1 = arith.constant 0 : i32
    return %c0_i32, %c0_i32_0 : i32, i32
  }
  func.func @transform_3(%arg0: i32) -> (i32, i32) {
    %c0_i32 = arith.constant 0 : i32
    %c0_i32_0 = arith.constant 0 : i32
    return %arg0, %c0_i32 : i32, i32
  }
}

</mosaic_0001>

<bundles_post_ra>
// kernel: net_forward.5
= control target key start
LH: loop header
LB: loop body
LE: loop exit
PB: predicated region body
PF: predicated region fallthrough
CT: control target
= control target key end

     0   :  { %8 = vsyncpa [#allocation3], 0  ;;  %s5541_s0 = inlined_call_operand.hbm [shape: f32[96800,75], index: 0, kind: input, shape index: {}]   ;;  %s5542_s1 = inlined_call_operand.vmem [shape: f32[75,6], index: 1, kind: input, shape index: {}]   ;;  %s5543_s2 = inlined_call_operand.vmem [shape: f32[1,6], index: 2, kind: input, shape index: {}]   ;;  %s5544_s3 = inlined_call_operand.hbm [shape: f32[96800,6], index: 3, kind: output, shape index: {}]  }
   0x1   :  { %10 = vsyncpa [#allocation3 + $0x1], 0 }
   0x2   :  { %11 = vsyncpa [#allocation4], 0 }
   0x3   :  { %13 = vsyncpa [#allocation4 + $0x1], 0  ;;  %s4128_s12 = smov 0   ;;  %s4130_s13 = smov 0  }
   0x4   :  { %s4132_s14 = smov 0   ;;  %s4134_s15 = smov 0  }
   0x5 LB: > { %s4149_s16 = sadd.s32 4294967295, %s4099_s15   ;;  %s3028_s17 = sadd.s32 4294967294, %s4099_s15   ;;  %s4099_s15 = sphi %s4134_s15, %s5555_s15   ;;  %s4095_s14 = sphi %s4132_s14, %s5554_s14   ;;  %s4091_s13 = sphi %s4130_s13, %s5553_s13   ;;  %s4087_s12 = sphi %s4128_s12, %s5552_s12  }
   0x6   : > { %s4153_s18 = sadd.s32 1, %s4099_s15   ;;  %s26_s19 = sadd.s32 1, %s4095_s14 }
   0x7   : > { %s23_s20 = ssub.s32 %s4099_s15, %s4153_s18  ;;  %p33_p0 = scmp.ne.s32.totalorder %s4095_s14, %s4091_s13 }
   0x8   : > { %p24_p1 = scmp.eq.s32.totalorder %s23_s20, 0  ;;  %p34_p2 = scmp.eq.s32.totalorder %s4099_s15, 0 }
   0x9   : > { %p39_p3 = scmp.ne.s32.totalorder %s4091_s13, %s4087_s12  ;;  %p40_p4 = scmp.eq.s32.totalorder %s4149_s16, 0 }
   0xa   : > { %s4165_s21 = scalar_select %p24_p1, %s4095_s14, %s26_s19  }
   0xb   : > { %p35_p5 = por %p34_p2, %p33_p0  ;;  %p4167_p6 = por %p40_p4, %p39_p3 }
   0xc   : > { %p105_p7 = scmp.eq.s32.totalorder %s4149_s16, 49  ;;  %p111_p8 = scmp.eq.s32.totalorder %s3028_s17, 49 }
   0xd   : > { %p3963_p9 = scmp.lt.s32.totalorder %s4099_s15, 50  ;;  %s137_s25 = sand.u32 1, %s4095_s14  }
   0xe   : > { %p4173_p10 = por %p105_p7, %p33_p0  ;;  %p4177_p11 = por %p111_p8, %p39_p3 }
   0xf   : > { %s3280_s26 = smul.u32 30976, %s4099_s15  ;;  %p4188_p12 = pnand %p3963_p9, %p35_p5 }
  0x10   : > { %s5547_s23 = scalar_select %p4173_p10, 1, 0 }
  0x11   : > { %s5548_s24 = scalar_select %p4177_p11, 1, 0 }
  0x12   : > { %s3949_s27 = smul.u32 1936, %s137_s25  ;;  %s4186_s30 = scalar_lea.hbm %s5541_s0, %s3280_s26 }
  0x13   : > { %s4194_s7 = scalar_lea.sflag [#allocation3], %s137_s25  ;;  %s4003_s8 = scalar_lea.hbm %s4186_s30, 30976 }
  0x14   : > { %s141_s5 = scalar_lea.vmem [#allocation2], %s3949_s27  ;;  %p4004_p13 = scmp.ne.s32.totalorder %s4186_s30, %s4003_s8 }
  0x15   : > { %s148_s6 = sshll.u32 %s141_s5, 4  ;;  %p4005_p0 = pneg %p4188_p12  ;;  %s4192_s6 = int_to_ptr.vmem [resolvable:$true] %s148_s6 }
  0x16   : > { %s4008_s11 = scalar_lea.hbm %s5541_s0, 1548800  ;;  %p4009_p3 = scmp.lt.u32.totalorder %s4186_s30, %s5541_s0 }
  0x17   : > { %p4006_p1 = pnand %p4005_p0, %p4004_p13  ;;  %p4010_p4 = scmp.lt.u32.totalorder %s4008_s11, %s4003_s8 }
  0x18   : > { %p4012_p7 = scmp.lt.u32.totalorder %s4003_s8, %s4186_s30 }
  0x19   : > { %p4007_p2 = pneg %p4006_p1  ;;  %p4011_p5 = por %p4010_p4, %p4009_p3 }
  0x1b   : > { %p4013_p8 = por %p4012_p7, %p4011_p5 }
  0x1d   : > { %p4014_p9 = pnand %p4013_p8, %p4007_p2 }
  0x1f   : > { %4017 = shalt.err (!%p4014_p9)
}
  0x20   : > { %s4018_s20 = scalar_lea.vmem %s4192_s6, 30976  ;;  %s4101_s25 = smov [#allocation2]  }
  0x21   : > { %p4019_p13 = scmp.ne.s32.totalorder %s4192_s6, %s4018_s20  ;;  %s4023_s26 = sshll.u32 %s4101_s25, 4  ;;  %s4024_s26 = int_to_ptr.vmem [resolvable:$false] %s4023_s26 }
  0x22   : > { %s4025_s27 = scalar_lea.vmem %s4024_s26, 61952  ;;  %p4026_p10 = scmp.lt.s32.totalorder %s4192_s6, %s4024_s26 }
  0x23   : > { %p4021_p1 = pnand %p4019_p13, %p4005_p0  ;;  %p4027_p3 = scmp.lt.s32.totalorder %s4025_s27, %s4018_s20 }
  0x25   : > { %p4022_p11 = pneg %p4021_p1  ;;  %p4028_p4 = por %p4027_p3, %p4026_p10 }
  0x27   : > { %p4029_p5 = pnand %p4028_p4, %p4022_p11 }
  0x29   : > { %4032 = shalt.err (!%p4029_p5)
}
  0x2a   : > { %s4102_s28 = smov 128   ;;  %s4103_s29 = smov 8  }
  0x2b   : > { %3958 = dma.hbm_to_vmem [thread:$0]  (!%p4188_p12), %s4186_s30, 30976, %s4192_s6, %s4194_s7, %s4102_s28, %s4102_s28, %s4103_s29  }
  0x2c   : > { %p3032_p0 = scmp.ge.s32.totalorder %s4099_s15, 1  ;;  %p156_p2 = scmp.lt.s32.totalorder %s4099_s15, 51 }
  0x2e   : > { %p157_p7 = pnand %p3032_p0, %p156_p2 }
  0x2f   : > { %s4225_s5 = sand.u32 (!%p157_p7), 1, %s4091_s13  }
  0x30   : > { %160 = sbr.rel (%p157_p7) target bundleno = 551 (0x227), region = 32  ;;  %s163_s9 = scalar_lea.sflag (!%p157_p7), [#allocation3], %s4225_s5 }
  0x31   : > { %s3950_s8 = smul.u32 (!%p157_p7), 1936, %s4225_s5 }
  0x33   : > { %s4231_s10 = scalar_lea.vmem (!%p157_p7), [#allocation2], %s3950_s8 }
  0x37   : > { %4078 = dma.done.wait (%p4167_p6), %s163_s9, 30976  }
  0x38   : > { %4080 = vsyncadd (%p4167_p6), %s163_s9, 4294936320  ;;  %v433_v0 = vld [vmem:[%s5542_s1] sm:$0xff]  ;;  %v434_v1 = vld [vmem:[%s5542_s1 + $0x8] sm:$0xff]  ;;  %vm450_vm0 = vcmask 613376   ;;  %vm1177_vm1 = vcmask 1042432   ;;  %vm4104_vm2 = vmmov 1  }
  0x39   : > { %v435_v2 = vld [vmem:[%s5542_s1 + $0x10] sm:$0xff]  ;;  %v3917_v3 = vpack.c.bf16 %v434_v1, %v433_v0  ;;  %v436_v4 = vld [vmem:[%s5542_s1 + $0x18] sm:$0xff]  ;;  %v437_v6 = vld [vmem:[%s5542_s1 + $0x20] sm:$0xff]  ;;  %vm2698_vm4 = vcmask 48128   ;;  %s4718_s20 = scalar_lea.vmem [#allocation5], %s3950_s8  ;;  %s3281_s22 = smul.u32 30976, %s4149_s16 }
  0x3a   : > { %v3921_v5 = vpack.c.bf16 %v436_v4, %v435_v2  ;;  %v438_v7 = vld [vmem:[%s5542_s1 + $0x28] sm:$0xff]  ;;  %v191_v8 = vld [vmem:[%s4231_s10] sm:$0xff]  ;;  %v313_v9 = vld [vmem:[%s4231_s10 + $0x3d0] sm:$0xff]  ;;  %s2955_s25 = sshll.u32 %s4718_s20, 4  ;;  %s2942_s28 = scalar_lea.sflag [#allocation4], %s4225_s5  ;;  %s5494_s25 = int_to_ptr.vmem [resolvable:$true] %s2955_s25 }
  0x3b   : > { %3918 = vmatprep.subr.bf16.mxu0 %v3917_v3  ;;  %3939 = vmatprep.subr.bf16.mxu1 %v3917_v3  ;;  %v3925_v10 = vpack.c.bf16 %v438_v7, %v437_v6  ;;  %v439_v11 = vld [vmem:[%s5542_s1 + $0x30] sm:$0xff]  ;;  %v440_v12 = vld [vmem:[%s5542_s1 + $0x38] sm:$0xff]  ;;  %v441_v14 = vld [vmem:[%s5542_s1 + $0x40] sm:$0xff]  ;;  %s5492_s27 = scalar_lea.hbm %s5544_s3, %s3281_s22  ;;  %s4033_s29 = scalar_lea.vmem %s5494_s25, 30976 }
  0x3c   : > { %3920 = vmatpush3.bf16.msra.mxu0 %v3917_v3  ;;  %3944 = vmatpush3.bf16.msra.mxu1 %v3917_v3  ;;  %v3929_v13 = vpack.c.bf16 %v440_v12, %v439_v11  ;;  %v442_v15 = vld [vmem:[%s5542_s1 + $0x48] sm:$0x7]  ;;  %vm3934_vm3 = vmpackc.low %vm1177_vm1, %vm4104_vm2  ;;  %v193_v19 = vld [vmem:[%s4231_s10 + $0x10] sm:$0xff]  ;;  %p4034_p6 = scmp.ne.s32.totalorder %s5494_s25, %s4033_s29  ;;  %p5550_p10 = scmp.ne.s32.totalorder %s5547_s23, 0 }
  0x3d   : > { %3922 = vmatprep.subr.bf16.mxu0 %v3921_v5  ;;  %3940 = vmatprep.subr.bf16.mxu1 %v3921_v5  ;;  %v3933_v16 = vpack.c.bf16 %v442_v15, %v441_v14  ;;  %v192_v17 = vld [vmem:[%s4231_s10 + $0x8] sm:$0xff]  ;;  %v314_v18 = vld [vmem:[%s4231_s10 + $0x3d8] sm:$0xff]  ;;  %v315_v20 = vld [vmem:[%s4231_s10 + $0x3e0] sm:$0xff]  ;;  %s4105_s9 = smov [#allocation5]  }
  0x3e   : > { %3554 = vmatprep.mubr.msk.f32.mxu0 %vm450_vm0, %v191_v8  ;;  %3737 = vmatprep.mubr.msk.f32.mxu1 %vm450_vm0, %v313_v9  ;;  %v194_v21 = vld [vmem:[%s4231_s10 + $0x18] sm:$0xff]  ;;  %v316_v22 = vld [vmem:[%s4231_s10 + $0x3e8] sm:$0xff]  ;;  %v195_v23 = vld [vmem:[%s4231_s10 + $0x20] sm:$0xff]  ;;  %p4035_p11 = pnand %p4034_p6, %p5550_p10  ;;  %s4037_s30 = sshll.u32 %s4105_s9, 4  ;;  %s4038_s30 = int_to_ptr.vmem [resolvable:$false] %s4037_s30 }
  0x3f   : > { %v317_v24 = vld [vmem:[%s4231_s10 + $0x3f0] sm:$0xff]  ;;  %v196_v25 = vld [vmem:[%s4231_s10 + $0x28] sm:$0xff]  ;;  %v318_v26 = vld [vmem:[%s4231_s10 + $0x3f8] sm:$0xff]  ;;  %s4039_s4 = scalar_lea.vmem %s4038_s30, 61952  ;;  %p4040_p8 = scmp.lt.s32.totalorder %s5494_s25, %s4038_s30 }
  0x40   : > { %3924 = vmatpush3.bf16.msra.mxu0 %v3921_v5  ;;  %3945 = vmatpush3.bf16.msra.mxu1 %v3921_v5  ;;  %v197_v27 = vld [vmem:[%s4231_s10 + $0x30] sm:$0xff]  ;;  %v319_v28 = vld [vmem:[%s4231_s10 + $0x400] sm:$0xff]  ;;  %v198_v29 = vld [vmem:[%s4231_s10 + $0x38] sm:$0xff]  ;;  %p4036_p12 = pneg %p4035_p11  ;;  %p4041_p9 = scmp.lt.s32.totalorder %s4039_s4, %s4033_s29 }
  0x41   : > { %3926 = vmatprep.subr.bf16.mxu0 %v3925_v10  ;;  %3941 = vmatprep.subr.bf16.mxu1 %v3925_v10  ;;  %v320_v30 = vld [vmem:[%s4231_s10 + $0x408] sm:$0xff]  ;;  %v199_v31 = vld [vmem:[%s4231_s10 + $0x40] sm:$0xff]  ;;  %v321_v32 = vld [vmem:[%s4231_s10 + $0x410] sm:$0xff] }
  0x42   : > { %v200_v33 = vld [vmem:[%s4231_s10 + $0x48] sm:$0xff]  ;;  %v322_v34 = vld [vmem:[%s4231_s10 + $0x418] sm:$0xff]  ;;  %v201_v35 = vld [vmem:[%s4231_s10 + $0x50] sm:$0xff]  ;;  %p4042_p13 = por %p4041_p9, %p4040_p8 }
  0x43   : > { %v323_v36 = vld [vmem:[%s4231_s10 + $0x420] sm:$0xff]  ;;  %v202_v37 = vld [vmem:[%s4231_s10 + $0x58] sm:$0xff]  ;;  %v324_v38 = vld [vmem:[%s4231_s10 + $0x428] sm:$0xff] }
  0x44   : > { %3928 = vmatpush3.bf16.msra.mxu0 %v3925_v10  ;;  %3946 = vmatpush3.bf16.msra.mxu1 %v3925_v10  ;;  %v203_v39 = vld [vmem:[%s4231_s10 + $0x60] sm:$0xff]  ;;  %v325_v40 = vld [vmem:[%s4231_s10 + $0x430] sm:$0xff]  ;;  %v204_v41 = vld [vmem:[%s4231_s10 + $0x68] sm:$0xff]  ;;  %p4043_p1 = pnand %p4042_p13, %p4036_p12 }
  0x45   : > { %3930 = vmatprep.subr.bf16.mxu0 %v3929_v13  ;;  %3942 = vmatprep.subr.bf16.mxu1 %v3929_v13  ;;  %v326_v42 = vld [vmem:[%s4231_s10 + $0x438] sm:$0xff]  ;;  %v205_v43 = vld [vmem:[%s4231_s10 + $0x70] sm:$0xff]  ;;  %v327_v44 = vld [vmem:[%s4231_s10 + $0x440] sm:$0xff] }
  0x46   : > { %v206_v45 = vld [vmem:[%s4231_s10 + $0x78] sm:$0xff]  ;;  %v328_v46 = vld [vmem:[%s4231_s10 + $0x448] sm:$0xff]  ;;  %v207_v47 = vld [vmem:[%s4231_s10 + $0x80] sm:$0xff] }
  0x47   : > { %v329_v48 = vld [vmem:[%s4231_s10 + $0x450] sm:$0xff]  ;;  %v208_v49 = vld [vmem:[%s4231_s10 + $0x88] sm:$0xff]  ;;  %v330_v50 = vld [vmem:[%s4231_s10 + $0x458] sm:$0xff] }
  0x48   : > { %3932 = vmatpush3.bf16.msra.mxu0 %v3929_v13  ;;  %3947 = vmatpush3.bf16.msra.mxu1 %v3929_v13  ;;  %v209_v51 = vld [vmem:[%s4231_s10 + $0x90] sm:$0xff]  ;;  %v331_v52 = vld [vmem:[%s4231_s10 + $0x460] sm:$0xff]  ;;  %v210_v53 = vld [vmem:[%s4231_s10 + $0x98] sm:$0xff] }
  0x49   : > { %3935 = vmatprep.subr.msk.bf16.mxu0 %vm3934_vm3, %v3933_v16  ;;  %3943 = vmatprep.subr.msk.bf16.mxu1 %vm3934_vm3, %v3933_v16  ;;  %v332_v54 = vld [vmem:[%s4231_s10 + $0x468] sm:$0xff]  ;;  %v211_v55 = vld [vmem:[%s4231_s10 + $0xa0] sm:$0xff]  ;;  %v333_v56 = vld [vmem:[%s4231_s10 + $0x470] sm:$0xff] }
  0x4a   : > { %v212_v57 = vld [vmem:[%s4231_s10 + $0xa8] sm:$0xff]  ;;  %v334_v58 = vld [vmem:[%s4231_s10 + $0x478] sm:$0xff]  ;;  %v213_v59 = vld [vmem:[%s4231_s10 + $0xb0] sm:$0xff] }
  0x4b   : > { %v335_v60 = vld [vmem:[%s4231_s10 + $0x480] sm:$0xff]  ;;  %v214_v61 = vld [vmem:[%s4231_s10 + $0xb8] sm:$0xff]  ;;  %v336_v62 = vld [vmem:[%s4231_s10 + $0x488] sm:$0xff] }
  0x4c   : > { %3938 = vmatpush3.bf16.msk.msra.mxu0 %vm3934_vm3, %v3933_v16  ;;  %3948 = vmatpush3.bf16.msk.msra.mxu1 %vm3934_vm3, %v3933_v16  ;;  %v215_v63 = vld [vmem:[%s4231_s10 + $0xc0] sm:$0xff]  ;;  %v337_v0 = vld [vmem:[%s4231_s10 + $0x490] sm:$0xff]  ;;  %v216_v1 = vld [vmem:[%s4231_s10 + $0xc8] sm:$0xff] }
  0x4d   : > { %v338_v2 = vld [vmem:[%s4231_s10 + $0x498] sm:$0xff]  ;;  %v217_v3 = vld [vmem:[%s4231_s10 + $0xd0] sm:$0xff]  ;;  %v339_v4 = vld [vmem:[%s4231_s10 + $0x4a0] sm:$0xff] }
  0x4e   : > { %v218_v5 = vld [vmem:[%s4231_s10 + $0xd8] sm:$0xff]  ;;  %v340_v6 = vld [vmem:[%s4231_s10 + $0x4a8] sm:$0xff]  ;;  %v219_v7 = vld [vmem:[%s4231_s10 + $0xe0] sm:$0xff] }
  0x4f   : > { %3555 = vmatmul.mubr.msk.f32.vlgmr.msra.gmra.mrb[0].mxu0 %vm450_vm0, %v192_v17  ;;  %3738 = vmatmul.mubr.msk.f32.vlgmr.msra.gmra.mrb[0].mxu1 %vm450_vm0, %v314_v18  ;;  %v341_v8 = vld [vmem:[%s4231_s10 + $0x4b0] sm:$0xff]  ;;  %v220_v9 = vld [vmem:[%s4231_s10 + $0xe8] sm:$0xff]  ;;  %v342_v10 = vld [vmem:[%s4231_s10 + $0x4b8] sm:$0xff] }
  0x50   : > { %3557 = vmatprep.mubr.msk.f32.mxu0 %vm450_vm0, %v193_v19  ;;  %3740 = vmatprep.mubr.msk.f32.mxu1 %vm450_vm0, %v315_v20  ;;  %v221_v11 = vld [vmem:[%s4231_s10 + $0xf0] sm:$0xff]  ;;  %v343_v12 = vld [vmem:[%s4231_s10 + $0x4c0] sm:$0xff]  ;;  %v222_v13 = vld [vmem:[%s4231_s10 + $0xf8] sm:$0xff] }
  0x51   : > { %v344_v14 = vld [vmem:[%s4231_s10 + $0x4c8] sm:$0xff]  ;;  %v223_v15 = vld [vmem:[%s4231_s10 + $0x100] sm:$0xff]  ;;  %v345_v16 = vld [vmem:[%s4231_s10 + $0x4d0] sm:$0xff] }
  0x52   : > { %v224_v17 = vld [vmem:[%s4231_s10 + $0x108] sm:$0xff]  ;;  %v346_v18 = vld [vmem:[%s4231_s10 + $0x4d8] sm:$0xff]  ;;  %v225_v19 = vld [vmem:[%s4231_s10 + $0x110] sm:$0xff] }
  0x53   : > { %3558 = vmatmul.mubr.msk.f32.gmra.mrb[2].mxu0 %vm450_vm0, %v194_v21  ;;  %3741 = vmatmul.mubr.msk.f32.gmra.mrb[2].mxu1 %vm450_vm0, %v316_v22  ;;  %v347_v20 = vld [vmem:[%s4231_s10 + $0x4e0] sm:$0xff]  ;;  %v226_v21 = vld [vmem:[%s4231_s10 + $0x118] sm:$0xff]  ;;  %v348_v22 = vld [vmem:[%s4231_s10 + $0x4e8] sm:$0xff] }
  0x54   : > { %3560 = vmatprep.mubr.msk.f32.mxu0 %vm450_vm0, %v195_v23  ;;  %3743 = vmatprep.mubr.msk.f32.mxu1 %vm450_vm0, %v317_v24  ;;  %v227_v23 = vld [vmem:[%s4231_s10 + $0x120] sm:$0xff]  ;;  %v349_v24 = vld [vmem:[%s4231_s10 + $0x4f0] sm:$0xff] }
  0x57   : > { %3561 = vmatmul.mubr.msk.f32.gmra.mrb[4].mxu0 %vm450_vm0, %v196_v25  ;;  %3744 = vmatmul.mubr.msk.f32.gmra.mrb[4].mxu1 %vm450_vm0, %v318_v26  ;;  %v228_v25 = vld [vmem:[%s4231_s10 + $0x128] sm:$0xff]  ;;  %v350_v26 = vld [vmem:[%s4231_s10 + $0x4f8] sm:$0xff] }
  0x58   : > { %3563 = vmatprep.mubr.msk.f32.mxu0 %vm450_vm0, %v197_v27  ;;  %3746 = vmatprep.mubr.msk.f32.mxu1 %vm450_vm0, %v319_v28  ;;  %v229_v27 = vld [vmem:[%s4231_s10 + $0x130] sm:$0xff]  ;;  %v351_v28 = vld [vmem:[%s4231_s10 + $0x500] sm:$0xff] }
  0x5b   : > { %3564 = vmatmul.mubr.msk.f32.gmra.mrb[6].mxu0 %vm450_vm0, %v198_v29  ;;  %3747 = vmatmul.mubr.msk.f32.gmra.mrb[6].mxu1 %vm450_vm0, %v320_v30  ;;  %v230_v29 = vld [vmem:[%s4231_s10 + $0x138] sm:$0xff]  ;;  %v352_v30 = vld [vmem:[%s4231_s10 + $0x508] sm:$0xff] }
  0x5c   : > { %3566 = vmatprep.mubr.msk.f32.mxu0 %vm450_vm0, %v199_v31  ;;  %3749 = vmatprep.mubr.msk.f32.mxu1 %vm450_vm0, %v321_v32  ;;  %v231_v31 = vld [vmem:[%s4231_s10 + $0x140] sm:$0xff]  ;;  %v353_v32 = vld [vmem:[%s4231_s10 + $0x510] sm:$0xff] }
  0x5f   : > { %3567 = vmatmul.mubr.msk.f32.gmra.mrb[8].mxu0 %vm450_vm0, %v200_v33  ;;  %3750 = vmatmul.mubr.msk.f32.gmra.mrb[8].mxu1 %vm450_vm0, %v322_v34  ;;  %v232_v33 = vld [vmem:[%s4231_s10 + $0x148] sm:$0xff]  ;;  %v354_v34 = vld [vmem:[%s4231_s10 + $0x518] sm:$0xff] }
  0x60   : > { %3569 = vmatprep.mubr.msk.f32.mxu0 %vm450_vm0, %v201_v35  ;;  %3752 = vmatprep.mubr.msk.f32.mxu1 %vm450_vm0, %v323_v36  ;;  %v233_v35 = vld [vmem:[%s4231_s10 + $0x150] sm:$0xff]  ;;  %v355_v36 = vld [vmem:[%s4231_s10 + $0x520] sm:$0xff] }
  0x63   : > { %3570 = vmatmul.mubr.msk.f32.gmra.mrb[10].mxu0 %vm450_vm0, %v202_v37  ;;  %3753 = vmatmul.mubr.msk.f32.gmra.mrb[10].mxu1 %vm450_vm0, %v324_v38  ;;  %v234_v37 = vld [vmem:[%s4231_s10 + $0x158] sm:$0xff]  ;;  %v356_v38 = vld [vmem:[%s4231_s10 + $0x528] sm:$0xff] }
  0x64   : > { %3572 = vmatprep.mubr.msk.f32.mxu0 %vm450_vm0, %v203_v39  ;;  %3755 = vmatprep.mubr.msk.f32.mxu1 %vm450_vm0, %v325_v40  ;;  %v235_v39 = vld [vmem:[%s4231_s10 + $0x160] sm:$0xff]  ;;  %v357_v40 = vld [vmem:[%s4231_s10 + $0x530] sm:$0xff] }
  0x67   : > { %3573 = vmatmul.mubr.msk.f32.gmra.mrb[12].mxu0 %vm450_vm0, %v204_v41  ;;  %3756 = vmatmul.mubr.msk.f32.gmra.mrb[12].mxu1 %vm450_vm0, %v326_v42  ;;  %v236_v41 = vld [vmem:[%s4231_s10 + $0x168] sm:$0xff]  ;;  %v358_v42 = vld [vmem:[%s4231_s10 + $0x538] sm:$0xff] }
  0x68   : > { %3575 = vmatprep.mubr.msk.f32.mxu0 %vm450_vm0, %v205_v43  ;;  %3758 = vmatprep.mubr.msk.f32.mxu1 %vm450_vm0, %v327_v44  ;;  %v237_v43 = vld [vmem:[%s4231_s10 + $0x170] sm:$0xff]  ;;  %v359_v44 = vld [vmem:[%s4231_s10 + $0x540] sm:$0xff] }
  0x6b   : > { %3576 = vmatmul.mubr.msk.f32.gmra.mrb[14].mxu0 %vm450_vm0, %v206_v45  ;;  %3759 = vmatmul.mubr.msk.f32.gmra.mrb[14].mxu1 %vm450_vm0, %v328_v46  ;;  %v238_v45 = vld [vmem:[%s4231_s10 + $0x178] sm:$0xff]  ;;  %v360_v46 = vld [vmem:[%s4231_s10 + $0x548] sm:$0xff] }
  0x6c   : > { %3578 = vmatprep.mubr.msk.f32.mxu0 %vm450_vm0, %v207_v47  ;;  %3761 = vmatprep.mubr.msk.f32.mxu1 %vm450_vm0, %v329_v48  ;;  %v239_v47 = vld [vmem:[%s4231_s10 + $0x180] sm:$0xff]  ;;  %v361_v48 = vld [vmem:[%s4231_s10 + $0x550] sm:$0xff] }
  0x6f   : > { %3579 = vmatmul.mubr.msk.f32.gmra.mrb[16].mxu0 %vm450_vm0, %v208_v49  ;;  %3762 = vmatmul.mubr.msk.f32.gmra.mrb[16].mxu1 %vm450_vm0, %v330_v50  ;;  %v240_v49 = vld [vmem:[%s4231_s10 + $0x188] sm:$0xff]  ;;  %v362_v50 = vld [vmem:[%s4231_s10 + $0x558] sm:$0xff] }
  0x70   : > { %3581 = vmatprep.mubr.msk.f32.mxu0 %vm450_vm0, %v209_v51  ;;  %3764 = vmatprep.mubr.msk.f32.mxu1 %vm450_vm0, %v331_v52  ;;  %v241_v51 = vld [vmem:[%s4231_s10 + $0x190] sm:$0xff]  ;;  %v363_v52 = vld [vmem:[%s4231_s10 + $0x560] sm:$0xff] }
  0x73   : > { %3582 = vmatmul.mubr.msk.f32.gmra.mrb[18].mxu0 %vm450_vm0, %v210_v53  ;;  %3765 = vmatmul.mubr.msk.f32.gmra.mrb[18].mxu1 %vm450_vm0, %v332_v54  ;;  %v242_v53 = vld [vmem:[%s4231_s10 + $0x198] sm:$0xff]  ;;  %v364_v54 = vld [vmem:[%s4231_s10 + $0x568] sm:$0xff] }
  0x74   : > { %3584 = vmatprep.mubr.msk.f32.mxu0 %vm450_vm0, %v211_v55  ;;  %3767 = vmatprep.mubr.msk.f32.mxu1 %vm450_vm0, %v333_v56  ;;  %v243_v55 = vld [vmem:[%s4231_s10 + $0x1a0] sm:$0xff]  ;;  %v365_v56 = vld [vmem:[%s4231_s10 + $0x570] sm:$0xff] }
  0x77   : > { %3585 = vmatmul.mubr.msk.f32.gmra.mrb[20].mxu0 %vm450_vm0, %v212_v57  ;;  %3768 = vmatmul.mubr.msk.f32.gmra.mrb[20].mxu1 %vm450_vm0, %v334_v58  ;;  %v244_v57 = vld [vmem:[%s4231_s10 + $0x1a8] sm:$0xff]  ;;  %v366_v58 = vld [vmem:[%s4231_s10 + $0x578] sm:$0xff] }
  0x78   : > { %3587 = vmatprep.mubr.msk.f32.mxu0 %vm450_vm0, %v213_v59  ;;  %3770 = vmatprep.mubr.msk.f32.mxu1 %vm450_vm0, %v335_v60  ;;  %v245_v59 = vld [vmem:[%s4231_s10 + $0x1b0] sm:$0xff]  ;;  %v367_v60 = vld [vmem:[%s4231_s10 + $0x580] sm:$0xff] }
  0x7b   : > { %3588 = vmatmul.mubr.msk.f32.gmra.mrb[22].mxu0 %vm450_vm0, %v214_v61  ;;  %3771 = vmatmul.mubr.msk.f32.gmra.mrb[22].mxu1 %vm450_vm0, %v336_v62  ;;  %v246_v61 = vld [vmem:[%s4231_s10 + $0x1b8] sm:$0xff]  ;;  %v368_v62 = vld [vmem:[%s4231_s10 + $0x588] sm:$0xff] }
  0x7c   : > { %3590 = vmatprep.mubr.msk.f32.mxu0 %vm450_vm0, %v215_v63  ;;  %3773 = vmatprep.mubr.msk.f32.mxu1 %vm450_vm0, %v337_v0  ;;  %v247_v63 = vld [vmem:[%s4231_s10 + $0x1c0] sm:$0xff]  ;;  %v369_v0 = vld [vmem:[%s4231_s10 + $0x590] sm:$0xff] }
  0x7f   : > { %3591 = vmatmul.mubr.msk.f32.gmra.mrb[24].mxu0 %vm450_vm0, %v216_v1  ;;  %3774 = vmatmul.mubr.msk.f32.gmra.mrb[24].mxu1 %vm450_vm0, %v338_v2  ;;  %v248_v1 = vld [vmem:[%s4231_s10 + $0x1c8] sm:$0xff]  ;;  %v370_v2 = vld [vmem:[%s4231_s10 + $0x598] sm:$0xff] }
  0x80   : > { %3593 = vmatprep.mubr.msk.f32.mxu0 %vm450_vm0, %v217_v3  ;;  %3776 = vmatprep.mubr.msk.f32.mxu1 %vm450_vm0, %v339_v4  ;;  %v249_v3 = vld [vmem:[%s4231_s10 + $0x1d0] sm:$0xff]  ;;  %v371_v4 = vld [vmem:[%s4231_s10 + $0x5a0] sm:$0xff] }
  0x83   : > { %3594 = vmatmul.mubr.msk.f32.gmra.mrb[26].mxu0 %vm450_vm0, %v218_v5  ;;  %3777 = vmatmul.mubr.msk.f32.gmra.mrb[26].mxu1 %vm450_vm0, %v340_v6  ;;  %v250_v5 = vld [vmem:[%s4231_s10 + $0x1d8] sm:$0xff]  ;;  %v372_v6 = vld [vmem:[%s4231_s10 + $0x5a8] sm:$0xff] }
  0x84   : > { %3596 = vmatprep.mubr.msk.f32.mxu0 %vm450_vm0, %v219_v7  ;;  %3779 = vmatprep.mubr.msk.f32.mxu1 %vm450_vm0, %v341_v8  ;;  %v251_v7 = vld [vmem:[%s4231_s10 + $0x1e0] sm:$0xff]  ;;  %v373_v8 = vld [vmem:[%s4231_s10 + $0x5b0] sm:$0xff] }
  0x87   : > { %3597 = vmatmul.mubr.msk.f32.gmra.mrb[28].mxu0 %vm450_vm0, %v220_v9  ;;  %3780 = vmatmul.mubr.msk.f32.gmra.mrb[28].mxu1 %vm450_vm0, %v342_v10  ;;  %v252_v9 = vld [vmem:[%s4231_s10 + $0x1e8] sm:$0xff]  ;;  %v374_v10 = vld [vmem:[%s4231_s10 + $0x5b8] sm:$0xff] }
  0x88   : > { %3599 = vmatprep.mubr.msk.f32.mxu0 %vm450_vm0, %v221_v11  ;;  %3782 = vmatprep.mubr.msk.f32.mxu1 %vm450_vm0, %v343_v12  ;;  %v253_v11 = vld [vmem:[%s4231_s10 + $0x1f0] sm:$0xff]  ;;  %v375_v12 = vld [vmem:[%s4231_s10 + $0x5c0] sm:$0xff] }
  0x8b   : > { %3600 = vmatmul.mubr.msk.f32.gmra.mrb[30].mxu0 %vm450_vm0, %v222_v13  ;;  %3783 = vmatmul.mubr.msk.f32.gmra.mrb[30].mxu1 %vm450_vm0, %v344_v14  ;;  %v254_v13 = vld [vmem:[%s4231_s10 + $0x1f8] sm:$0xff]  ;;  %v376_v14 = vld [vmem:[%s4231_s10 + $0x5c8] sm:$0xff] }
  0x8c   : > { %3602 = vmatprep.mubr.msk.f32.mxu0 %vm450_vm0, %v223_v15  ;;  %3785 = vmatprep.mubr.msk.f32.mxu1 %vm450_vm0, %v345_v16  ;;  %v255_v15 = vld [vmem:[%s4231_s10 + $0x200] sm:$0xff]  ;;  %v377_v16 = vld [vmem:[%s4231_s10 + $0x5d0] sm:$0xff] }
  0x8f   : > { %3603 = vmatmul.mubr.msk.f32.gmra.mrb[32].mxu0 %vm450_vm0, %v224_v17  ;;  %3786 = vmatmul.mubr.msk.f32.gmra.mrb[32].mxu1 %vm450_vm0, %v346_v18  ;;  %v256_v17 = vld [vmem:[%s4231_s10 + $0x208] sm:$0xff]  ;;  %v378_v18 = vld [vmem:[%s4231_s10 + $0x5d8] sm:$0xff] }
  0x90   : > { %3605 = vmatprep.mubr.msk.f32.mxu0 %vm450_vm0, %v225_v19  ;;  %3788 = vmatprep.mubr.msk.f32.mxu1 %vm450_vm0, %v347_v20  ;;  %v257_v19 = vld [vmem:[%s4231_s10 + $0x210] sm:$0xff]  ;;  %v379_v20 = vld [vmem:[%s4231_s10 + $0x5e0] sm:$0xff] }
  0x93   : > { %3606 = vmatmul.mubr.msk.f32.gmra.mrb[34].mxu0 %vm450_vm0, %v226_v21  ;;  %3789 = vmatmul.mubr.msk.f32.gmra.mrb[34].mxu1 %vm450_vm0, %v348_v22  ;;  %v258_v21 = vld [vmem:[%s4231_s10 + $0x218] sm:$0xff]  ;;  %v380_v22 = vld [vmem:[%s4231_s10 + $0x5e8] sm:$0xff] }
  0x94   : > { %3608 = vmatprep.mubr.msk.f32.mxu0 %vm450_vm0, %v227_v23  ;;  %3791 = vmatprep.mubr.msk.f32.mxu1 %vm450_vm0, %v349_v24  ;;  %v259_v23 = vld [vmem:[%s4231_s10 + $0x220] sm:$0xff]  ;;  %v381_v24 = vld [vmem:[%s4231_s10 + $0x5f0] sm:$0xff] }
  0x97   : > { %3609 = vmatmul.mubr.msk.f32.gmra.mrb[36].mxu0 %vm450_vm0, %v228_v25  ;;  %3792 = vmatmul.mubr.msk.f32.gmra.mrb[36].mxu1 %vm450_vm0, %v350_v26  ;;  %v260_v25 = vld [vmem:[%s4231_s10 + $0x228] sm:$0xff]  ;;  %v382_v26 = vld [vmem:[%s4231_s10 + $0x5f8] sm:$0xff] }
  0x98   : > { %3611 = vmatprep.mubr.msk.f32.mxu0 %vm450_vm0, %v229_v27  ;;  %3794 = vmatprep.mubr.msk.f32.mxu1 %vm450_vm0, %v351_v28  ;;  %v261_v27 = vld [vmem:[%s4231_s10 + $0x230] sm:$0xff]  ;;  %v383_v28 = vld [vmem:[%s4231_s10 + $0x600] sm:$0xff] }
  0x9b   : > { %3612 = vmatmul.mubr.msk.f32.gmra.mrb[38].mxu0 %vm450_vm0, %v230_v29  ;;  %3795 = vmatmul.mubr.msk.f32.gmra.mrb[38].mxu1 %vm450_vm0, %v352_v30  ;;  %v262_v29 = vld [vmem:[%s4231_s10 + $0x238] sm:$0xff]  ;;  %v384_v30 = vld [vmem:[%s4231_s10 + $0x608] sm:$0xff] }
  0x9c   : > { %3614 = vmatprep.mubr.msk.f32.mxu0 %vm450_vm0, %v231_v31  ;;  %3797 = vmatprep.mubr.msk.f32.mxu1 %vm450_vm0, %v353_v32  ;;  %v263_v31 = vld [vmem:[%s4231_s10 + $0x240] sm:$0xff]  ;;  %v385_v32 = vld [vmem:[%s4231_s10 + $0x610] sm:$0xff] }
  0x9f   : > { %3615 = vmatmul.mubr.msk.f32.gmra.mrb[40].mxu0 %vm450_vm0, %v232_v33  ;;  %3798 = vmatmul.mubr.msk.f32.gmra.mrb[40].mxu1 %vm450_vm0, %v354_v34  ;;  %v264_v33 = vld [vmem:[%s4231_s10 + $0x248] sm:$0xff]  ;;  %v386_v34 = vld [vmem:[%s4231_s10 + $0x618] sm:$0xff] }
  0xa0   : > { %3617 = vmatprep.mubr.msk.f32.mxu0 %vm450_vm0, %v233_v35  ;;  %3800 = vmatprep.mubr.msk.f32.mxu1 %vm450_vm0, %v355_v36  ;;  %v265_v35 = vld [vmem:[%s4231_s10 + $0x250] sm:$0xff]  ;;  %v387_v36 = vld [vmem:[%s4231_s10 + $0x620] sm:$0xff] }
  0xa3   : > { %3618 = vmatmul.mubr.msk.f32.gmra.mrb[42].mxu0 %vm450_vm0, %v234_v37  ;;  %3801 = vmatmul.mubr.msk.f32.gmra.mrb[42].mxu1 %vm450_vm0, %v356_v38  ;;  %v266_v37 = vld [vmem:[%s4231_s10 + $0x258] sm:$0xff]  ;;  %v388_v38 = vld [vmem:[%s4231_s10 + $0x628] sm:$0xff] }
  0xa4   : > { %3620 = vmatprep.mubr.msk.f32.mxu0 %vm450_vm0, %v235_v39  ;;  %3803 = vmatprep.mubr.msk.f32.mxu1 %vm450_vm0, %v357_v40  ;;  %v267_v39 = vld [vmem:[%s4231_s10 + $0x260] sm:$0xff]  ;;  %v389_v40 = vld [vmem:[%s4231_s10 + $0x630] sm:$0xff] }
  0xa7   : > { %3621 = vmatmul.mubr.msk.f32.gmra.mrb[44].mxu0 %vm450_vm0, %v236_v41  ;;  %3804 = vmatmul.mubr.msk.f32.gmra.mrb[44].mxu1 %vm450_vm0, %v358_v42  ;;  %v268_v41 = vld [vmem:[%s4231_s10 + $0x268] sm:$0xff]  ;;  %v390_v42 = vld [vmem:[%s4231_s10 + $0x638] sm:$0xff] }
  0xa8   : > { %3623 = vmatprep.mubr.msk.f32.mxu0 %vm450_vm0, %v237_v43  ;;  %3806 = vmatprep.mubr.msk.f32.mxu1 %vm450_vm0, %v359_v44  ;;  %v269_v43 = vld [vmem:[%s4231_s10 + $0x270] sm:$0xff]  ;;  %v391_v44 = vld [vmem:[%s4231_s10 + $0x640] sm:$0xff] }
  0xab   : > { %3624 = vmatmul.mubr.msk.f32.gmra.mrb[46].mxu0 %vm450_vm0, %v238_v45  ;;  %3807 = vmatmul.mubr.msk.f32.gmra.mrb[46].mxu1 %vm450_vm0, %v360_v46  ;;  %v270_v45 = vld [vmem:[%s4231_s10 + $0x278] sm:$0xff]  ;;  %v392_v46 = vld [vmem:[%s4231_s10 + $0x648] sm:$0xff] }
  0xac   : > { %3626 = vmatprep.mubr.msk.f32.mxu0 %vm450_vm0, %v239_v47  ;;  %3809 = vmatprep.mubr.msk.f32.mxu1 %vm450_vm0, %v361_v48  ;;  %v271_v47 = vld [vmem:[%s4231_s10 + $0x280] sm:$0xff]  ;;  %v393_v48 = vld [vmem:[%s4231_s10 + $0x650] sm:$0xff] }
  0xaf   : > { %3627 = vmatmul.mubr.msk.f32.gmra.mrb[48].mxu0 %vm450_vm0, %v240_v49  ;;  %3810 = vmatmul.mubr.msk.f32.gmra.mrb[48].mxu1 %vm450_vm0, %v362_v50  ;;  %v272_v49 = vld [vmem:[%s4231_s10 + $0x288] sm:$0xff]  ;;  %v394_v50 = vld [vmem:[%s4231_s10 + $0x658] sm:$0xff] }
  0xb0   : > { %3629 = vmatprep.mubr.msk.f32.mxu0 %vm450_vm0, %v241_v51  ;;  %3812 = vmatprep.mubr.msk.f32.mxu1 %vm450_vm0, %v363_v52  ;;  %v273_v51 = vld [vmem:[%s4231_s10 + $0x290] sm:$0xff]  ;;  %v395_v52 = vld [vmem:[%s4231_s10 + $0x660] sm:$0xff] }
  0xb3   : > { %3630 = vmatmul.mubr.msk.f32.gmra.mrb[50].mxu0 %vm450_vm0, %v242_v53  ;;  %3813 = vmatmul.mubr.msk.f32.gmra.mrb[50].mxu1 %vm450_vm0, %v364_v54  ;;  %v274_v53 = vld [vmem:[%s4231_s10 + $0x298] sm:$0xff]  ;;  %v396_v54 = vld [vmem:[%s4231_s10 + $0x668] sm:$0xff] }
  0xb4   : > { %3632 = vmatprep.mubr.msk.f32.mxu0 %vm450_vm0, %v243_v55  ;;  %3815 = vmatprep.mubr.msk.f32.mxu1 %vm450_vm0, %v365_v56  ;;  %v275_v55 = vld [vmem:[%s4231_s10 + $0x2a0] sm:$0xff]  ;;  %v397_v56 = vld [vmem:[%s4231_s10 + $0x670] sm:$0xff] }
  0xb7   : > { %3633 = vmatmul.mubr.msk.f32.gmra.mrb[52].mxu0 %vm450_vm0, %v244_v57  ;;  %3816 = vmatmul.mubr.msk.f32.gmra.mrb[52].mxu1 %vm450_vm0, %v366_v58  ;;  %v276_v57 = vld [vmem:[%s4231_s10 + $0x2a8] sm:$0xff]  ;;  %v398_v58 = vld [vmem:[%s4231_s10 + $0x678] sm:$0xff] }
  0xb8   : > { %3635 = vmatprep.mubr.msk.f32.mxu0 %vm450_vm0, %v245_v59  ;;  %3818 = vmatprep.mubr.msk.f32.mxu1 %vm450_vm0, %v367_v60  ;;  %v277_v59 = vld [vmem:[%s4231_s10 + $0x2b0] sm:$0xff]  ;;  %v399_v60 = vld [vmem:[%s4231_s10 + $0x680] sm:$0xff] }
  0xbb   : > { %3636 = vmatmul.mubr.msk.f32.gmra.mrb[54].mxu0 %vm450_vm0, %v246_v61  ;;  %3819 = vmatmul.mubr.msk.f32.gmra.mrb[54].mxu1 %vm450_vm0, %v368_v62  ;;  %v278_v61 = vld [vmem:[%s4231_s10 + $0x2b8] sm:$0xff]  ;;  %v400_v62 = vld [vmem:[%s4231_s10 + $0x688] sm:$0xff] }
  0xbc   : > { %3638 = vmatprep.mubr.msk.f32.mxu0 %vm450_vm0, %v247_v63  ;;  %3821 = vmatprep.mubr.msk.f32.mxu1 %vm450_vm0, %v369_v0  ;;  %v279_v63 = vld [vmem:[%s4231_s10 + $0x2c0] sm:$0xff]  ;;  %v401_v0 = vld [vmem:[%s4231_s10 + $0x690] sm:$0xff] }
  0xbf   : > { %3639 = vmatmul.mubr.msk.f32.gmra.mrb[56].mxu0 %vm450_vm0, %v248_v1  ;;  %3822 = vmatmul.mubr.msk.f32.gmra.mrb[56].mxu1 %vm450_vm0, %v370_v2  ;;  %v280_v1 = vld [vmem:[%s4231_s10 + $0x2c8] sm:$0xff]  ;;  %v402_v2 = vld [vmem:[%s4231_s10 + $0x698] sm:$0xff] }
  0xc0   : > { %3641 = vmatprep.mubr.msk.f32.mxu0 %vm450_vm0, %v249_v3  ;;  %3824 = vmatprep.mubr.msk.f32.mxu1 %vm450_vm0, %v371_v4  ;;  %v281_v3 = vld [vmem:[%s4231_s10 + $0x2d0] sm:$0xff]  ;;  %v403_v4 = vld [vmem:[%s4231_s10 + $0x6a0] sm:$0xff] }
  0xc3   : > { %3642 = vmatmul.mubr.msk.f32.gmra.mrb[58].mxu0 %vm450_vm0, %v250_v5  ;;  %3825 = vmatmul.mubr.msk.f32.gmra.mrb[58].mxu1 %vm450_vm0, %v372_v6  ;;  %v282_v5 = vld [vmem:[%s4231_s10 + $0x2d8] sm:$0xff]  ;;  %v404_v6 = vld [vmem:[%s4231_s10 + $0x6a8] sm:$0xff] }
  0xc4   : > { %3644 = vmatprep.mubr.msk.f32.mxu0 %vm450_vm0, %v251_v7  ;;  %3827 = vmatprep.mubr.msk.f32.mxu1 %vm450_vm0, %v373_v8  ;;  %v283_v7 = vld [vmem:[%s4231_s10 + $0x2e0] sm:$0xff]  ;;  %v405_v8 = vld [vmem:[%s4231_s10 + $0x6b0] sm:$0xff] }
  0xc7   : > { %3645 = vmatmul.mubr.msk.f32.gmra.mrb[60].mxu0 %vm450_vm0, %v252_v9  ;;  %3828 = vmatmul.mubr.msk.f32.gmra.mrb[60].mxu1 %vm450_vm0, %v374_v10  ;;  %v284_v9 = vld [vmem:[%s4231_s10 + $0x2e8] sm:$0xff]  ;;  %v406_v10 = vld [vmem:[%s4231_s10 + $0x6b8] sm:$0xff] }
  0xc8   : > { %3647 = vmatprep.mubr.msk.f32.mxu0 %vm450_vm0, %v253_v11  ;;  %3830 = vmatprep.mubr.msk.f32.mxu1 %vm450_vm0, %v375_v12  ;;  %v285_v11 = vld [vmem:[%s4231_s10 + $0x2f0] sm:$0xff]  ;;  %v407_v12 = vld [vmem:[%s4231_s10 + $0x6c0] sm:$0xff] }
  0xcb   : > { %3648 = vmatmul.mubr.msk.f32.gmra.mrb[62].mxu0 %vm450_vm0, %v254_v13  ;;  %3831 = vmatmul.mubr.msk.f32.gmra.mrb[62].mxu1 %vm450_vm0, %v376_v14  ;;  %v286_v13 = vld [vmem:[%s4231_s10 + $0x2f8] sm:$0xff]  ;;  %v408_v14 = vld [vmem:[%s4231_s10 + $0x6c8] sm:$0xff] }
  0xcc   : > { %3650 = vmatprep.mubr.msk.f32.mxu0 %vm450_vm0, %v255_v15  ;;  %3833 = vmatprep.mubr.msk.f32.mxu1 %vm450_vm0, %v377_v16  ;;  %v287_v15 = vld [vmem:[%s4231_s10 + $0x300] sm:$0xff]  ;;  %v409_v16 = vld [vmem:[%s4231_s10 + $0x6d0] sm:$0xff] }
  0xcf   : > { %3651 = vmatmul.mubr.msk.f32.gmra.mrb[64].mxu0 %vm450_vm0, %v256_v17  ;;  %3834 = vmatmul.mubr.msk.f32.gmra.mrb[64].mxu1 %vm450_vm0, %v378_v18  ;;  %v288_v17 = vld [vmem:[%s4231_s10 + $0x308] sm:$0xff]  ;;  %v410_v18 = vld [vmem:[%s4231_s10 + $0x6d8] sm:$0xff] }
  0xd0   : > { %3653 = vmatprep.mubr.msk.f32.mxu0 %vm450_vm0, %v257_v19  ;;  %3836 = vmatprep.mubr.msk.f32.mxu1 %vm450_vm0, %v379_v20  ;;  %v289_v19 = vld [vmem:[%s4231_s10 + $0x310] sm:$0xff]  ;;  %v411_v20 = vld [vmem:[%s4231_s10 + $0x6e0] sm:$0xff] }
  0xd3   : > { %3654 = vmatmul.mubr.msk.f32.gmra.mrb[66].mxu0 %vm450_vm0, %v258_v21  ;;  %3837 = vmatmul.mubr.msk.f32.gmra.mrb[66].mxu1 %vm450_vm0, %v380_v22  ;;  %v290_v21 = vld [vmem:[%s4231_s10 + $0x318] sm:$0xff]  ;;  %v412_v22 = vld [vmem:[%s4231_s10 + $0x6e8] sm:$0xff] }
  0xd4   : > { %3656 = vmatprep.mubr.msk.f32.mxu0 %vm450_vm0, %v259_v23  ;;  %3839 = vmatprep.mubr.msk.f32.mxu1 %vm450_vm0, %v381_v24  ;;  %v291_v23 = vld [vmem:[%s4231_s10 + $0x320] sm:$0xff]  ;;  %v413_v24 = vld [vmem:[%s4231_s10 + $0x6f0] sm:$0xff] }
  0xd7   : > { %3657 = vmatmul.mubr.msk.f32.gmra.mrb[68].mxu0 %vm450_vm0, %v260_v25  ;;  %3840 = vmatmul.mubr.msk.f32.gmra.mrb[68].mxu1 %vm450_vm0, %v382_v26  ;;  %v292_v25 = vld [vmem:[%s4231_s10 + $0x328] sm:$0xff]  ;;  %v414_v26 = vld [vmem:[%s4231_s10 + $0x6f8] sm:$0xff] }
  0xd8   : > { %3659 = vmatprep.mubr.msk.f32.mxu0 %vm450_vm0, %v261_v27  ;;  %3842 = vmatprep.mubr.msk.f32.mxu1 %vm450_vm0, %v383_v28  ;;  %v293_v27 = vld [vmem:[%s4231_s10 + $0x330] sm:$0xff]  ;;  %v415_v28 = vld [vmem:[%s4231_s10 + $0x700] sm:$0xff] }
  0xdb   : > { %3660 = vmatmul.mubr.msk.f32.gmra.mrb[70].mxu0 %vm450_vm0, %v262_v29  ;;  %3843 = vmatmul.mubr.msk.f32.gmra.mrb[70].mxu1 %vm450_vm0, %v384_v30  ;;  %v294_v29 = vld [vmem:[%s4231_s10 + $0x338] sm:$0xff]  ;;  %v416_v30 = vld [vmem:[%s4231_s10 + $0x708] sm:$0xff] }
  0xdc   : > { %3662 = vmatprep.mubr.msk.f32.mxu0 %vm450_vm0, %v263_v31  ;;  %3845 = vmatprep.mubr.msk.f32.mxu1 %vm450_vm0, %v385_v32  ;;  %v295_v31 = vld [vmem:[%s4231_s10 + $0x340] sm:$0xff]  ;;  %v417_v32 = vld [vmem:[%s4231_s10 + $0x710] sm:$0xff] }
  0xdf   : > { %3663 = vmatmul.mubr.msk.f32.gmra.mrb[72].mxu0 %vm450_vm0, %v264_v33  ;;  %3846 = vmatmul.mubr.msk.f32.gmra.mrb[72].mxu1 %vm450_vm0, %v386_v34  ;;  %v296_v33 = vld [vmem:[%s4231_s10 + $0x348] sm:$0xff]  ;;  %v418_v34 = vld [vmem:[%s4231_s10 + $0x718] sm:$0xff] }
  0xe0   : > { %3665 = vmatprep.mubr.msk.f32.mxu0 %vm450_vm0, %v265_v35  ;;  %3848 = vmatprep.mubr.msk.f32.mxu1 %vm450_vm0, %v387_v36  ;;  %v297_v35 = vld [vmem:[%s4231_s10 + $0x350] sm:$0xff]  ;;  %v419_v36 = vld [vmem:[%s4231_s10 + $0x720] sm:$0xff] }
  0xe3   : > { %3666 = vmatmul.mubr.msk.f32.gmra.mrb[74].mxu0 %vm450_vm0, %v266_v37  ;;  %3849 = vmatmul.mubr.msk.f32.gmra.mrb[74].mxu1 %vm450_vm0, %v388_v38  ;;  %v4696_v37 = vld [vmem:[%s5543_s2] ss:$0 sm:$0xff]  ;;  %v298_v38 = vld [vmem:[%s4231_s10 + $0x358] sm:$0xff] }
  0xe4   : > { %3668 = vmatprep.mubr.msk.f32.mxu0 %vm450_vm0, %v267_v39  ;;  %3851 = vmatprep.mubr.msk.f32.mxu1 %vm450_vm0, %v389_v40  ;;  %v420_v39 = vld [vmem:[%s4231_s10 + $0x728] sm:$0xff]  ;;  %v299_v40 = vld [vmem:[%s4231_s10 + $0x360] sm:$0xff] }
  0xe7   : > { %3669 = vmatmul.mubr.msk.f32.gmra.mrb[76].mxu0 %vm450_vm0, %v268_v41  ;;  %3852 = vmatmul.mubr.msk.f32.gmra.mrb[76].mxu1 %vm450_vm0, %v390_v42  ;;  %v421_v41 = vld [vmem:[%s4231_s10 + $0x730] sm:$0xff] }
  0xe8   : > { %3671 = vmatprep.mubr.msk.f32.mxu0 %vm450_vm0, %v269_v43  ;;  %3854 = vmatprep.mubr.msk.f32.mxu1 %vm450_vm0, %v391_v44 }
  0xeb   : > { %3672 = vmatmul.mubr.msk.f32.gmra.mrb[78].mxu0 %vm450_vm0, %v270_v45  ;;  %3855 = vmatmul.mubr.msk.f32.gmra.mrb[78].mxu1 %vm450_vm0, %v392_v46 }
  0xec   : > { %3674 = vmatprep.mubr.msk.f32.mxu0 %vm450_vm0, %v271_v47  ;;  %3857 = vmatprep.mubr.msk.f32.mxu1 %vm450_vm0, %v393_v48 }
  0xef   : > { %3675 = vmatmul.mubr.msk.f32.gmra.mrb[80].mxu0 %vm450_vm0, %v272_v49  ;;  %3858 = vmatmul.mubr.msk.f32.gmra.mrb[80].mxu1 %vm450_vm0, %v394_v50  ;;  %v300_v50 = vld [vmem:[%s4231_s10 + $0x368] sm:$0xff] }
  0xf0   : > { %3677 = vmatprep.mubr.msk.f32.mxu0 %vm450_vm0, %v273_v51  ;;  %3860 = vmatprep.mubr.msk.f32.mxu1 %vm450_vm0, %v395_v52  ;;  %v422_v51 = vld [vmem:[%s4231_s10 + $0x738] sm:$0xff] }
  0xf3   : > { %3678 = vmatmul.mubr.msk.f32.gmra.mrb[82].mxu0 %vm450_vm0, %v274_v53  ;;  %3861 = vmatmul.mubr.msk.f32.gmra.mrb[82].mxu1 %vm450_vm0, %v396_v54  ;;  %v301_v54 = vld [vmem:[%s4231_s10 + $0x370] sm:$0xff] }
  0xf4   : > { %3680 = vmatprep.mubr.msk.f32.mxu0 %vm450_vm0, %v275_v55  ;;  %3863 = vmatprep.mubr.msk.f32.mxu1 %vm450_vm0, %v397_v56  ;;  %v423_v55 = vld [vmem:[%s4231_s10 + $0x740] sm:$0xff] }
  0xf7   : > { %3681 = vmatmul.mubr.msk.f32.gmra.mrb[84].mxu0 %vm450_vm0, %v276_v57  ;;  %3864 = vmatmul.mubr.msk.f32.gmra.mrb[84].mxu1 %vm450_vm0, %v398_v58 }
  0xf8   : > { %3683 = vmatprep.mubr.msk.f32.mxu0 %vm450_vm0, %v277_v59  ;;  %3866 = vmatprep.mubr.msk.f32.mxu1 %vm450_vm0, %v399_v60 }
  0xfb   : > { %3684 = vmatmul.mubr.msk.f32.gmra.mrb[86].mxu0 %vm450_vm0, %v278_v61  ;;  %3867 = vmatmul.mubr.msk.f32.gmra.mrb[86].mxu1 %vm450_vm0, %v400_v62 }
  0xfc   : > { %3686 = vmatprep.mubr.msk.f32.mxu0 %vm450_vm0, %v279_v63  ;;  %3869 = vmatprep.mubr.msk.f32.mxu1 %vm450_vm0, %v401_v0 }
  0xff   : > { %3687 = vmatmul.mubr.msk.f32.gmra.mrb[88].mxu0 %vm450_vm0, %v280_v1  ;;  %3870 = vmatmul.mubr.msk.f32.gmra.mrb[88].mxu1 %vm450_vm0, %v402_v2  ;;  %v302_v2 = vld [vmem:[%s4231_s10 + $0x378] sm:$0xff] }
 0x100   : > { %3689 = vmatprep.mubr.msk.f32.mxu0 %vm450_vm0, %v281_v3  ;;  %3872 = vmatprep.mubr.msk.f32.mxu1 %vm450_vm0, %v403_v4  ;;  %v424_v3 = vld [vmem:[%s4231_s10 + $0x748] sm:$0xff] }
 0x103   : > { %3690 = vmatmul.mubr.msk.f32.gmra.mrb[90].mxu0 %vm450_vm0, %v282_v5  ;;  %3873 = vmatmul.mubr.msk.f32.gmra.mrb[90].mxu1 %vm450_vm0, %v404_v6  ;;  %v303_v6 = vld [vmem:[%s4231_s10 + $0x380] sm:$0xff] }
 0x104   : > { %3692 = vmatprep.mubr.msk.f32.mxu0 %vm450_vm0, %v283_v7  ;;  %3875 = vmatprep.mubr.msk.f32.mxu1 %vm450_vm0, %v405_v8  ;;  %v425_v7 = vld [vmem:[%s4231_s10 + $0x750] sm:$0xff] }
 0x107   : > { %3693 = vmatmul.mubr.msk.f32.gmra.mrb[92].mxu0 %vm450_vm0, %v284_v9  ;;  %3876 = vmatmul.mubr.msk.f32.gmra.mrb[92].mxu1 %vm450_vm0, %v406_v10 }
 0x108   : > { %3695 = vmatprep.mubr.msk.f32.mxu0 %vm450_vm0, %v285_v11  ;;  %3878 = vmatprep.mubr.msk.f32.mxu1 %vm450_vm0, %v407_v12 }
 0x10b   : > { %3696 = vmatmul.mubr.msk.f32.gmra.mrb[94].mxu0 %vm450_vm0, %v286_v13  ;;  %3879 = vmatmul.mubr.msk.f32.gmra.mrb[94].mxu1 %vm450_vm0, %v408_v14 }
 0x10c   : > { %3698 = vmatprep.mubr.msk.f32.mxu0 %vm450_vm0, %v287_v15  ;;  %3881 = vmatprep.mubr.msk.f32.mxu1 %vm450_vm0, %v409_v16 }
 0x10f   : > { %3699 = vmatmul.mubr.msk.f32.gmra.mrb[96].mxu0 %vm450_vm0, %v288_v17  ;;  %3882 = vmatmul.mubr.msk.f32.gmra.mrb[96].mxu1 %vm450_vm0, %v410_v18  ;;  %v304_v18 = vld [vmem:[%s4231_s10 + $0x388] sm:$0xff] }
 0x110   : > { %3701 = vmatprep.mubr.msk.f32.mxu0 %vm450_vm0, %v289_v19  ;;  %3884 = vmatprep.mubr.msk.f32.mxu1 %vm450_vm0, %v411_v20  ;;  %v426_v19 = vld [vmem:[%s4231_s10 + $0x758] sm:$0xff] }
 0x113   : > { %3702 = vmatmul.mubr.msk.f32.gmra.mrb[98].mxu0 %vm450_vm0, %v290_v21  ;;  %3885 = vmatmul.mubr.msk.f32.gmra.mrb[98].mxu1 %vm450_vm0, %v412_v22  ;;  %v305_v22 = vld [vmem:[%s4231_s10 + $0x390] sm:$0xff] }
 0x114   : > { %3704 = vmatprep.mubr.msk.f32.mxu0 %vm450_vm0, %v291_v23  ;;  %3887 = vmatprep.mubr.msk.f32.mxu1 %vm450_vm0, %v413_v24  ;;  %v427_v23 = vld [vmem:[%s4231_s10 + $0x760] sm:$0xff] }
 0x117   : > { %3705 = vmatmul.mubr.msk.f32.gmra.mrb[100].mxu0 %vm450_vm0, %v292_v25  ;;  %3888 = vmatmul.mubr.msk.f32.gmra.mrb[100].mxu1 %vm450_vm0, %v414_v26 }
 0x118   : > { %3707 = vmatprep.mubr.msk.f32.mxu0 %vm450_vm0, %v293_v27  ;;  %3890 = vmatprep.mubr.msk.f32.mxu1 %vm450_vm0, %v415_v28 }
 0x11b   : > { %3708 = vmatmul.mubr.msk.f32.gmra.mrb[102].mxu0 %vm450_vm0, %v294_v29  ;;  %3891 = vmatmul.mubr.msk.f32.gmra.mrb[102].mxu1 %vm450_vm0, %v416_v30 }
 0x11c   : > { %3710 = vmatprep.mubr.msk.f32.mxu0 %vm450_vm0, %v295_v31  ;;  %3893 = vmatprep.mubr.msk.f32.mxu1 %vm450_vm0, %v417_v32 }
 0x11f   : > { %3711 = vmatmul.mubr.msk.f32.gmra.mrb[104].mxu0 %vm450_vm0, %v296_v33  ;;  %3894 = vmatmul.mubr.msk.f32.gmra.mrb[104].mxu1 %vm450_vm0, %v418_v34  ;;  %v306_v34 = vld [vmem:[%s4231_s10 + $0x398] sm:$0xff] }
 0x120   : > { %3713 = vmatprep.mubr.msk.f32.mxu0 %vm450_vm0, %v297_v35  ;;  %3896 = vmatprep.mubr.msk.f32.mxu1 %vm450_vm0, %v419_v36  ;;  %v428_v35 = vld [vmem:[%s4231_s10 + $0x768] sm:$0xff] }
 0x122   : > { %v3556_v42 = vpop.f32.mrb[0].mxu0  ;;  %v3739_v43 = vpop.f32.mrb[0].mxu1 }
 0x123   : > { %v1253_v44 = vadd.f32 %v3556_v42, %v4696_v37  ;;  %v1247_v45 = vpop.f32.mrb[1].mxu0  ;;  %3714 = vmatmul.mubr.msk.f32.gmra.mrb[106].mxu0 %vm450_vm0, %v298_v38  ;;  %v1863_v46 = vadd.f32 %v3739_v43, %v4696_v37  ;;  %v1857_v47 = vpop.f32.mrb[1].mxu1  ;;  %3897 = vmatmul.mubr.msk.f32.gmra.mrb[106].mxu1 %vm450_vm0, %v420_v39  ;;  %v307_v39 = vld [vmem:[%s4231_s10 + $0x3a0] sm:$0xff] }
 0x124   : > { %v1248_v48 = vadd.f32 %v4696_v37, %v1247_v45  ;;  %3716 = vmatprep.mubr.msk.f32.mxu0 %vm450_vm0, %v299_v40  ;;  %v1858_v49 = vadd.f32 %v4696_v37, %v1857_v47  ;;  %3899 = vmatprep.mubr.msk.f32.mxu1 %vm450_vm0, %v421_v41  ;;  %v429_v40 = vld [vmem:[%s4231_s10 + $0x770] sm:$0xff] }
 0x125   : > { %v2457_v52 = vmax.f32 %v1253_v44, 0.0  ;;  %v2579_v53 = vmax.f32 %v1863_v46, 0.0 }
 0x126   : > { %v2456_v56 = vmax.f32 %v1248_v48, 0.0  ;;  %v3559_v57 = vpop.f32.mrb[2].mxu0  ;;  %v2578_v58 = vmax.f32 %v1858_v49, 0.0  ;;  %v3742_v59 = vpop.f32.mrb[2].mxu1 }
 0x127   : > { %2700 = vst.msk [vmem:[%s4718_s20 + $0x8] sm:$0xff] %vm2698_vm4, %v2457_v52  ;;  %2822 = vst.msk [vmem:[%s4718_s20 + $0x3d8] sm:$0xff] %vm2698_vm4, %v2579_v53  ;;  %v1263_v60 = vadd.f32 %v3559_v57, %v4696_v37  ;;  %v1257_v61 = vpop.f32.mrb[3].mxu0  ;;  %3717 = vmatmul.mubr.msk.f32.gmra.mrb[108].mxu0 %vm450_vm0, %v300_v50  ;;  %v1873_v62 = vadd.f32 %v3742_v59, %v4696_v37  ;;  %v1867_v63 = vpop.f32.mrb[3].mxu1  ;;  %3900 = vmatmul.mubr.msk.f32.gmra.mrb[108].mxu1 %vm450_vm0, %v422_v51  ;;  %v308_v51 = vld [vmem:[%s4231_s10 + $0x3a8] sm:$0xff]  ;;  %v430_v52 = vld [vmem:[%s4231_s10 + $0x778] sm:$0xff] }
 0x128   : > { %2699 = vst.msk [vmem:[%s4718_s20] sm:$0xff] %vm2698_vm4, %v2456_v56  ;;  %2821 = vst.msk [vmem:[%s4718_s20 + $0x3d0] sm:$0xff] %vm2698_vm4, %v2578_v58  ;;  %v1258_v0 = vadd.f32 %v4696_v37, %v1257_v61  ;;  %3719 = vmatprep.mubr.msk.f32.mxu0 %vm450_vm0, %v301_v54  ;;  %v1868_v1 = vadd.f32 %v4696_v37, %v1867_v63  ;;  %3902 = vmatprep.mubr.msk.f32.mxu1 %vm450_vm0, %v423_v55  ;;  %v309_v55 = vld [vmem:[%s4231_s10 + $0x3b0] sm:$0xff]  ;;  %v431_v56 = vld [vmem:[%s4231_s10 + $0x780] sm:$0xff] }
 0x129   : > { %v2459_v4 = vmax.f32 %v1263_v60, 0.0  ;;  %v2581_v5 = vmax.f32 %v1873_v62, 0.0 }
 0x12a   : > { %v2458_v8 = vmax.f32 %v1258_v0, 0.0  ;;  %v3562_v9 = vpop.f32.mrb[4].mxu0  ;;  %v2580_v10 = vmax.f32 %v1868_v1, 0.0  ;;  %v3745_v11 = vpop.f32.mrb[4].mxu1 }
 0x12b   : > { %2702 = vst.msk [vmem:[%s4718_s20 + $0x18] sm:$0xff] %vm2698_vm4, %v2459_v4  ;;  %2824 = vst.msk [vmem:[%s4718_s20 + $0x3e8] sm:$0xff] %vm2698_vm4, %v2581_v5  ;;  %v1273_v12 = vadd.f32 %v3562_v9, %v4696_v37  ;;  %v1267_v13 = vpop.f32.mrb[5].mxu0  ;;  %3720 = vmatmul.mubr.msk.f32.gmra.mrb[110].mxu0 %vm450_vm0, %v302_v2  ;;  %v1883_v14 = vadd.f32 %v3745_v11, %v4696_v37  ;;  %v1877_v15 = vpop.f32.mrb[5].mxu1  ;;  %3903 = vmatmul.mubr.msk.f32.gmra.mrb[110].mxu1 %vm450_vm0, %v424_v3  ;;  %v310_v3 = vld [vmem:[%s4231_s10 + $0x3b8] sm:$0xff]  ;;  %v432_v4 = vld [vmem:[%s4231_s10 + $0x788] sm:$0xff] }
 0x12c   : > { %2701 = vst.msk [vmem:[%s4718_s20 + $0x10] sm:$0xff] %vm2698_vm4, %v2458_v8  ;;  %2823 = vst.msk [vmem:[%s4718_s20 + $0x3e0] sm:$0xff] %vm2698_vm4, %v2580_v10  ;;  %v1268_v16 = vadd.f32 %v4696_v37, %v1267_v13  ;;  %3722 = vmatprep.mubr.msk.f32.mxu0 %vm450_vm0, %v303_v6  ;;  %v1878_v17 = vadd.f32 %v4696_v37, %v1877_v15  ;;  %3905 = vmatprep.mubr.msk.f32.mxu1 %vm450_vm0, %v425_v7  ;;  %v311_v7 = vld [vmem:[%s4231_s10 + $0x3c0] sm:$0xff] }
 0x12d   : > { %v2461_v20 = vmax.f32 %v1273_v12, 0.0  ;;  %v2583_v21 = vmax.f32 %v1883_v14, 0.0 }
 0x12e   : > { %v2460_v24 = vmax.f32 %v1268_v16, 0.0  ;;  %v3565_v25 = vpop.f32.mrb[6].mxu0  ;;  %v2582_v26 = vmax.f32 %v1878_v17, 0.0  ;;  %v3748_v27 = vpop.f32.mrb[6].mxu1 }
 0x12f   : > { %2704 = vst.msk [vmem:[%s4718_s20 + $0x28] sm:$0xff] %vm2698_vm4, %v2461_v20  ;;  %2826 = vst.msk [vmem:[%s4718_s20 + $0x3f8] sm:$0xff] %vm2698_vm4, %v2583_v21  ;;  %v1283_v28 = vadd.f32 %v3565_v25, %v4696_v37  ;;  %v1277_v29 = vpop.f32.mrb[7].mxu0  ;;  %3723 = vmatmul.mubr.msk.f32.gmra.mrb[112].mxu0 %vm450_vm0, %v304_v18  ;;  %v1893_v30 = vadd.f32 %v3748_v27, %v4696_v37  ;;  %v1887_v31 = vpop.f32.mrb[7].mxu1  ;;  %3906 = vmatmul.mubr.msk.f32.gmra.mrb[112].mxu1 %vm450_vm0, %v426_v19  ;;  %v312_v18 = vld [vmem:[%s4231_s10 + $0x3c8] sm:$0xff] }
 0x130   : > { %2703 = vst.msk [vmem:[%s4718_s20 + $0x20] sm:$0xff] %vm2698_vm4, %v2460_v24  ;;  %2825 = vst.msk [vmem:[%s4718_s20 + $0x3f0] sm:$0xff] %vm2698_vm4, %v2582_v26  ;;  %v1278_v32 = vadd.f32 %v4696_v37, %v1277_v29  ;;  %3725 = vmatprep.mubr.msk.f32.mxu0 %vm450_vm0, %v305_v22  ;;  %v1888_v33 = vadd.f32 %v4696_v37, %v1887_v31  ;;  %3908 = vmatprep.mubr.msk.f32.mxu1 %vm450_vm0, %v427_v23 }
 0x131   : > { %v2463_v36 = vmax.f32 %v1283_v28, 0.0  ;;  %v2585_v38 = vmax.f32 %v1893_v30, 0.0 }
 0x132   : > { %v2462_v41 = vmax.f32 %v1278_v32, 0.0  ;;  %v3568_v42 = vpop.f32.mrb[8].mxu0  ;;  %v2584_v43 = vmax.f32 %v1888_v33, 0.0  ;;  %v3751_v44 = vpop.f32.mrb[8].mxu1 }
 0x133   : > { %2706 = vst.msk [vmem:[%s4718_s20 + $0x38] sm:$0xff] %vm2698_vm4, %v2463_v36  ;;  %2828 = vst.msk [vmem:[%s4718_s20 + $0x408] sm:$0xff] %vm2698_vm4, %v2585_v38  ;;  %v1293_v45 = vadd.f32 %v3568_v42, %v4696_v37  ;;  %v1287_v46 = vpop.f32.mrb[9].mxu0  ;;  %3726 = vmatmul.mubr.msk.f32.gmra.mrb[114].mxu0 %vm450_vm0, %v306_v34  ;;  %v1903_v47 = vadd.f32 %v3751_v44, %v4696_v37  ;;  %v1897_v48 = vpop.f32.mrb[9].mxu1  ;;  %3909 = vmatmul.mubr.msk.f32.gmra.mrb[114].mxu1 %vm450_vm0, %v428_v35 }
 0x134   : > { %2705 = vst.msk [vmem:[%s4718_s20 + $0x30] sm:$0xff] %vm2698_vm4, %v2462_v41  ;;  %2827 = vst.msk [vmem:[%s4718_s20 + $0x400] sm:$0xff] %vm2698_vm4, %v2584_v43  ;;  %v1288_v49 = vadd.f32 %v4696_v37, %v1287_v46  ;;  %3728 = vmatprep.mubr.msk.f32.mxu0 %vm450_vm0, %v307_v39  ;;  %v1898_v50 = vadd.f32 %v4696_v37, %v1897_v48  ;;  %3911 = vmatprep.mubr.msk.f32.mxu1 %vm450_vm0, %v429_v40 }
 0x135   : > { %v2465_v53 = vmax.f32 %v1293_v45, 0.0  ;;  %v2587_v54 = vmax.f32 %v1903_v47, 0.0 }
 0x136   : > { %v2464_v57 = vmax.f32 %v1288_v49, 0.0  ;;  %v3571_v58 = vpop.f32.mrb[10].mxu0  ;;  %v2586_v59 = vmax.f32 %v1898_v50, 0.0  ;;  %v3754_v60 = vpop.f32.mrb[10].mxu1 }
 0x137   : > { %2708 = vst.msk [vmem:[%s4718_s20 + $0x48] sm:$0xff] %vm2698_vm4, %v2465_v53  ;;  %2830 = vst.msk [vmem:[%s4718_s20 + $0x418] sm:$0xff] %vm2698_vm4, %v2587_v54  ;;  %v1303_v61 = vadd.f32 %v3571_v58, %v4696_v37  ;;  %v1297_v62 = vpop.f32.mrb[11].mxu0  ;;  %3729 = vmatmul.mubr.msk.f32.gmra.mrb[116].mxu0 %vm450_vm0, %v308_v51  ;;  %v1913_v63 = vadd.f32 %v3754_v60, %v4696_v37  ;;  %v1907_v0 = vpop.f32.mrb[11].mxu1  ;;  %3912 = vmatmul.mubr.msk.f32.gmra.mrb[116].mxu1 %vm450_vm0, %v430_v52 }
 0x138   : > { %2707 = vst.msk [vmem:[%s4718_s20 + $0x40] sm:$0xff] %vm2698_vm4, %v2464_v57  ;;  %2829 = vst.msk [vmem:[%s4718_s20 + $0x410] sm:$0xff] %vm2698_vm4, %v2586_v59  ;;  %v1298_v1 = vadd.f32 %v4696_v37, %v1297_v62  ;;  %3731 = vmatprep.mubr.msk.f32.mxu0 %vm450_vm0, %v309_v55  ;;  %v1908_v2 = vadd.f32 %v4696_v37, %v1907_v0  ;;  %3914 = vmatprep.mubr.msk.f32.mxu1 %vm450_vm0, %v431_v56 }
 0x139   : > { %v2467_v5 = vmax.f32 %v1303_v61, 0.0  ;;  %v2589_v6 = vmax.f32 %v1913_v63, 0.0 }
 0x13a   : > { %v2466_v8 = vmax.f32 %v1298_v1, 0.0  ;;  %v3574_v9 = vpop.f32.mrb[12].mxu0  ;;  %v2588_v10 = vmax.f32 %v1908_v2, 0.0  ;;  %v3757_v11 = vpop.f32.mrb[12].mxu1 }
 0x13b   : > { %2710 = vst.msk [vmem:[%s4718_s20 + $0x58] sm:$0xff] %vm2698_vm4, %v2467_v5  ;;  %2832 = vst.msk [vmem:[%s4718_s20 + $0x428] sm:$0xff] %vm2698_vm4, %v2589_v6  ;;  %v1313_v12 = vadd.f32 %v3574_v9, %v4696_v37  ;;  %v1307_v13 = vpop.f32.mrb[13].mxu0  ;;  %3732 = vmatmul.mubr.msk.f32.gmra.mrb[118].mxu0 %vm450_vm0, %v310_v3  ;;  %v1923_v14 = vadd.f32 %v3757_v11, %v4696_v37  ;;  %v1917_v15 = vpop.f32.mrb[13].mxu1  ;;  %3915 = vmatmul.mubr.msk.f32.gmra.mrb[118].mxu1 %vm450_vm0, %v432_v4 }
 0x13c   : > { %2709 = vst.msk [vmem:[%s4718_s20 + $0x50] sm:$0xff] %vm2698_vm4, %v2466_v8  ;;  %2831 = vst.msk [vmem:[%s4718_s20 + $0x420] sm:$0xff] %vm2698_vm4, %v2588_v10  ;;  %v1308_v16 = vadd.f32 %v4696_v37, %v1307_v13  ;;  %3734 = vmatprep.mubr.msk.f32.mxu0 %vm450_vm0, %v311_v7  ;;  %v1918_v17 = vadd.f32 %v4696_v37, %v1917_v15 }
 0x13d   : > { %v2469_v19 = vmax.f32 %v1313_v12, 0.0  ;;  %v2591_v20 = vmax.f32 %v1923_v14, 0.0 }
 0x13e   : > { %v2468_v21 = vmax.f32 %v1308_v16, 0.0  ;;  %v3577_v22 = vpop.f32.mrb[14].mxu0  ;;  %v2590_v23 = vmax.f32 %v1918_v17, 0.0  ;;  %v3760_v24 = vpop.f32.mrb[14].mxu1 }
 0x13f   : > { %2712 = vst.msk [vmem:[%s4718_s20 + $0x68] sm:$0xff] %vm2698_vm4, %v2469_v19  ;;  %2834 = vst.msk [vmem:[%s4718_s20 + $0x438] sm:$0xff] %vm2698_vm4, %v2591_v20  ;;  %v1323_v25 = vadd.f32 %v3577_v22, %v4696_v37  ;;  %v1317_v26 = vpop.f32.mrb[15].mxu0  ;;  %3735 = vmatmul.mubr.msk.f32.gmra.mrb[120].mxu0 %vm450_vm0, %v312_v18  ;;  %v1933_v27 = vadd.f32 %v3760_v24, %v4696_v37  ;;  %v1927_v28 = vpop.f32.mrb[15].mxu1 }
 0x140   : > { %2711 = vst.msk [vmem:[%s4718_s20 + $0x60] sm:$0xff] %vm2698_vm4, %v2468_v21  ;;  %2833 = vst.msk [vmem:[%s4718_s20 + $0x430] sm:$0xff] %vm2698_vm4, %v2590_v23  ;;  %v1318_v29 = vadd.f32 %v4696_v37, %v1317_v26  ;;  %v1928_v30 = vadd.f32 %v4696_v37, %v1927_v28 }
 0x141   : > { %v2471_v31 = vmax.f32 %v1323_v25, 0.0  ;;  %v2593_v32 = vmax.f32 %v1933_v27, 0.0 }
 0x142   : > { %v2470_v33 = vmax.f32 %v1318_v29, 0.0  ;;  %v3580_v34 = vpop.f32.mrb[16].mxu0  ;;  %v2592_v35 = vmax.f32 %v1928_v30, 0.0  ;;  %v3763_v36 = vpop.f32.mrb[16].mxu1 }
 0x143   : > { %2714 = vst.msk [vmem:[%s4718_s20 + $0x78] sm:$0xff] %vm2698_vm4, %v2471_v31  ;;  %2836 = vst.msk [vmem:[%s4718_s20 + $0x448] sm:$0xff] %vm2698_vm4, %v2593_v32  ;;  %v1333_v38 = vadd.f32 %v3580_v34, %v4696_v37  ;;  %v1327_v39 = vpop.f32.mrb[17].mxu0  ;;  %v1943_v40 = vadd.f32 %v3763_v36, %v4696_v37  ;;  %v1937_v41 = vpop.f32.mrb[17].mxu1 }
 0x144   : > { %2713 = vst.msk [vmem:[%s4718_s20 + $0x70] sm:$0xff] %vm2698_vm4, %v2470_v33  ;;  %2835 = vst.msk [vmem:[%s4718_s20 + $0x440] sm:$0xff] %vm2698_vm4, %v2592_v35  ;;  %v1328_v42 = vadd.f32 %v4696_v37, %v1327_v39  ;;  %v1938_v43 = vadd.f32 %v4696_v37, %v1937_v41 }
 0x145   : > { %v2473_v44 = vmax.f32 %v1333_v38, 0.0  ;;  %v2595_v45 = vmax.f32 %v1943_v40, 0.0 }
 0x146   : > { %v2472_v46 = vmax.f32 %v1328_v42, 0.0  ;;  %v3583_v47 = vpop.f32.mrb[18].mxu0  ;;  %v2594_v48 = vmax.f32 %v1938_v43, 0.0  ;;  %v3766_v49 = vpop.f32.mrb[18].mxu1 }
 0x147   : > { %2716 = vst.msk [vmem:[%s4718_s20 + $0x88] sm:$0xff] %vm2698_vm4, %v2473_v44  ;;  %2838 = vst.msk [vmem:[%s4718_s20 + $0x458] sm:$0xff] %vm2698_vm4, %v2595_v45  ;;  %v1343_v50 = vadd.f32 %v3583_v47, %v4696_v37  ;;  %v1337_v51 = vpop.f32.mrb[19].mxu0  ;;  %v1953_v52 = vadd.f32 %v3766_v49, %v4696_v37  ;;  %v1947_v53 = vpop.f32.mrb[19].mxu1 }
 0x148   : > { %2715 = vst.msk [vmem:[%s4718_s20 + $0x80] sm:$0xff] %vm2698_vm4, %v2472_v46  ;;  %2837 = vst.msk [vmem:[%s4718_s20 + $0x450] sm:$0xff] %vm2698_vm4, %v2594_v48  ;;  %v1338_v54 = vadd.f32 %v4696_v37, %v1337_v51  ;;  %v1948_v55 = vadd.f32 %v4696_v37, %v1947_v53 }
 0x149   : > { %v2475_v56 = vmax.f32 %v1343_v50, 0.0  ;;  %v2597_v57 = vmax.f32 %v1953_v52, 0.0 }
 0x14a   : > { %v2474_v58 = vmax.f32 %v1338_v54, 0.0  ;;  %v3586_v59 = vpop.f32.mrb[20].mxu0  ;;  %v2596_v60 = vmax.f32 %v1948_v55, 0.0  ;;  %v3769_v61 = vpop.f32.mrb[20].mxu1 }
 0x14b   : > { %2718 = vst.msk [vmem:[%s4718_s20 + $0x98] sm:$0xff] %vm2698_vm4, %v2475_v56  ;;  %2840 = vst.msk [vmem:[%s4718_s20 + $0x468] sm:$0xff] %vm2698_vm4, %v2597_v57  ;;  %v1353_v62 = vadd.f32 %v3586_v59, %v4696_v37  ;;  %v1347_v63 = vpop.f32.mrb[21].mxu0  ;;  %v1963_v0 = vadd.f32 %v3769_v61, %v4696_v37  ;;  %v1957_v1 = vpop.f32.mrb[21].mxu1 }
 0x14c   : > { %2717 = vst.msk [vmem:[%s4718_s20 + $0x90] sm:$0xff] %vm2698_vm4, %v2474_v58  ;;  %2839 = vst.msk [vmem:[%s4718_s20 + $0x460] sm:$0xff] %vm2698_vm4, %v2596_v60  ;;  %v1348_v2 = vadd.f32 %v4696_v37, %v1347_v63  ;;  %v1958_v3 = vadd.f32 %v4696_v37, %v1957_v1 }
 0x14d   : > { %v2477_v4 = vmax.f32 %v1353_v62, 0.0  ;;  %v2599_v5 = vmax.f32 %v1963_v0, 0.0 }
 0x14e   : > { %v2476_v6 = vmax.f32 %v1348_v2, 0.0  ;;  %v3589_v7 = vpop.f32.mrb[22].mxu0  ;;  %v2598_v8 = vmax.f32 %v1958_v3, 0.0  ;;  %v3772_v9 = vpop.f32.mrb[22].mxu1 }
 0x14f   : > { %2720 = vst.msk [vmem:[%s4718_s20 + $0xa8] sm:$0xff] %vm2698_vm4, %v2477_v4  ;;  %2842 = vst.msk [vmem:[%s4718_s20 + $0x478] sm:$0xff] %vm2698_vm4, %v2599_v5  ;;  %v1363_v10 = vadd.f32 %v3589_v7, %v4696_v37  ;;  %v1357_v11 = vpop.f32.mrb[23].mxu0  ;;  %v1973_v12 = vadd.f32 %v3772_v9, %v4696_v37  ;;  %v1967_v13 = vpop.f32.mrb[23].mxu1 }
 0x150   : > { %2719 = vst.msk [vmem:[%s4718_s20 + $0xa0] sm:$0xff] %vm2698_vm4, %v2476_v6  ;;  %2841 = vst.msk [vmem:[%s4718_s20 + $0x470] sm:$0xff] %vm2698_vm4, %v2598_v8  ;;  %v1358_v14 = vadd.f32 %v4696_v37, %v1357_v11  ;;  %v1968_v15 = vadd.f32 %v4696_v37, %v1967_v13 }
 0x151   : > { %v2479_v16 = vmax.f32 %v1363_v10, 0.0  ;;  %v2601_v17 = vmax.f32 %v1973_v12, 0.0 }
 0x152   : > { %v2478_v18 = vmax.f32 %v1358_v14, 0.0  ;;  %v3592_v19 = vpop.f32.mrb[24].mxu0  ;;  %v2600_v20 = vmax.f32 %v1968_v15, 0.0  ;;  %v3775_v21 = vpop.f32.mrb[24].mxu1 }
 0x153   : > { %2722 = vst.msk [vmem:[%s4718_s20 + $0xb8] sm:$0xff] %vm2698_vm4, %v2479_v16  ;;  %2844 = vst.msk [vmem:[%s4718_s20 + $0x488] sm:$0xff] %vm2698_vm4, %v2601_v17  ;;  %v1373_v22 = vadd.f32 %v3592_v19, %v4696_v37  ;;  %v1367_v23 = vpop.f32.mrb[25].mxu0  ;;  %v1983_v24 = vadd.f32 %v3775_v21, %v4696_v37  ;;  %v1977_v25 = vpop.f32.mrb[25].mxu1 }
 0x154   : > { %2721 = vst.msk [vmem:[%s4718_s20 + $0xb0] sm:$0xff] %vm2698_vm4, %v2478_v18  ;;  %2843 = vst.msk [vmem:[%s4718_s20 + $0x480] sm:$0xff] %vm2698_vm4, %v2600_v20  ;;  %v1368_v26 = vadd.f32 %v4696_v37, %v1367_v23  ;;  %v1978_v27 = vadd.f32 %v4696_v37, %v1977_v25 }
 0x155   : > { %v2481_v28 = vmax.f32 %v1373_v22, 0.0  ;;  %v2603_v29 = vmax.f32 %v1983_v24, 0.0 }
 0x156   : > { %v2480_v30 = vmax.f32 %v1368_v26, 0.0  ;;  %v3595_v31 = vpop.f32.mrb[26].mxu0  ;;  %v2602_v32 = vmax.f32 %v1978_v27, 0.0  ;;  %v3778_v33 = vpop.f32.mrb[26].mxu1 }
 0x157   : > { %2724 = vst.msk [vmem:[%s4718_s20 + $0xc8] sm:$0xff] %vm2698_vm4, %v2481_v28  ;;  %2846 = vst.msk [vmem:[%s4718_s20 + $0x498] sm:$0xff] %vm2698_vm4, %v2603_v29  ;;  %v1383_v34 = vadd.f32 %v3595_v31, %v4696_v37  ;;  %v1377_v35 = vpop.f32.mrb[27].mxu0  ;;  %v1993_v36 = vadd.f32 %v3778_v33, %v4696_v37  ;;  %v1987_v38 = vpop.f32.mrb[27].mxu1 }
 0x158   : > { %2723 = vst.msk [vmem:[%s4718_s20 + $0xc0] sm:$0xff] %vm2698_vm4, %v2480_v30  ;;  %2845 = vst.msk [vmem:[%s4718_s20 + $0x490] sm:$0xff] %vm2698_vm4, %v2602_v32  ;;  %v1378_v39 = vadd.f32 %v4696_v37, %v1377_v35  ;;  %v1988_v40 = vadd.f32 %v4696_v37, %v1987_v38 }
 0x159   : > { %v2483_v41 = vmax.f32 %v1383_v34, 0.0  ;;  %v2605_v42 = vmax.f32 %v1993_v36, 0.0 }
 0x15a   : > { %v2482_v43 = vmax.f32 %v1378_v39, 0.0  ;;  %v3598_v44 = vpop.f32.mrb[28].mxu0  ;;  %v2604_v45 = vmax.f32 %v1988_v40, 0.0  ;;  %v3781_v46 = vpop.f32.mrb[28].mxu1 }
 0x15b   : > { %2726 = vst.msk [vmem:[%s4718_s20 + $0xd8] sm:$0xff] %vm2698_vm4, %v2483_v41  ;;  %2848 = vst.msk [vmem:[%s4718_s20 + $0x4a8] sm:$0xff] %vm2698_vm4, %v2605_v42  ;;  %v1393_v47 = vadd.f32 %v3598_v44, %v4696_v37  ;;  %v1387_v48 = vpop.f32.mrb[29].mxu0  ;;  %v2003_v49 = vadd.f32 %v3781_v46, %v4696_v37  ;;  %v1997_v50 = vpop.f32.mrb[29].mxu1 }
 0x15c   : > { %2725 = vst.msk [vmem:[%s4718_s20 + $0xd0] sm:$0xff] %vm2698_vm4, %v2482_v43  ;;  %2847 = vst.msk [vmem:[%s4718_s20 + $0x4a0] sm:$0xff] %vm2698_vm4, %v2604_v45  ;;  %v1388_v51 = vadd.f32 %v4696_v37, %v1387_v48  ;;  %v1998_v52 = vadd.f32 %v4696_v37, %v1997_v50 }
 0x15d   : > { %v2485_v53 = vmax.f32 %v1393_v47, 0.0  ;;  %v2607_v54 = vmax.f32 %v2003_v49, 0.0 }
 0x15e   : > { %v2484_v55 = vmax.f32 %v1388_v51, 0.0  ;;  %v3601_v56 = vpop.f32.mrb[30].mxu0  ;;  %v2606_v57 = vmax.f32 %v1998_v52, 0.0  ;;  %v3784_v58 = vpop.f32.mrb[30].mxu1 }
 0x15f   : > { %2728 = vst.msk [vmem:[%s4718_s20 + $0xe8] sm:$0xff] %vm2698_vm4, %v2485_v53  ;;  %2850 = vst.msk [vmem:[%s4718_s20 + $0x4b8] sm:$0xff] %vm2698_vm4, %v2607_v54  ;;  %v1403_v59 = vadd.f32 %v3601_v56, %v4696_v37  ;;  %v1397_v60 = vpop.f32.mrb[31].mxu0  ;;  %v2013_v61 = vadd.f32 %v3784_v58, %v4696_v37  ;;  %v2007_v62 = vpop.f32.mrb[31].mxu1 }
 0x160   : > { %2727 = vst.msk [vmem:[%s4718_s20 + $0xe0] sm:$0xff] %vm2698_vm4, %v2484_v55  ;;  %2849 = vst.msk [vmem:[%s4718_s20 + $0x4b0] sm:$0xff] %vm2698_vm4, %v2606_v57  ;;  %v1398_v63 = vadd.f32 %v4696_v37, %v1397_v60  ;;  %v2008_v0 = vadd.f32 %v4696_v37, %v2007_v62 }
 0x161   : > { %v2487_v1 = vmax.f32 %v1403_v59, 0.0  ;;  %v2609_v2 = vmax.f32 %v2013_v61, 0.0 }
 0x162   : > { %v2486_v3 = vmax.f32 %v1398_v63, 0.0  ;;  %v3604_v4 = vpop.f32.mrb[32].mxu0  ;;  %v2608_v5 = vmax.f32 %v2008_v0, 0.0  ;;  %v3787_v6 = vpop.f32.mrb[32].mxu1 }
 0x163   : > { %2730 = vst.msk [vmem:[%s4718_s20 + $0xf8] sm:$0xff] %vm2698_vm4, %v2487_v1  ;;  %2852 = vst.msk [vmem:[%s4718_s20 + $0x4c8] sm:$0xff] %vm2698_vm4, %v2609_v2  ;;  %v1413_v7 = vadd.f32 %v3604_v4, %v4696_v37  ;;  %v1407_v8 = vpop.f32.mrb[33].mxu0  ;;  %v2023_v9 = vadd.f32 %v3787_v6, %v4696_v37  ;;  %v2017_v10 = vpop.f32.mrb[33].mxu1 }
 0x164   : > { %2729 = vst.msk [vmem:[%s4718_s20 + $0xf0] sm:$0xff] %vm2698_vm4, %v2486_v3  ;;  %2851 = vst.msk [vmem:[%s4718_s20 + $0x4c0] sm:$0xff] %vm2698_vm4, %v2608_v5  ;;  %v1408_v11 = vadd.f32 %v4696_v37, %v1407_v8  ;;  %v2018_v12 = vadd.f32 %v4696_v37, %v2017_v10 }
 0x165   : > { %v2489_v13 = vmax.f32 %v1413_v7, 0.0  ;;  %v2611_v14 = vmax.f32 %v2023_v9, 0.0 }
 0x166   : > { %v2488_v15 = vmax.f32 %v1408_v11, 0.0  ;;  %v3607_v16 = vpop.f32.mrb[34].mxu0  ;;  %v2610_v17 = vmax.f32 %v2018_v12, 0.0  ;;  %v3790_v18 = vpop.f32.mrb[34].mxu1 }
 0x167   : > { %2732 = vst.msk [vmem:[%s4718_s20 + $0x108] sm:$0xff] %vm2698_vm4, %v2489_v13  ;;  %2854 = vst.msk [vmem:[%s4718_s20 + $0x4d8] sm:$0xff] %vm2698_vm4, %v2611_v14  ;;  %v1423_v19 = vadd.f32 %v3607_v16, %v4696_v37  ;;  %v1417_v20 = vpop.f32.mrb[35].mxu0  ;;  %v2033_v21 = vadd.f32 %v3790_v18, %v4696_v37  ;;  %v2027_v22 = vpop.f32.mrb[35].mxu1 }
 0x168   : > { %2731 = vst.msk [vmem:[%s4718_s20 + $0x100] sm:$0xff] %vm2698_vm4, %v2488_v15  ;;  %2853 = vst.msk [vmem:[%s4718_s20 + $0x4d0] sm:$0xff] %vm2698_vm4, %v2610_v17  ;;  %v1418_v23 = vadd.f32 %v4696_v37, %v1417_v20  ;;  %v2028_v24 = vadd.f32 %v4696_v37, %v2027_v22 }
 0x169   : > { %v2491_v25 = vmax.f32 %v1423_v19, 0.0  ;;  %v2613_v26 = vmax.f32 %v2033_v21, 0.0 }
 0x16a   : > { %v2490_v27 = vmax.f32 %v1418_v23, 0.0  ;;  %v3610_v28 = vpop.f32.mrb[36].mxu0  ;;  %v2612_v29 = vmax.f32 %v2028_v24, 0.0  ;;  %v3793_v30 = vpop.f32.mrb[36].mxu1 }
 0x16b   : > { %2734 = vst.msk [vmem:[%s4718_s20 + $0x118] sm:$0xff] %vm2698_vm4, %v2491_v25  ;;  %2856 = vst.msk [vmem:[%s4718_s20 + $0x4e8] sm:$0xff] %vm2698_vm4, %v2613_v26  ;;  %v1433_v31 = vadd.f32 %v3610_v28, %v4696_v37  ;;  %v1427_v32 = vpop.f32.mrb[37].mxu0  ;;  %v2043_v33 = vadd.f32 %v3793_v30, %v4696_v37  ;;  %v2037_v34 = vpop.f32.mrb[37].mxu1 }
 0x16c   : > { %2733 = vst.msk [vmem:[%s4718_s20 + $0x110] sm:$0xff] %vm2698_vm4, %v2490_v27  ;;  %2855 = vst.msk [vmem:[%s4718_s20 + $0x4e0] sm:$0xff] %vm2698_vm4, %v2612_v29  ;;  %v1428_v35 = vadd.f32 %v4696_v37, %v1427_v32  ;;  %v2038_v36 = vadd.f32 %v4696_v37, %v2037_v34 }
 0x16d   : > { %v2493_v38 = vmax.f32 %v1433_v31, 0.0  ;;  %v2615_v39 = vmax.f32 %v2043_v33, 0.0 }
 0x16e   : > { %v2492_v40 = vmax.f32 %v1428_v35, 0.0  ;;  %v3613_v41 = vpop.f32.mrb[38].mxu0  ;;  %v2614_v42 = vmax.f32 %v2038_v36, 0.0  ;;  %v3796_v43 = vpop.f32.mrb[38].mxu1 }
 0x16f   : > { %2736 = vst.msk [vmem:[%s4718_s20 + $0x128] sm:$0xff] %vm2698_vm4, %v2493_v38  ;;  %2858 = vst.msk [vmem:[%s4718_s20 + $0x4f8] sm:$0xff] %vm2698_vm4, %v2615_v39  ;;  %v1443_v44 = vadd.f32 %v3613_v41, %v4696_v37  ;;  %v1437_v45 = vpop.f32.mrb[39].mxu0  ;;  %v2053_v46 = vadd.f32 %v3796_v43, %v4696_v37  ;;  %v2047_v47 = vpop.f32.mrb[39].mxu1 }
 0x170   : > { %2735 = vst.msk [vmem:[%s4718_s20 + $0x120] sm:$0xff] %vm2698_vm4, %v2492_v40  ;;  %2857 = vst.msk [vmem:[%s4718_s20 + $0x4f0] sm:$0xff] %vm2698_vm4, %v2614_v42  ;;  %v1438_v48 = vadd.f32 %v4696_v37, %v1437_v45  ;;  %v2048_v49 = vadd.f32 %v4696_v37, %v2047_v47 }
 0x171   : > { %v2495_v50 = vmax.f32 %v1443_v44, 0.0  ;;  %v2617_v51 = vmax.f32 %v2053_v46, 0.0 }
 0x172   : > { %v2494_v52 = vmax.f32 %v1438_v48, 0.0  ;;  %v3616_v53 = vpop.f32.mrb[40].mxu0  ;;  %v2616_v54 = vmax.f32 %v2048_v49, 0.0  ;;  %v3799_v55 = vpop.f32.mrb[40].mxu1 }
 0x173   : > { %2738 = vst.msk [vmem:[%s4718_s20 + $0x138] sm:$0xff] %vm2698_vm4, %v2495_v50  ;;  %2860 = vst.msk [vmem:[%s4718_s20 + $0x508] sm:$0xff] %vm2698_vm4, %v2617_v51  ;;  %v1453_v56 = vadd.f32 %v3616_v53, %v4696_v37  ;;  %v1447_v57 = vpop.f32.mrb[41].mxu0  ;;  %v2063_v58 = vadd.f32 %v3799_v55, %v4696_v37  ;;  %v2057_v59 = vpop.f32.mrb[41].mxu1 }
 0x174   : > { %2737 = vst.msk [vmem:[%s4718_s20 + $0x130] sm:$0xff] %vm2698_vm4, %v2494_v52  ;;  %2859 = vst.msk [vmem:[%s4718_s20 + $0x500] sm:$0xff] %vm2698_vm4, %v2616_v54  ;;  %v1448_v60 = vadd.f32 %v4696_v37, %v1447_v57  ;;  %v2058_v61 = vadd.f32 %v4696_v37, %v2057_v59 }
 0x175   : > { %v2497_v62 = vmax.f32 %v1453_v56, 0.0  ;;  %v2619_v63 = vmax.f32 %v2063_v58, 0.0 }
 0x176   : > { %v2496_v0 = vmax.f32 %v1448_v60, 0.0  ;;  %v3619_v1 = vpop.f32.mrb[42].mxu0  ;;  %v2618_v2 = vmax.f32 %v2058_v61, 0.0  ;;  %v3802_v3 = vpop.f32.mrb[42].mxu1 }
 0x177   : > { %2740 = vst.msk [vmem:[%s4718_s20 + $0x148] sm:$0xff] %vm2698_vm4, %v2497_v62  ;;  %2862 = vst.msk [vmem:[%s4718_s20 + $0x518] sm:$0xff] %vm2698_vm4, %v2619_v63  ;;  %v1463_v4 = vadd.f32 %v3619_v1, %v4696_v37  ;;  %v1457_v5 = vpop.f32.mrb[43].mxu0  ;;  %v2073_v6 = vadd.f32 %v3802_v3, %v4696_v37  ;;  %v2067_v7 = vpop.f32.mrb[43].mxu1 }
 0x178   : > { %2739 = vst.msk [vmem:[%s4718_s20 + $0x140] sm:$0xff] %vm2698_vm4, %v2496_v0  ;;  %2861 = vst.msk [vmem:[%s4718_s20 + $0x510] sm:$0xff] %vm2698_vm4, %v2618_v2  ;;  %v1458_v8 = vadd.f32 %v4696_v37, %v1457_v5  ;;  %v2068_v9 = vadd.f32 %v4696_v37, %v2067_v7 }
 0x179   : > { %v2499_v10 = vmax.f32 %v1463_v4, 0.0  ;;  %v2621_v11 = vmax.f32 %v2073_v6, 0.0 }
 0x17a   : > { %v2498_v12 = vmax.f32 %v1458_v8, 0.0  ;;  %v3622_v13 = vpop.f32.mrb[44].mxu0  ;;  %v2620_v14 = vmax.f32 %v2068_v9, 0.0  ;;  %v3805_v15 = vpop.f32.mrb[44].mxu1 }
 0x17b   : > { %2742 = vst.msk [vmem:[%s4718_s20 + $0x158] sm:$0xff] %vm2698_vm4, %v2499_v10  ;;  %2864 = vst.msk [vmem:[%s4718_s20 + $0x528] sm:$0xff] %vm2698_vm4, %v2621_v11  ;;  %v1473_v16 = vadd.f32 %v3622_v13, %v4696_v37  ;;  %v1467_v17 = vpop.f32.mrb[45].mxu0  ;;  %v2083_v18 = vadd.f32 %v3805_v15, %v4696_v37  ;;  %v2077_v19 = vpop.f32.mrb[45].mxu1 }
 0x17c   : > { %2741 = vst.msk [vmem:[%s4718_s20 + $0x150] sm:$0xff] %vm2698_vm4, %v2498_v12  ;;  %2863 = vst.msk [vmem:[%s4718_s20 + $0x520] sm:$0xff] %vm2698_vm4, %v2620_v14  ;;  %v1468_v20 = vadd.f32 %v4696_v37, %v1467_v17  ;;  %v2078_v21 = vadd.f32 %v4696_v37, %v2077_v19 }
 0x17d   : > { %v2501_v22 = vmax.f32 %v1473_v16, 0.0  ;;  %v2623_v23 = vmax.f32 %v2083_v18, 0.0 }
 0x17e   : > { %v2500_v24 = vmax.f32 %v1468_v20, 0.0  ;;  %v3625_v25 = vpop.f32.mrb[46].mxu0  ;;  %v2622_v26 = vmax.f32 %v2078_v21, 0.0  ;;  %v3808_v27 = vpop.f32.mrb[46].mxu1 }
 0x17f   : > { %2744 = vst.msk [vmem:[%s4718_s20 + $0x168] sm:$0xff] %vm2698_vm4, %v2501_v22  ;;  %2866 = vst.msk [vmem:[%s4718_s20 + $0x538] sm:$0xff] %vm2698_vm4, %v2623_v23  ;;  %v1483_v28 = vadd.f32 %v3625_v25, %v4696_v37  ;;  %v1477_v29 = vpop.f32.mrb[47].mxu0  ;;  %v2093_v30 = vadd.f32 %v3808_v27, %v4696_v37  ;;  %v2087_v31 = vpop.f32.mrb[47].mxu1 }
 0x180   : > { %2743 = vst.msk [vmem:[%s4718_s20 + $0x160] sm:$0xff] %vm2698_vm4, %v2500_v24  ;;  %2865 = vst.msk [vmem:[%s4718_s20 + $0x530] sm:$0xff] %vm2698_vm4, %v2622_v26  ;;  %v1478_v32 = vadd.f32 %v4696_v37, %v1477_v29  ;;  %v2088_v33 = vadd.f32 %v4696_v37, %v2087_v31  ;;  %v5101_v29 = vld [vmem:[%s5543_s2] ss:$0 sm:$0xff] }
 0x181   : > { %v2503_v34 = vmax.f32 %v1483_v28, 0.0  ;;  %v2625_v35 = vmax.f32 %v2093_v30, 0.0 }
 0x182   : > { %v2502_v36 = vmax.f32 %v1478_v32, 0.0  ;;  %v3628_v38 = vpop.f32.mrb[48].mxu0  ;;  %v2624_v39 = vmax.f32 %v2088_v33, 0.0  ;;  %v3811_v40 = vpop.f32.mrb[48].mxu1 }
 0x183   : > { %2746 = vst.msk [vmem:[%s4718_s20 + $0x178] sm:$0xff] %vm2698_vm4, %v2503_v34  ;;  %2868 = vst.msk [vmem:[%s4718_s20 + $0x548] sm:$0xff] %vm2698_vm4, %v2625_v35  ;;  %v1493_v41 = vadd.f32 %v3628_v38, %v4696_v37  ;;  %v1487_v42 = vpop.f32.mrb[49].mxu0  ;;  %v2103_v43 = vadd.f32 %v3811_v40, %v4696_v37  ;;  %v2097_v44 = vpop.f32.mrb[49].mxu1 }
 0x184   : > { %2745 = vst.msk [vmem:[%s4718_s20 + $0x170] sm:$0xff] %vm2698_vm4, %v2502_v36  ;;  %2867 = vst.msk [vmem:[%s4718_s20 + $0x540] sm:$0xff] %vm2698_vm4, %v2624_v39  ;;  %v1488_v45 = vadd.f32 %v4696_v37, %v1487_v42  ;;  %v2098_v46 = vadd.f32 %v4696_v37, %v2097_v44 }
 0x185   : > { %v2505_v47 = vmax.f32 %v1493_v41, 0.0  ;;  %v2627_v48 = vmax.f32 %v2103_v43, 0.0 }
 0x186   : > { %v2504_v49 = vmax.f32 %v1488_v45, 0.0  ;;  %v3631_v50 = vpop.f32.mrb[50].mxu0  ;;  %v2626_v51 = vmax.f32 %v2098_v46, 0.0  ;;  %v3814_v52 = vpop.f32.mrb[50].mxu1 }
 0x187   : > { %2748 = vst.msk [vmem:[%s4718_s20 + $0x188] sm:$0xff] %vm2698_vm4, %v2505_v47  ;;  %2870 = vst.msk [vmem:[%s4718_s20 + $0x558] sm:$0xff] %vm2698_vm4, %v2627_v48  ;;  %v1503_v53 = vadd.f32 %v3631_v50, %v4696_v37  ;;  %v1497_v54 = vpop.f32.mrb[51].mxu0  ;;  %v2113_v55 = vadd.f32 %v3814_v52, %v4696_v37  ;;  %v2107_v56 = vpop.f32.mrb[51].mxu1 }
 0x188   : > { %2747 = vst.msk [vmem:[%s4718_s20 + $0x180] sm:$0xff] %vm2698_vm4, %v2504_v49  ;;  %2869 = vst.msk [vmem:[%s4718_s20 + $0x550] sm:$0xff] %vm2698_vm4, %v2626_v51  ;;  %v1498_v57 = vadd.f32 %v4696_v37, %v1497_v54  ;;  %v2108_v58 = vadd.f32 %v4696_v37, %v2107_v56 }
 0x189   : > { %v2507_v59 = vmax.f32 %v1503_v53, 0.0  ;;  %v2629_v60 = vmax.f32 %v2113_v55, 0.0 }
 0x18a   : > { %v2506_v61 = vmax.f32 %v1498_v57, 0.0  ;;  %v3634_v62 = vpop.f32.mrb[52].mxu0  ;;  %v2628_v63 = vmax.f32 %v2108_v58, 0.0  ;;  %v3817_v0 = vpop.f32.mrb[52].mxu1 }
 0x18b   : > { %2750 = vst.msk [vmem:[%s4718_s20 + $0x198] sm:$0xff] %vm2698_vm4, %v2507_v59  ;;  %2872 = vst.msk [vmem:[%s4718_s20 + $0x568] sm:$0xff] %vm2698_vm4, %v2629_v60  ;;  %v1513_v1 = vadd.f32 %v3634_v62, %v4696_v37  ;;  %v1507_v2 = vpop.f32.mrb[53].mxu0  ;;  %v2123_v3 = vadd.f32 %v3817_v0, %v4696_v37  ;;  %v2117_v4 = vpop.f32.mrb[53].mxu1 }
 0x18c   : > { %2749 = vst.msk [vmem:[%s4718_s20 + $0x190] sm:$0xff] %vm2698_vm4, %v2506_v61  ;;  %2871 = vst.msk [vmem:[%s4718_s20 + $0x560] sm:$0xff] %vm2698_vm4, %v2628_v63  ;;  %v1508_v5 = vadd.f32 %v4696_v37, %v1507_v2  ;;  %v2118_v6 = vadd.f32 %v4696_v37, %v2117_v4 }
 0x18d   : > { %v2509_v7 = vmax.f32 %v1513_v1, 0.0  ;;  %v2631_v8 = vmax.f32 %v2123_v3, 0.0 }
 0x18e   : > { %v2508_v9 = vmax.f32 %v1508_v5, 0.0  ;;  %v3637_v10 = vpop.f32.mrb[54].mxu0  ;;  %v2630_v11 = vmax.f32 %v2118_v6, 0.0  ;;  %v3820_v12 = vpop.f32.mrb[54].mxu1 }
 0x18f   : > { %2752 = vst.msk [vmem:[%s4718_s20 + $0x1a8] sm:$0xff] %vm2698_vm4, %v2509_v7  ;;  %2874 = vst.msk [vmem:[%s4718_s20 + $0x578] sm:$0xff] %vm2698_vm4, %v2631_v8  ;;  %v1523_v13 = vadd.f32 %v3637_v10, %v4696_v37  ;;  %v1517_v14 = vpop.f32.mrb[55].mxu0  ;;  %v2133_v15 = vadd.f32 %v3820_v12, %v4696_v37  ;;  %v2127_v16 = vpop.f32.mrb[55].mxu1 }
 0x190   : > { %2751 = vst.msk [vmem:[%s4718_s20 + $0x1a0] sm:$0xff] %vm2698_vm4, %v2508_v9  ;;  %2873 = vst.msk [vmem:[%s4718_s20 + $0x570] sm:$0xff] %vm2698_vm4, %v2630_v11  ;;  %v1518_v17 = vadd.f32 %v4696_v37, %v1517_v14  ;;  %v2128_v18 = vadd.f32 %v4696_v37, %v2127_v16 }
 0x191   : > { %v2511_v19 = vmax.f32 %v1523_v13, 0.0  ;;  %v2633_v20 = vmax.f32 %v2133_v15, 0.0 }
 0x192   : > { %v2510_v21 = vmax.f32 %v1518_v17, 0.0  ;;  %v3640_v22 = vpop.f32.mrb[56].mxu0  ;;  %v2632_v23 = vmax.f32 %v2128_v18, 0.0  ;;  %v3823_v24 = vpop.f32.mrb[56].mxu1 }
 0x193   : > { %2754 = vst.msk [vmem:[%s4718_s20 + $0x1b8] sm:$0xff] %vm2698_vm4, %v2511_v19  ;;  %2876 = vst.msk [vmem:[%s4718_s20 + $0x588] sm:$0xff] %vm2698_vm4, %v2633_v20  ;;  %v1533_v25 = vadd.f32 %v3640_v22, %v4696_v37  ;;  %v1527_v26 = vpop.f32.mrb[57].mxu0  ;;  %v2143_v27 = vadd.f32 %v3823_v24, %v4696_v37  ;;  %v2137_v28 = vpop.f32.mrb[57].mxu1 }
 0x194   : > { %2753 = vst.msk [vmem:[%s4718_s20 + $0x1b0] sm:$0xff] %vm2698_vm4, %v2510_v21  ;;  %2875 = vst.msk [vmem:[%s4718_s20 + $0x580] sm:$0xff] %vm2698_vm4, %v2632_v23  ;;  %v1528_v30 = vadd.f32 %v5101_v29, %v1527_v26  ;;  %v2138_v31 = vadd.f32 %v5101_v29, %v2137_v28 }
 0x195   : > { %v2513_v32 = vmax.f32 %v1533_v25, 0.0  ;;  %v2635_v33 = vmax.f32 %v2143_v27, 0.0 }
 0x196   : > { %v2512_v34 = vmax.f32 %v1528_v30, 0.0  ;;  %v3643_v37 = vpop.f32.mrb[58].mxu0  ;;  %v2634_v35 = vmax.f32 %v2138_v31, 0.0  ;;  %v3826_v36 = vpop.f32.mrb[58].mxu1 }
 0x197   : > { %2756 = vst.msk [vmem:[%s4718_s20 + $0x1c8] sm:$0xff] %vm2698_vm4, %v2513_v32  ;;  %2878 = vst.msk [vmem:[%s4718_s20 + $0x598] sm:$0xff] %vm2698_vm4, %v2635_v33  ;;  %v1543_v38 = vadd.f32 %v5101_v29, %v3643_v37  ;;  %v1537_v39 = vpop.f32.mrb[59].mxu0  ;;  %v2153_v40 = vadd.f32 %v5101_v29, %v3826_v36  ;;  %v2147_v41 = vpop.f32.mrb[59].mxu1 }
 0x198   : > { %2755 = vst.msk [vmem:[%s4718_s20 + $0x1c0] sm:$0xff] %vm2698_vm4, %v2512_v34  ;;  %2877 = vst.msk [vmem:[%s4718_s20 + $0x590] sm:$0xff] %vm2698_vm4, %v2634_v35  ;;  %v1538_v42 = vadd.f32 %v5101_v29, %v1537_v39  ;;  %v2148_v43 = vadd.f32 %v5101_v29, %v2147_v41 }
 0x199   : > { %v2515_v44 = vmax.f32 %v1543_v38, 0.0  ;;  %v2637_v45 = vmax.f32 %v2153_v40, 0.0 }
 0x19a   : > { %v2514_v46 = vmax.f32 %v1538_v42, 0.0  ;;  %v3646_v47 = vpop.f32.mrb[60].mxu0  ;;  %v2636_v48 = vmax.f32 %v2148_v43, 0.0  ;;  %v3829_v49 = vpop.f32.mrb[60].mxu1 }
 0x19b   : > { %2758 = vst.msk [vmem:[%s4718_s20 + $0x1d8] sm:$0xff] %vm2698_vm4, %v2515_v44  ;;  %2880 = vst.msk [vmem:[%s4718_s20 + $0x5a8] sm:$0xff] %vm2698_vm4, %v2637_v45  ;;  %v1553_v50 = vadd.f32 %v5101_v29, %v3646_v47  ;;  %v1547_v51 = vpop.f32.mrb[61].mxu0  ;;  %v2163_v52 = vadd.f32 %v5101_v29, %v3829_v49  ;;  %v2157_v53 = vpop.f32.mrb[61].mxu1 }
 0x19c   : > { %2757 = vst.msk [vmem:[%s4718_s20 + $0x1d0] sm:$0xff] %vm2698_vm4, %v2514_v46  ;;  %2879 = vst.msk [vmem:[%s4718_s20 + $0x5a0] sm:$0xff] %vm2698_vm4, %v2636_v48  ;;  %v1548_v54 = vadd.f32 %v5101_v29, %v1547_v51  ;;  %v2158_v55 = vadd.f32 %v5101_v29, %v2157_v53 }
 0x19d   : > { %v2517_v56 = vmax.f32 %v1553_v50, 0.0  ;;  %v2639_v57 = vmax.f32 %v2163_v52, 0.0 }
 0x19e   : > { %v2516_v58 = vmax.f32 %v1548_v54, 0.0  ;;  %v3649_v59 = vpop.f32.mrb[62].mxu0  ;;  %v2638_v60 = vmax.f32 %v2158_v55, 0.0  ;;  %v3832_v61 = vpop.f32.mrb[62].mxu1 }
 0x19f   : > { %2760 = vst.msk [vmem:[%s4718_s20 + $0x1e8] sm:$0xff] %vm2698_vm4, %v2517_v56  ;;  %2882 = vst.msk [vmem:[%s4718_s20 + $0x5b8] sm:$0xff] %vm2698_vm4, %v2639_v57  ;;  %v1563_v62 = vadd.f32 %v5101_v29, %v3649_v59  ;;  %v1557_v63 = vpop.f32.mrb[63].mxu0  ;;  %v2173_v0 = vadd.f32 %v5101_v29, %v3832_v61  ;;  %v2167_v1 = vpop.f32.mrb[63].mxu1 }
 0x1a0   : > { %2759 = vst.msk [vmem:[%s4718_s20 + $0x1e0] sm:$0xff] %vm2698_vm4, %v2516_v58  ;;  %2881 = vst.msk [vmem:[%s4718_s20 + $0x5b0] sm:$0xff] %vm2698_vm4, %v2638_v60  ;;  %v1558_v2 = vadd.f32 %v5101_v29, %v1557_v63  ;;  %v2168_v3 = vadd.f32 %v5101_v29, %v2167_v1 }
 0x1a1   : > { %v2519_v4 = vmax.f32 %v1563_v62, 0.0  ;;  %v2641_v5 = vmax.f32 %v2173_v0, 0.0 }
 0x1a2   : > { %v2518_v6 = vmax.f32 %v1558_v2, 0.0  ;;  %v3652_v7 = vpop.f32.mrb[64].mxu0  ;;  %v2640_v8 = vmax.f32 %v2168_v3, 0.0  ;;  %v3835_v9 = vpop.f32.mrb[64].mxu1 }
 0x1a3   : > { %2762 = vst.msk [vmem:[%s4718_s20 + $0x1f8] sm:$0xff] %vm2698_vm4, %v2519_v4  ;;  %2884 = vst.msk [vmem:[%s4718_s20 + $0x5c8] sm:$0xff] %vm2698_vm4, %v2641_v5  ;;  %v1573_v10 = vadd.f32 %v5101_v29, %v3652_v7  ;;  %v1567_v11 = vpop.f32.mrb[65].mxu0  ;;  %v2183_v12 = vadd.f32 %v5101_v29, %v3835_v9  ;;  %v2177_v13 = vpop.f32.mrb[65].mxu1 }
 0x1a4   : > { %2761 = vst.msk [vmem:[%s4718_s20 + $0x1f0] sm:$0xff] %vm2698_vm4, %v2518_v6  ;;  %2883 = vst.msk [vmem:[%s4718_s20 + $0x5c0] sm:$0xff] %vm2698_vm4, %v2640_v8  ;;  %v1568_v14 = vadd.f32 %v5101_v29, %v1567_v11  ;;  %v2178_v15 = vadd.f32 %v5101_v29, %v2177_v13 }
 0x1a5   : > { %v2521_v16 = vmax.f32 %v1573_v10, 0.0  ;;  %v2643_v17 = vmax.f32 %v2183_v12, 0.0 }
 0x1a6   : > { %v2520_v18 = vmax.f32 %v1568_v14, 0.0  ;;  %v3655_v19 = vpop.f32.mrb[66].mxu0  ;;  %v2642_v20 = vmax.f32 %v2178_v15, 0.0  ;;  %v3838_v21 = vpop.f32.mrb[66].mxu1 }
 0x1a7   : > { %2764 = vst.msk [vmem:[%s4718_s20 + $0x208] sm:$0xff] %vm2698_vm4, %v2521_v16  ;;  %2886 = vst.msk [vmem:[%s4718_s20 + $0x5d8] sm:$0xff] %vm2698_vm4, %v2643_v17  ;;  %v1583_v22 = vadd.f32 %v5101_v29, %v3655_v19  ;;  %v1577_v23 = vpop.f32.mrb[67].mxu0  ;;  %v2193_v24 = vadd.f32 %v5101_v29, %v3838_v21  ;;  %v2187_v25 = vpop.f32.mrb[67].mxu1 }
 0x1a8   : > { %2763 = vst.msk [vmem:[%s4718_s20 + $0x200] sm:$0xff] %vm2698_vm4, %v2520_v18  ;;  %2885 = vst.msk [vmem:[%s4718_s20 + $0x5d0] sm:$0xff] %vm2698_vm4, %v2642_v20  ;;  %v1578_v26 = vadd.f32 %v5101_v29, %v1577_v23  ;;  %v2188_v27 = vadd.f32 %v5101_v29, %v2187_v25 }
 0x1a9   : > { %v2523_v28 = vmax.f32 %v1583_v22, 0.0  ;;  %v2645_v30 = vmax.f32 %v2193_v24, 0.0 }
 0x1aa   : > { %v2522_v31 = vmax.f32 %v1578_v26, 0.0  ;;  %v3658_v32 = vpop.f32.mrb[68].mxu0  ;;  %v2644_v33 = vmax.f32 %v2188_v27, 0.0  ;;  %v3841_v34 = vpop.f32.mrb[68].mxu1 }
 0x1ab   : > { %2766 = vst.msk [vmem:[%s4718_s20 + $0x218] sm:$0xff] %vm2698_vm4, %v2523_v28  ;;  %2888 = vst.msk [vmem:[%s4718_s20 + $0x5e8] sm:$0xff] %vm2698_vm4, %v2645_v30  ;;  %v1593_v37 = vadd.f32 %v5101_v29, %v3658_v32  ;;  %v1587_v35 = vpop.f32.mrb[69].mxu0  ;;  %v2203_v36 = vadd.f32 %v5101_v29, %v3841_v34  ;;  %v2197_v38 = vpop.f32.mrb[69].mxu1 }
 0x1ac   : > { %2765 = vst.msk [vmem:[%s4718_s20 + $0x210] sm:$0xff] %vm2698_vm4, %v2522_v31  ;;  %2887 = vst.msk [vmem:[%s4718_s20 + $0x5e0] sm:$0xff] %vm2698_vm4, %v2644_v33  ;;  %v1588_v39 = vadd.f32 %v5101_v29, %v1587_v35  ;;  %v2198_v40 = vadd.f32 %v5101_v29, %v2197_v38 }
 0x1ad   : > { %v2525_v41 = vmax.f32 %v1593_v37, 0.0  ;;  %v2647_v42 = vmax.f32 %v2203_v36, 0.0 }
 0x1ae   : > { %v2524_v43 = vmax.f32 %v1588_v39, 0.0  ;;  %v3661_v44 = vpop.f32.mrb[70].mxu0  ;;  %v2646_v45 = vmax.f32 %v2198_v40, 0.0  ;;  %v3844_v46 = vpop.f32.mrb[70].mxu1 }
 0x1af   : > { %2768 = vst.msk [vmem:[%s4718_s20 + $0x228] sm:$0xff] %vm2698_vm4, %v2525_v41  ;;  %2890 = vst.msk [vmem:[%s4718_s20 + $0x5f8] sm:$0xff] %vm2698_vm4, %v2647_v42  ;;  %v1603_v47 = vadd.f32 %v5101_v29, %v3661_v44  ;;  %v1597_v48 = vpop.f32.mrb[71].mxu0  ;;  %v2213_v49 = vadd.f32 %v5101_v29, %v3844_v46  ;;  %v2207_v50 = vpop.f32.mrb[71].mxu1 }
 0x1b0   : > { %2767 = vst.msk [vmem:[%s4718_s20 + $0x220] sm:$0xff] %vm2698_vm4, %v2524_v43  ;;  %2889 = vst.msk [vmem:[%s4718_s20 + $0x5f0] sm:$0xff] %vm2698_vm4, %v2646_v45  ;;  %v1598_v51 = vadd.f32 %v5101_v29, %v1597_v48  ;;  %v2208_v52 = vadd.f32 %v5101_v29, %v2207_v50 }
 0x1b1   : > { %v2527_v53 = vmax.f32 %v1603_v47, 0.0  ;;  %v2649_v54 = vmax.f32 %v2213_v49, 0.0 }
 0x1b2   : > { %v2526_v55 = vmax.f32 %v1598_v51, 0.0  ;;  %v3664_v56 = vpop.f32.mrb[72].mxu0  ;;  %v2648_v57 = vmax.f32 %v2208_v52, 0.0  ;;  %v3847_v58 = vpop.f32.mrb[72].mxu1 }
 0x1b3   : > { %2770 = vst.msk [vmem:[%s4718_s20 + $0x238] sm:$0xff] %vm2698_vm4, %v2527_v53  ;;  %2892 = vst.msk [vmem:[%s4718_s20 + $0x608] sm:$0xff] %vm2698_vm4, %v2649_v54  ;;  %v1613_v59 = vadd.f32 %v5101_v29, %v3664_v56  ;;  %v1607_v60 = vpop.f32.mrb[73].mxu0  ;;  %v2223_v61 = vadd.f32 %v5101_v29, %v3847_v58  ;;  %v2217_v62 = vpop.f32.mrb[73].mxu1 }
 0x1b4   : > { %2769 = vst.msk [vmem:[%s4718_s20 + $0x230] sm:$0xff] %vm2698_vm4, %v2526_v55  ;;  %2891 = vst.msk [vmem:[%s4718_s20 + $0x600] sm:$0xff] %vm2698_vm4, %v2648_v57  ;;  %v1608_v63 = vadd.f32 %v5101_v29, %v1607_v60  ;;  %v2218_v0 = vadd.f32 %v5101_v29, %v2217_v62 }
 0x1b5   : > { %v2529_v1 = vmax.f32 %v1613_v59, 0.0  ;;  %v2651_v2 = vmax.f32 %v2223_v61, 0.0 }
 0x1b6   : > { %v2528_v3 = vmax.f32 %v1608_v63, 0.0  ;;  %v3667_v4 = vpop.f32.mrb[74].mxu0  ;;  %v2650_v5 = vmax.f32 %v2218_v0, 0.0  ;;  %v3850_v6 = vpop.f32.mrb[74].mxu1 }
 0x1b7   : > { %2772 = vst.msk [vmem:[%s4718_s20 + $0x248] sm:$0xff] %vm2698_vm4, %v2529_v1  ;;  %2894 = vst.msk [vmem:[%s4718_s20 + $0x618] sm:$0xff] %vm2698_vm4, %v2651_v2  ;;  %v1623_v7 = vadd.f32 %v5101_v29, %v3667_v4  ;;  %v1617_v8 = vpop.f32.mrb[75].mxu0  ;;  %v2233_v9 = vadd.f32 %v5101_v29, %v3850_v6  ;;  %v2227_v10 = vpop.f32.mrb[75].mxu1 }
 0x1b8   : > { %2771 = vst.msk [vmem:[%s4718_s20 + $0x240] sm:$0xff] %vm2698_vm4, %v2528_v3  ;;  %2893 = vst.msk [vmem:[%s4718_s20 + $0x610] sm:$0xff] %vm2698_vm4, %v2650_v5  ;;  %v1618_v11 = vadd.f32 %v5101_v29, %v1617_v8  ;;  %v2228_v12 = vadd.f32 %v5101_v29, %v2227_v10 }
 0x1b9   : > { %v2531_v13 = vmax.f32 %v1623_v7, 0.0  ;;  %v2653_v14 = vmax.f32 %v2233_v9, 0.0 }
 0x1ba   : > { %v2530_v15 = vmax.f32 %v1618_v11, 0.0  ;;  %v3670_v16 = vpop.f32.mrb[76].mxu0  ;;  %v2652_v17 = vmax.f32 %v2228_v12, 0.0  ;;  %v3853_v18 = vpop.f32.mrb[76].mxu1 }
 0x1bb   : > { %2774 = vst.msk [vmem:[%s4718_s20 + $0x258] sm:$0xff] %vm2698_vm4, %v2531_v13  ;;  %2896 = vst.msk [vmem:[%s4718_s20 + $0x628] sm:$0xff] %vm2698_vm4, %v2653_v14  ;;  %v1633_v19 = vadd.f32 %v5101_v29, %v3670_v16  ;;  %v1627_v20 = vpop.f32.mrb[77].mxu0  ;;  %v2243_v21 = vadd.f32 %v5101_v29, %v3853_v18  ;;  %v2237_v22 = vpop.f32.mrb[77].mxu1 }
 0x1bc   : > { %2773 = vst.msk [vmem:[%s4718_s20 + $0x250] sm:$0xff] %vm2698_vm4, %v2530_v15  ;;  %2895 = vst.msk [vmem:[%s4718_s20 + $0x620] sm:$0xff] %vm2698_vm4, %v2652_v17  ;;  %v1628_v23 = vadd.f32 %v5101_v29, %v1627_v20  ;;  %v2238_v24 = vadd.f32 %v5101_v29, %v2237_v22 }
 0x1bd   : > { %v2533_v25 = vmax.f32 %v1633_v19, 0.0  ;;  %v2655_v26 = vmax.f32 %v2243_v21, 0.0 }
 0x1be   : > { %v2532_v27 = vmax.f32 %v1628_v23, 0.0  ;;  %v3673_v28 = vpop.f32.mrb[78].mxu0  ;;  %v2654_v30 = vmax.f32 %v2238_v24, 0.0  ;;  %v3856_v31 = vpop.f32.mrb[78].mxu1 }
 0x1bf   : > { %2776 = vst.msk [vmem:[%s4718_s20 + $0x268] sm:$0xff] %vm2698_vm4, %v2533_v25  ;;  %2898 = vst.msk [vmem:[%s4718_s20 + $0x638] sm:$0xff] %vm2698_vm4, %v2655_v26  ;;  %v1643_v32 = vadd.f32 %v5101_v29, %v3673_v28  ;;  %v1637_v33 = vpop.f32.mrb[79].mxu0  ;;  %v2253_v34 = vadd.f32 %v5101_v29, %v3856_v31  ;;  %v2247_v37 = vpop.f32.mrb[79].mxu1 }
 0x1c0   : > { %2775 = vst.msk [vmem:[%s4718_s20 + $0x260] sm:$0xff] %vm2698_vm4, %v2532_v27  ;;  %2897 = vst.msk [vmem:[%s4718_s20 + $0x630] sm:$0xff] %vm2698_vm4, %v2654_v30  ;;  %v1638_v35 = vadd.f32 %v5101_v29, %v1637_v33  ;;  %v2248_v36 = vadd.f32 %v5101_v29, %v2247_v37 }
 0x1c1   : > { %v2535_v38 = vmax.f32 %v1643_v32, 0.0  ;;  %v2657_v39 = vmax.f32 %v2253_v34, 0.0 }
 0x1c2   : > { %v2534_v40 = vmax.f32 %v1638_v35, 0.0  ;;  %v3676_v41 = vpop.f32.mrb[80].mxu0  ;;  %v2656_v42 = vmax.f32 %v2248_v36, 0.0  ;;  %v3859_v43 = vpop.f32.mrb[80].mxu1 }
 0x1c3   : > { %2778 = vst.msk [vmem:[%s4718_s20 + $0x278] sm:$0xff] %vm2698_vm4, %v2535_v38  ;;  %2900 = vst.msk [vmem:[%s4718_s20 + $0x648] sm:$0xff] %vm2698_vm4, %v2657_v39  ;;  %v1653_v44 = vadd.f32 %v5101_v29, %v3676_v41  ;;  %v1647_v45 = vpop.f32.mrb[81].mxu0  ;;  %v2263_v46 = vadd.f32 %v5101_v29, %v3859_v43  ;;  %v2257_v47 = vpop.f32.mrb[81].mxu1 }
 0x1c4   : > { %2777 = vst.msk [vmem:[%s4718_s20 + $0x270] sm:$0xff] %vm2698_vm4, %v2534_v40  ;;  %2899 = vst.msk [vmem:[%s4718_s20 + $0x640] sm:$0xff] %vm2698_vm4, %v2656_v42  ;;  %v1648_v48 = vadd.f32 %v5101_v29, %v1647_v45  ;;  %v2258_v49 = vadd.f32 %v5101_v29, %v2257_v47 }
 0x1c5   : > { %v2537_v50 = vmax.f32 %v1653_v44, 0.0  ;;  %v2659_v51 = vmax.f32 %v2263_v46, 0.0 }
 0x1c6   : > { %v2536_v52 = vmax.f32 %v1648_v48, 0.0  ;;  %v3679_v53 = vpop.f32.mrb[82].mxu0  ;;  %v2658_v54 = vmax.f32 %v2258_v49, 0.0  ;;  %v3862_v55 = vpop.f32.mrb[82].mxu1 }
 0x1c7   : > { %2780 = vst.msk [vmem:[%s4718_s20 + $0x288] sm:$0xff] %vm2698_vm4, %v2537_v50  ;;  %2902 = vst.msk [vmem:[%s4718_s20 + $0x658] sm:$0xff] %vm2698_vm4, %v2659_v51  ;;  %v1663_v56 = vadd.f32 %v5101_v29, %v3679_v53  ;;  %v1657_v57 = vpop.f32.mrb[83].mxu0  ;;  %v2273_v58 = vadd.f32 %v5101_v29, %v3862_v55  ;;  %v2267_v59 = vpop.f32.mrb[83].mxu1 }
 0x1c8   : > { %2779 = vst.msk [vmem:[%s4718_s20 + $0x280] sm:$0xff] %vm2698_vm4, %v2536_v52  ;;  %2901 = vst.msk [vmem:[%s4718_s20 + $0x650] sm:$0xff] %vm2698_vm4, %v2658_v54  ;;  %v1658_v60 = vadd.f32 %v5101_v29, %v1657_v57  ;;  %v2268_v61 = vadd.f32 %v5101_v29, %v2267_v59 }
 0x1c9   : > { %v2539_v62 = vmax.f32 %v1663_v56, 0.0  ;;  %v2661_v63 = vmax.f32 %v2273_v58, 0.0 }
 0x1ca   : > { %v2538_v0 = vmax.f32 %v1658_v60, 0.0  ;;  %v3682_v1 = vpop.f32.mrb[84].mxu0  ;;  %v2660_v2 = vmax.f32 %v2268_v61, 0.0  ;;  %v3865_v3 = vpop.f32.mrb[84].mxu1 }
 0x1cb   : > { %2782 = vst.msk [vmem:[%s4718_s20 + $0x298] sm:$0xff] %vm2698_vm4, %v2539_v62  ;;  %2904 = vst.msk [vmem:[%s4718_s20 + $0x668] sm:$0xff] %vm2698_vm4, %v2661_v63  ;;  %v1673_v4 = vadd.f32 %v5101_v29, %v3682_v1  ;;  %v1667_v5 = vpop.f32.mrb[85].mxu0  ;;  %v2283_v6 = vadd.f32 %v5101_v29, %v3865_v3  ;;  %v2277_v7 = vpop.f32.mrb[85].mxu1 }
 0x1cc   : > { %2781 = vst.msk [vmem:[%s4718_s20 + $0x290] sm:$0xff] %vm2698_vm4, %v2538_v0  ;;  %2903 = vst.msk [vmem:[%s4718_s20 + $0x660] sm:$0xff] %vm2698_vm4, %v2660_v2  ;;  %v1668_v8 = vadd.f32 %v5101_v29, %v1667_v5  ;;  %v2278_v9 = vadd.f32 %v5101_v29, %v2277_v7 }
 0x1cd   : > { %v2541_v10 = vmax.f32 %v1673_v4, 0.0  ;;  %v2663_v11 = vmax.f32 %v2283_v6, 0.0 }
 0x1ce   : > { %v2540_v12 = vmax.f32 %v1668_v8, 0.0  ;;  %v3685_v13 = vpop.f32.mrb[86].mxu0  ;;  %v2662_v14 = vmax.f32 %v2278_v9, 0.0  ;;  %v3868_v15 = vpop.f32.mrb[86].mxu1 }
 0x1cf   : > { %2784 = vst.msk [vmem:[%s4718_s20 + $0x2a8] sm:$0xff] %vm2698_vm4, %v2541_v10  ;;  %2906 = vst.msk [vmem:[%s4718_s20 + $0x678] sm:$0xff] %vm2698_vm4, %v2663_v11  ;;  %v1683_v16 = vadd.f32 %v5101_v29, %v3685_v13  ;;  %v1677_v17 = vpop.f32.mrb[87].mxu0  ;;  %v2293_v18 = vadd.f32 %v5101_v29, %v3868_v15  ;;  %v2287_v19 = vpop.f32.mrb[87].mxu1 }
 0x1d0   : > { %2783 = vst.msk [vmem:[%s4718_s20 + $0x2a0] sm:$0xff] %vm2698_vm4, %v2540_v12  ;;  %2905 = vst.msk [vmem:[%s4718_s20 + $0x670] sm:$0xff] %vm2698_vm4, %v2662_v14  ;;  %v1678_v20 = vadd.f32 %v5101_v29, %v1677_v17  ;;  %v2288_v21 = vadd.f32 %v5101_v29, %v2287_v19 }
 0x1d1   : > { %v2543_v22 = vmax.f32 %v1683_v16, 0.0  ;;  %v2665_v23 = vmax.f32 %v2293_v18, 0.0 }
 0x1d2   : > { %v2542_v24 = vmax.f32 %v1678_v20, 0.0  ;;  %v3688_v25 = vpop.f32.mrb[88].mxu0  ;;  %v2664_v26 = vmax.f32 %v2288_v21, 0.0  ;;  %v3871_v27 = vpop.f32.mrb[88].mxu1 }
 0x1d3   : > { %2786 = vst.msk [vmem:[%s4718_s20 + $0x2b8] sm:$0xff] %vm2698_vm4, %v2543_v22  ;;  %2908 = vst.msk [vmem:[%s4718_s20 + $0x688] sm:$0xff] %vm2698_vm4, %v2665_v23  ;;  %v1693_v28 = vadd.f32 %v5101_v29, %v3688_v25  ;;  %v1687_v30 = vpop.f32.mrb[89].mxu0  ;;  %v2303_v31 = vadd.f32 %v5101_v29, %v3871_v27  ;;  %v2297_v32 = vpop.f32.mrb[89].mxu1 }
 0x1d4   : > { %2785 = vst.msk [vmem:[%s4718_s20 + $0x2b0] sm:$0xff] %vm2698_vm4, %v2542_v24  ;;  %2907 = vst.msk [vmem:[%s4718_s20 + $0x680] sm:$0xff] %vm2698_vm4, %v2664_v26  ;;  %v1688_v33 = vadd.f32 %v5101_v29, %v1687_v30  ;;  %v2298_v34 = vadd.f32 %v5101_v29, %v2297_v32 }
 0x1d5   : > { %v2545_v37 = vmax.f32 %v1693_v28, 0.0  ;;  %v2667_v35 = vmax.f32 %v2303_v31, 0.0 }
 0x1d6   : > { %v2544_v36 = vmax.f32 %v1688_v33, 0.0  ;;  %v3691_v38 = vpop.f32.mrb[90].mxu0  ;;  %v2666_v39 = vmax.f32 %v2298_v34, 0.0  ;;  %v3874_v40 = vpop.f32.mrb[90].mxu1 }
 0x1d7   : > { %2788 = vst.msk [vmem:[%s4718_s20 + $0x2c8] sm:$0xff] %vm2698_vm4, %v2545_v37  ;;  %2910 = vst.msk [vmem:[%s4718_s20 + $0x698] sm:$0xff] %vm2698_vm4, %v2667_v35  ;;  %v1703_v41 = vadd.f32 %v5101_v29, %v3691_v38  ;;  %v1697_v42 = vpop.f32.mrb[91].mxu0  ;;  %v2313_v43 = vadd.f32 %v5101_v29, %v3874_v40  ;;  %v2307_v44 = vpop.f32.mrb[91].mxu1 }
 0x1d8   : > { %2787 = vst.msk [vmem:[%s4718_s20 + $0x2c0] sm:$0xff] %vm2698_vm4, %v2544_v36  ;;  %2909 = vst.msk [vmem:[%s4718_s20 + $0x690] sm:$0xff] %vm2698_vm4, %v2666_v39  ;;  %v1698_v45 = vadd.f32 %v5101_v29, %v1697_v42  ;;  %v2308_v46 = vadd.f32 %v5101_v29, %v2307_v44 }
 0x1d9   : > { %v2547_v47 = vmax.f32 %v1703_v41, 0.0  ;;  %v2669_v48 = vmax.f32 %v2313_v43, 0.0 }
 0x1da   : > { %v2546_v49 = vmax.f32 %v1698_v45, 0.0  ;;  %v3694_v50 = vpop.f32.mrb[92].mxu0  ;;  %v2668_v51 = vmax.f32 %v2308_v46, 0.0  ;;  %v3877_v52 = vpop.f32.mrb[92].mxu1 }
 0x1db   : > { %2790 = vst.msk [vmem:[%s4718_s20 + $0x2d8] sm:$0xff] %vm2698_vm4, %v2547_v47  ;;  %2912 = vst.msk [vmem:[%s4718_s20 + $0x6a8] sm:$0xff] %vm2698_vm4, %v2669_v48  ;;  %v1713_v53 = vadd.f32 %v5101_v29, %v3694_v50  ;;  %v1707_v54 = vpop.f32.mrb[93].mxu0  ;;  %v2323_v55 = vadd.f32 %v5101_v29, %v3877_v52  ;;  %v2317_v56 = vpop.f32.mrb[93].mxu1 }
 0x1dc   : > { %2789 = vst.msk [vmem:[%s4718_s20 + $0x2d0] sm:$0xff] %vm2698_vm4, %v2546_v49  ;;  %2911 = vst.msk [vmem:[%s4718_s20 + $0x6a0] sm:$0xff] %vm2698_vm4, %v2668_v51  ;;  %v1708_v57 = vadd.f32 %v5101_v29, %v1707_v54  ;;  %v2318_v58 = vadd.f32 %v5101_v29, %v2317_v56 }
 0x1dd   : > { %v2549_v59 = vmax.f32 %v1713_v53, 0.0  ;;  %v2671_v60 = vmax.f32 %v2323_v55, 0.0 }
 0x1de   : > { %v2548_v61 = vmax.f32 %v1708_v57, 0.0  ;;  %v3697_v62 = vpop.f32.mrb[94].mxu0  ;;  %v2670_v63 = vmax.f32 %v2318_v58, 0.0  ;;  %v3880_v0 = vpop.f32.mrb[94].mxu1 }
 0x1df   : > { %2792 = vst.msk [vmem:[%s4718_s20 + $0x2e8] sm:$0xff] %vm2698_vm4, %v2549_v59  ;;  %2914 = vst.msk [vmem:[%s4718_s20 + $0x6b8] sm:$0xff] %vm2698_vm4, %v2671_v60  ;;  %v1723_v1 = vadd.f32 %v5101_v29, %v3697_v62  ;;  %v1717_v2 = vpop.f32.mrb[95].mxu0  ;;  %v2333_v3 = vadd.f32 %v5101_v29, %v3880_v0  ;;  %v2327_v4 = vpop.f32.mrb[95].mxu1 }
 0x1e0   : > { %2791 = vst.msk [vmem:[%s4718_s20 + $0x2e0] sm:$0xff] %vm2698_vm4, %v2548_v61  ;;  %2913 = vst.msk [vmem:[%s4718_s20 + $0x6b0] sm:$0xff] %vm2698_vm4, %v2670_v63  ;;  %v1718_v5 = vadd.f32 %v5101_v29, %v1717_v2  ;;  %v2328_v6 = vadd.f32 %v5101_v29, %v2327_v4 }
 0x1e1   : > { %v2551_v7 = vmax.f32 %v1723_v1, 0.0  ;;  %v2673_v8 = vmax.f32 %v2333_v3, 0.0 }
 0x1e2   : > { %v2550_v9 = vmax.f32 %v1718_v5, 0.0  ;;  %v3700_v10 = vpop.f32.mrb[96].mxu0  ;;  %v2672_v11 = vmax.f32 %v2328_v6, 0.0  ;;  %v3883_v12 = vpop.f32.mrb[96].mxu1 }
 0x1e3   : > { %2794 = vst.msk [vmem:[%s4718_s20 + $0x2f8] sm:$0xff] %vm2698_vm4, %v2551_v7  ;;  %2916 = vst.msk [vmem:[%s4718_s20 + $0x6c8] sm:$0xff] %vm2698_vm4, %v2673_v8  ;;  %v1733_v13 = vadd.f32 %v5101_v29, %v3700_v10  ;;  %v1727_v14 = vpop.f32.mrb[97].mxu0  ;;  %v2343_v15 = vadd.f32 %v5101_v29, %v3883_v12  ;;  %v2337_v16 = vpop.f32.mrb[97].mxu1 }
 0x1e4   : > { %2793 = vst.msk [vmem:[%s4718_s20 + $0x2f0] sm:$0xff] %vm2698_vm4, %v2550_v9  ;;  %2915 = vst.msk [vmem:[%s4718_s20 + $0x6c0] sm:$0xff] %vm2698_vm4, %v2672_v11  ;;  %v1728_v17 = vadd.f32 %v5101_v29, %v1727_v14  ;;  %v2338_v18 = vadd.f32 %v5101_v29, %v2337_v16 }
 0x1e5   : > { %v2553_v19 = vmax.f32 %v1733_v13, 0.0  ;;  %v2675_v20 = vmax.f32 %v2343_v15, 0.0 }
 0x1e6   : > { %v2552_v21 = vmax.f32 %v1728_v17, 0.0  ;;  %v3703_v22 = vpop.f32.mrb[98].mxu0  ;;  %v2674_v23 = vmax.f32 %v2338_v18, 0.0  ;;  %v3886_v24 = vpop.f32.mrb[98].mxu1 }
 0x1e7   : > { %2796 = vst.msk [vmem:[%s4718_s20 + $0x308] sm:$0xff] %vm2698_vm4, %v2553_v19  ;;  %2918 = vst.msk [vmem:[%s4718_s20 + $0x6d8] sm:$0xff] %vm2698_vm4, %v2675_v20  ;;  %v1743_v25 = vadd.f32 %v5101_v29, %v3703_v22  ;;  %v1737_v26 = vpop.f32.mrb[99].mxu0  ;;  %v2353_v27 = vadd.f32 %v5101_v29, %v3886_v24  ;;  %v2347_v28 = vpop.f32.mrb[99].mxu1 }
 0x1e8   : > { %2795 = vst.msk [vmem:[%s4718_s20 + $0x300] sm:$0xff] %vm2698_vm4, %v2552_v21  ;;  %2917 = vst.msk [vmem:[%s4718_s20 + $0x6d0] sm:$0xff] %vm2698_vm4, %v2674_v23  ;;  %v1738_v30 = vadd.f32 %v5101_v29, %v1737_v26  ;;  %v2348_v31 = vadd.f32 %v5101_v29, %v2347_v28 }
 0x1e9   : > { %v2555_v32 = vmax.f32 %v1743_v25, 0.0  ;;  %v2677_v33 = vmax.f32 %v2353_v27, 0.0 }
 0x1ea   : > { %v2554_v34 = vmax.f32 %v1738_v30, 0.0  ;;  %v3706_v37 = vpop.f32.mrb[100].mxu0  ;;  %v2676_v35 = vmax.f32 %v2348_v31, 0.0  ;;  %v3889_v36 = vpop.f32.mrb[100].mxu1 }
 0x1eb   : > { %2798 = vst.msk [vmem:[%s4718_s20 + $0x318] sm:$0xff] %vm2698_vm4, %v2555_v32  ;;  %2920 = vst.msk [vmem:[%s4718_s20 + $0x6e8] sm:$0xff] %vm2698_vm4, %v2677_v33  ;;  %v1753_v38 = vadd.f32 %v5101_v29, %v3706_v37  ;;  %v1747_v39 = vpop.f32.mrb[101].mxu0  ;;  %v2363_v40 = vadd.f32 %v5101_v29, %v3889_v36  ;;  %v2357_v41 = vpop.f32.mrb[101].mxu1 }
 0x1ec   : > { %2797 = vst.msk [vmem:[%s4718_s20 + $0x310] sm:$0xff] %vm2698_vm4, %v2554_v34  ;;  %2919 = vst.msk [vmem:[%s4718_s20 + $0x6e0] sm:$0xff] %vm2698_vm4, %v2676_v35  ;;  %v1748_v42 = vadd.f32 %v5101_v29, %v1747_v39  ;;  %v2358_v43 = vadd.f32 %v5101_v29, %v2357_v41 }
 0x1ed   : > { %v2557_v44 = vmax.f32 %v1753_v38, 0.0  ;;  %v2679_v45 = vmax.f32 %v2363_v40, 0.0 }
 0x1ee   : > { %v2556_v46 = vmax.f32 %v1748_v42, 0.0  ;;  %v3709_v47 = vpop.f32.mrb[102].mxu0  ;;  %v2678_v48 = vmax.f32 %v2358_v43, 0.0  ;;  %v3892_v49 = vpop.f32.mrb[102].mxu1 }
 0x1ef   : > { %2800 = vst.msk [vmem:[%s4718_s20 + $0x328] sm:$0xff] %vm2698_vm4, %v2557_v44  ;;  %2922 = vst.msk [vmem:[%s4718_s20 + $0x6f8] sm:$0xff] %vm2698_vm4, %v2679_v45  ;;  %v1763_v50 = vadd.f32 %v5101_v29, %v3709_v47  ;;  %v1757_v51 = vpop.f32.mrb[103].mxu0  ;;  %v2373_v52 = vadd.f32 %v5101_v29, %v3892_v49  ;;  %v2367_v53 = vpop.f32.mrb[103].mxu1 }
 0x1f0   : > { %2799 = vst.msk [vmem:[%s4718_s20 + $0x320] sm:$0xff] %vm2698_vm4, %v2556_v46  ;;  %2921 = vst.msk [vmem:[%s4718_s20 + $0x6f0] sm:$0xff] %vm2698_vm4, %v2678_v48  ;;  %v1758_v54 = vadd.f32 %v5101_v29, %v1757_v51  ;;  %v2368_v55 = vadd.f32 %v5101_v29, %v2367_v53 }
 0x1f1   : > { %v2559_v56 = vmax.f32 %v1763_v50, 0.0  ;;  %v2681_v57 = vmax.f32 %v2373_v52, 0.0 }
 0x1f2   : > { %v2558_v58 = vmax.f32 %v1758_v54, 0.0  ;;  %v3712_v59 = vpop.f32.mrb[104].mxu0  ;;  %v2680_v60 = vmax.f32 %v2368_v55, 0.0  ;;  %v3895_v61 = vpop.f32.mrb[104].mxu1 }
 0x1f3   : > { %2802 = vst.msk [vmem:[%s4718_s20 + $0x338] sm:$0xff] %vm2698_vm4, %v2559_v56  ;;  %2924 = vst.msk [vmem:[%s4718_s20 + $0x708] sm:$0xff] %vm2698_vm4, %v2681_v57  ;;  %v1773_v62 = vadd.f32 %v5101_v29, %v3712_v59  ;;  %v1767_v63 = vpop.f32.mrb[105].mxu0  ;;  %v2383_v0 = vadd.f32 %v5101_v29, %v3895_v61  ;;  %v2377_v1 = vpop.f32.mrb[105].mxu1 }
 0x1f4   : > { %2801 = vst.msk [vmem:[%s4718_s20 + $0x330] sm:$0xff] %vm2698_vm4, %v2558_v58  ;;  %2923 = vst.msk [vmem:[%s4718_s20 + $0x700] sm:$0xff] %vm2698_vm4, %v2680_v60  ;;  %v1768_v2 = vadd.f32 %v5101_v29, %v1767_v63  ;;  %v2378_v3 = vadd.f32 %v5101_v29, %v2377_v1 }
 0x1f5   : > { %v2561_v4 = vmax.f32 %v1773_v62, 0.0  ;;  %v2683_v5 = vmax.f32 %v2383_v0, 0.0 }
 0x1f6   : > { %v2560_v6 = vmax.f32 %v1768_v2, 0.0  ;;  %v3715_v7 = vpop.f32.mrb[106].mxu0  ;;  %v2682_v8 = vmax.f32 %v2378_v3, 0.0  ;;  %v3898_v9 = vpop.f32.mrb[106].mxu1 }
 0x1f7   : > { %2804 = vst.msk [vmem:[%s4718_s20 + $0x348] sm:$0xff] %vm2698_vm4, %v2561_v4  ;;  %2926 = vst.msk [vmem:[%s4718_s20 + $0x718] sm:$0xff] %vm2698_vm4, %v2683_v5  ;;  %v1783_v10 = vadd.f32 %v5101_v29, %v3715_v7  ;;  %v1777_v11 = vpop.f32.mrb[107].mxu0  ;;  %v2393_v12 = vadd.f32 %v5101_v29, %v3898_v9  ;;  %v2387_v13 = vpop.f32.mrb[107].mxu1 }
 0x1f8   : > { %2803 = vst.msk [vmem:[%s4718_s20 + $0x340] sm:$0xff] %vm2698_vm4, %v2560_v6  ;;  %2925 = vst.msk [vmem:[%s4718_s20 + $0x710] sm:$0xff] %vm2698_vm4, %v2682_v8  ;;  %v1778_v14 = vadd.f32 %v5101_v29, %v1777_v11  ;;  %v2388_v15 = vadd.f32 %v5101_v29, %v2387_v13 }
 0x1f9   : > { %v2563_v16 = vmax.f32 %v1783_v10, 0.0  ;;  %v2685_v17 = vmax.f32 %v2393_v12, 0.0 }
 0x1fa   : > { %v2562_v18 = vmax.f32 %v1778_v14, 0.0  ;;  %v3718_v19 = vpop.f32.mrb[108].mxu0  ;;  %v2684_v20 = vmax.f32 %v2388_v15, 0.0  ;;  %v3901_v21 = vpop.f32.mrb[108].mxu1 }
 0x1fb   : > { %2806 = vst.msk [vmem:[%s4718_s20 + $0x358] sm:$0xff] %vm2698_vm4, %v2563_v16  ;;  %2928 = vst.msk [vmem:[%s4718_s20 + $0x728] sm:$0xff] %vm2698_vm4, %v2685_v17  ;;  %v1793_v22 = vadd.f32 %v5101_v29, %v3718_v19  ;;  %v1787_v23 = vpop.f32.mrb[109].mxu0  ;;  %v2403_v24 = vadd.f32 %v5101_v29, %v3901_v21  ;;  %v2397_v25 = vpop.f32.mrb[109].mxu1 }
 0x1fc   : > { %2805 = vst.msk [vmem:[%s4718_s20 + $0x350] sm:$0xff] %vm2698_vm4, %v2562_v18  ;;  %2927 = vst.msk [vmem:[%s4718_s20 + $0x720] sm:$0xff] %vm2698_vm4, %v2684_v20  ;;  %v1788_v26 = vadd.f32 %v5101_v29, %v1787_v23  ;;  %v2398_v27 = vadd.f32 %v5101_v29, %v2397_v25 }
 0x1fd   : > { %v2565_v28 = vmax.f32 %v1793_v22, 0.0  ;;  %v2687_v30 = vmax.f32 %v2403_v24, 0.0 }
 0x1fe   : > { %v2564_v31 = vmax.f32 %v1788_v26, 0.0  ;;  %v3721_v32 = vpop.f32.mrb[110].mxu0  ;;  %v2686_v33 = vmax.f32 %v2398_v27, 0.0  ;;  %v3904_v34 = vpop.f32.mrb[110].mxu1 }
 0x1ff   : > { %2808 = vst.msk [vmem:[%s4718_s20 + $0x368] sm:$0xff] %vm2698_vm4, %v2565_v28  ;;  %2930 = vst.msk [vmem:[%s4718_s20 + $0x738] sm:$0xff] %vm2698_vm4, %v2687_v30  ;;  %v1803_v37 = vadd.f32 %v5101_v29, %v3721_v32  ;;  %v1797_v35 = vpop.f32.mrb[111].mxu0  ;;  %v2413_v36 = vadd.f32 %v5101_v29, %v3904_v34  ;;  %v2407_v38 = vpop.f32.mrb[111].mxu1 }
 0x200   : > { %2807 = vst.msk [vmem:[%s4718_s20 + $0x360] sm:$0xff] %vm2698_vm4, %v2564_v31  ;;  %2929 = vst.msk [vmem:[%s4718_s20 + $0x730] sm:$0xff] %vm2698_vm4, %v2686_v33  ;;  %v1798_v39 = vadd.f32 %v5101_v29, %v1797_v35  ;;  %v2408_v40 = vadd.f32 %v5101_v29, %v2407_v38 }
 0x201   : > { %v2567_v41 = vmax.f32 %v1803_v37, 0.0  ;;  %v2689_v42 = vmax.f32 %v2413_v36, 0.0 }
 0x202   : > { %v2566_v43 = vmax.f32 %v1798_v39, 0.0  ;;  %v3724_v44 = vpop.f32.mrb[112].mxu0  ;;  %v2688_v45 = vmax.f32 %v2408_v40, 0.0  ;;  %v3907_v46 = vpop.f32.mrb[112].mxu1 }
 0x203   : > { %2810 = vst.msk [vmem:[%s4718_s20 + $0x378] sm:$0xff] %vm2698_vm4, %v2567_v41  ;;  %2932 = vst.msk [vmem:[%s4718_s20 + $0x748] sm:$0xff] %vm2698_vm4, %v2689_v42  ;;  %v1813_v47 = vadd.f32 %v5101_v29, %v3724_v44  ;;  %v1807_v48 = vpop.f32.mrb[113].mxu0  ;;  %v2423_v49 = vadd.f32 %v5101_v29, %v3907_v46  ;;  %v2417_v50 = vpop.f32.mrb[113].mxu1 }
 0x204   : > { %2809 = vst.msk [vmem:[%s4718_s20 + $0x370] sm:$0xff] %vm2698_vm4, %v2566_v43  ;;  %2931 = vst.msk [vmem:[%s4718_s20 + $0x740] sm:$0xff] %vm2698_vm4, %v2688_v45  ;;  %v1808_v51 = vadd.f32 %v5101_v29, %v1807_v48  ;;  %v2418_v52 = vadd.f32 %v5101_v29, %v2417_v50 }
 0x205   : > { %v2569_v53 = vmax.f32 %v1813_v47, 0.0  ;;  %v2691_v54 = vmax.f32 %v2423_v49, 0.0 }
 0x206   : > { %v2568_v55 = vmax.f32 %v1808_v51, 0.0  ;;  %v3727_v56 = vpop.f32.mrb[114].mxu0  ;;  %v2690_v57 = vmax.f32 %v2418_v52, 0.0  ;;  %v3910_v58 = vpop.f32.mrb[114].mxu1 }
 0x207   : > { %2812 = vst.msk [vmem:[%s4718_s20 + $0x388] sm:$0xff] %vm2698_vm4, %v2569_v53  ;;  %2934 = vst.msk [vmem:[%s4718_s20 + $0x758] sm:$0xff] %vm2698_vm4, %v2691_v54  ;;  %v1823_v59 = vadd.f32 %v5101_v29, %v3727_v56  ;;  %v1817_v60 = vpop.f32.mrb[115].mxu0  ;;  %v2433_v61 = vadd.f32 %v5101_v29, %v3910_v58  ;;  %v2427_v62 = vpop.f32.mrb[115].mxu1 }
 0x208   : > { %2811 = vst.msk [vmem:[%s4718_s20 + $0x380] sm:$0xff] %vm2698_vm4, %v2568_v55  ;;  %2933 = vst.msk [vmem:[%s4718_s20 + $0x750] sm:$0xff] %vm2698_vm4, %v2690_v57  ;;  %v1818_v63 = vadd.f32 %v5101_v29, %v1817_v60  ;;  %v2428_v0 = vadd.f32 %v5101_v29, %v2427_v62 }
 0x209   : > { %v2571_v1 = vmax.f32 %v1823_v59, 0.0  ;;  %v2693_v2 = vmax.f32 %v2433_v61, 0.0 }
 0x20a   : > { %v2570_v3 = vmax.f32 %v1818_v63, 0.0  ;;  %v3730_v4 = vpop.f32.mrb[116].mxu0  ;;  %v2692_v5 = vmax.f32 %v2428_v0, 0.0  ;;  %v3913_v6 = vpop.f32.mrb[116].mxu1 }
 0x20b   : > { %2814 = vst.msk [vmem:[%s4718_s20 + $0x398] sm:$0xff] %vm2698_vm4, %v2571_v1  ;;  %2936 = vst.msk [vmem:[%s4718_s20 + $0x768] sm:$0xff] %vm2698_vm4, %v2693_v2  ;;  %v1833_v7 = vadd.f32 %v5101_v29, %v3730_v4  ;;  %v1827_v8 = vpop.f32.mrb[117].mxu0  ;;  %v2443_v9 = vadd.f32 %v5101_v29, %v3913_v6  ;;  %v2437_v10 = vpop.f32.mrb[117].mxu1 }
 0x20c   : > { %2813 = vst.msk [vmem:[%s4718_s20 + $0x390] sm:$0xff] %vm2698_vm4, %v2570_v3  ;;  %2935 = vst.msk [vmem:[%s4718_s20 + $0x760] sm:$0xff] %vm2698_vm4, %v2692_v5  ;;  %v1828_v11 = vadd.f32 %v5101_v29, %v1827_v8  ;;  %v2438_v12 = vadd.f32 %v5101_v29, %v2437_v10 }
 0x20d   : > { %v2573_v13 = vmax.f32 %v1833_v7, 0.0  ;;  %v2695_v14 = vmax.f32 %v2443_v9, 0.0 }
 0x20e   : > { %v2572_v15 = vmax.f32 %v1828_v11, 0.0  ;;  %v3733_v16 = vpop.f32.mrb[118].mxu0  ;;  %v2694_v17 = vmax.f32 %v2438_v12, 0.0  ;;  %v3916_v18 = vpop.f32.mrb[118].mxu1 }
 0x20f   : > { %2816 = vst.msk [vmem:[%s4718_s20 + $0x3a8] sm:$0xff] %vm2698_vm4, %v2573_v13  ;;  %2938 = vst.msk [vmem:[%s4718_s20 + $0x778] sm:$0xff] %vm2698_vm4, %v2695_v14  ;;  %v1843_v19 = vadd.f32 %v5101_v29, %v3733_v16  ;;  %v1837_v20 = vpop.f32.mrb[119].mxu0  ;;  %v2453_v21 = vadd.f32 %v5101_v29, %v3916_v18  ;;  %v2447_v22 = vpop.f32.mrb[119].mxu1 }
 0x210   : > { %2815 = vst.msk [vmem:[%s4718_s20 + $0x3a0] sm:$0xff] %vm2698_vm4, %v2572_v15  ;;  %2937 = vst.msk [vmem:[%s4718_s20 + $0x770] sm:$0xff] %vm2698_vm4, %v2694_v17  ;;  %v1838_v23 = vadd.f32 %v5101_v29, %v1837_v20  ;;  %v2448_v24 = vadd.f32 %v5101_v29, %v2447_v22 }
 0x211   : > { %v2575_v25 = vmax.f32 %v1843_v19, 0.0  ;;  %v2697_v26 = vmax.f32 %v2453_v21, 0.0 }
 0x212   : > { %v2574_v27 = vmax.f32 %v1838_v23, 0.0  ;;  %v3736_v28 = vpop.f32.mrb[120].mxu0  ;;  %v2696_v30 = vmax.f32 %v2448_v24, 0.0 }
 0x213   : > { %2818 = vst.msk [vmem:[%s4718_s20 + $0x3b8] sm:$0xff] %vm2698_vm4, %v2575_v25  ;;  %2940 = vst.msk [vmem:[%s4718_s20 + $0x788] sm:$0xff] %vm2698_vm4, %v2697_v26  ;;  %v1853_v31 = vadd.f32 %v5101_v29, %v3736_v28  ;;  %v1847_v32 = vpop.f32.mrb[121].mxu0 }
 0x214   : > { %2817 = vst.msk [vmem:[%s4718_s20 + $0x3b0] sm:$0xff] %vm2698_vm4, %v2574_v27  ;;  %2939 = vst.msk [vmem:[%s4718_s20 + $0x780] sm:$0xff] %vm2698_vm4, %v2696_v30  ;;  %v1848_v33 = vadd.f32 %v5101_v29, %v1847_v32 }
 0x215   : > { %v2577_v34 = vmax.f32 %v1853_v31, 0.0 }
 0x216   : > { %v2576_v37 = vmax.f32 %v1848_v33, 0.0 }
 0x217   : > { %2820 = vst.msk [vmem:[%s4718_s20 + $0x3c8] sm:$0xff] %vm2698_vm4, %v2577_v34 }
 0x218   : > { %2819 = vst.msk [vmem:[%s4718_s20 + $0x3c0] sm:$0xff] %vm2698_vm4, %v2576_v37 }
 0x219   : > { %4046 = shalt.err (!%p4043_p1)
}
 0x21a   : > { %s4047_s6 = scalar_lea.hbm %s5492_s27, 30976  ;;  %s4051_s17 = scalar_lea.hbm %s5544_s3, 1548800 }
 0x21b   : > { %p4048_p3 = scmp.ne.s32.totalorder %s5492_s27, %s4047_s6  ;;  %p4052_p0 = scmp.lt.u32.totalorder %s5492_s27, %s5544_s3 }
 0x21c   : > { %p4053_p2 = scmp.lt.u32.totalorder %s4051_s17, %s4047_s6  ;;  %p4055_p6 = scmp.lt.u32.totalorder %s4047_s6, %s5492_s27 }
 0x21d   : > { %p4049_p4 = pnand %p4048_p3, %p5550_p10 }
 0x21e   : > { %p4054_p7 = por %p4053_p2, %p4052_p0 }
 0x21f   : > { %p4050_p5 = pneg %p4049_p4 }
 0x220   : > { %p4056_p11 = por %p4055_p6, %p4054_p7 }
 0x222   : > { %p4057_p12 = pnand %p4056_p11, %p4050_p5 }
 0x224   : > { %4060 = shalt.err (!%p4057_p12)
}
 0x225   : > { %s4106_s8 = smov 128   ;;  %s4107_s10 = smov 8  }
 0x226   : > { %3953 = dma.vmem_to_hbm [thread:$0]  (%p5550_p10), %s5494_s25, 30976, %s5492_s27, %s2942_s28, %s4106_s8, %s4106_s8, %s4107_s10  }
 0x227 PF: > { %p3964_p8 = scmp.ge.s32.totalorder %s4099_s15, 2  ;;  %s2970_s22 = sand.u32 1, %s4087_s12  }
 0x228   : > { %p5551_p9 = scmp.ne.s32.totalorder %s5548_s24, 0  ;;  %s2971_s16 = scalar_lea.sflag [#allocation4], %s2970_s22 }
 0x22a   : > { %p3960_p13 = pnand %p3964_p8, %p5551_p9 }
 0x22c   : > { %4082 = dma.done.wait (!%p3960_p13), %s2971_s16, 30976  }
 0x22d   : > { %4084 = vsyncadd (!%p3960_p13), %s2971_s16, 4294936320  ;;  %p16_p1 = scmp.ge.s32.totalorder %s4153_s18, 52   ;;  %s5552_s12 = smov %s4091_s13 }
 0x22e   : > { %s5553_s13 = smov %s4095_s14  ;;  %s5554_s14 = smov %s4165_s21 }
 0x22f   : > { %s5555_s15 = smov %s4153_s18  ;;  %18 = sbr.rel (!%p16_p1) target bundleno = 5 (0x5), region = 77 }
 0x236   :  { %2976 = vsyncpa [#allocation3], 1 }
 0x237   :  { %2978 = vsyncpa [#allocation3 + $0x1], 1 }
 0x238   :  { %2979 = vsyncpa [#allocation4], 1 }
 0x239   :  { %2981 = vsyncpa [#allocation4 + $0x1], 1 }

// kernel: net_forward.6
= control target key start
LH: loop header
LB: loop body
LE: loop exit
PB: predicated region body
PF: predicated region fallthrough
CT: control target
= control target key end

     0   :  { %8 = vsyncpa [#allocation3], 0  ;;  %s1754_s0 = inlined_call_operand.hbm [shape: f32[22472,150], index: 0, kind: input, shape index: {}]   ;;  %s1755_s1 = inlined_call_operand.vmem [shape: f32[150,16], index: 1, kind: input, shape index: {}]   ;;  %s1756_s2 = inlined_call_operand.vmem [shape: f32[1,16], index: 2, kind: input, shape index: {}]   ;;  %s1757_s3 = inlined_call_operand.vmem [shape: f32[22472,16], index: 3, kind: output, shape index: {}]  }
   0x1   :  { %10 = vsyncpa [#allocation3 + $0x1], 0  ;;  %s1245_s12 = smov 0   ;;  %s1247_s13 = smov 0  }
   0x2   :  { %s1249_s14 = smov 0   ;;  %s1251_s15 = smov 0  }
   0x3 LB: > { %s994_s16 = sadd.s32 4294967295, %s1218_s15   ;;  %s1265_s17 = sadd.s32 1, %s1218_s15   ;;  %s1218_s15 = sphi %s1251_s15, %s1764_s15   ;;  %s1214_s14 = sphi %s1249_s14, %s1763_s14   ;;  %s1210_s13 = sphi %s1247_s13, %s1762_s13   ;;  %s1206_s12 = sphi %s1245_s12, %s1761_s12  }
   0x4   : > { %s20_s18 = ssub.s32 %s1218_s15, %s1265_s17  ;;  %s23_s19 = sadd.s32 1, %s1214_s14 }
   0x5   : > { %p21_p0 = scmp.eq.s32.totalorder %s20_s18, 0  ;;  %p30_p1 = scmp.ne.s32.totalorder %s1214_s14, %s1210_s13 }
   0x6   : > { %p31_p2 = scmp.eq.s32.totalorder %s1218_s15, 0  ;;  %p36_p3 = scmp.ne.s32.totalorder %s1210_s13, %s1206_s12 }
   0x7   : > { %s1275_s20 = scalar_select %p21_p0, %s1214_s14, %s23_s19  }
   0x8   : > { %p32_p4 = por %p31_p2, %p30_p1  ;;  %p37_p5 = scmp.eq.s32.totalorder %s994_s16, 0 }
   0x9   : > { %p1117_p6 = scmp.lt.s32.totalorder %s1218_s15, 53  ;;  %s134_s22 = sand.u32 1, %s1214_s14  }
   0xa   : > { %p1280_p7 = por %p37_p5, %p36_p3  ;;  %s1109_s23 = smul.u32 848, %s134_s22 }
   0xb   : > { %s1061_s24 = smul.u32 13568, %s1218_s15  ;;  %p1286_p8 = pnand %p1117_p6, %p32_p4 }
   0xc   : > { %s138_s29 = scalar_lea.vmem [#allocation2], %s1109_s23  ;;  %s1298_s4 = scalar_lea.sflag [#allocation3], %s134_s22 }
   0xd   : > { %s1293_s28 = scalar_lea.hbm %s1754_s0, %s1061_s24  ;;  %s146_s30 = sshll.u32 %s138_s29, 4  ;;  %s1295_s30 = int_to_ptr.vmem [resolvable:$true] %s146_s30 }
   0xe   : > { %s1154_s5 = scalar_lea.hbm %s1293_s28, 13568  ;;  %p1156_p11 = pneg %p1286_p8 }
   0xf   : > { %p1155_p10 = scmp.ne.s32.totalorder %s1293_s28, %s1154_s5  ;;  %s1159_s8 = scalar_lea.hbm %s1754_s0, 719104 }
  0x10   : > { %p1160_p0 = scmp.lt.u32.totalorder %s1293_s28, %s1754_s0  ;;  %p1161_p1 = scmp.lt.u32.totalorder %s1159_s8, %s1154_s5 }
  0x11   : > { %p1157_p12 = pnand %p1156_p11, %p1155_p10  ;;  %p1163_p3 = scmp.lt.u32.totalorder %s1154_s5, %s1293_s28 }
  0x12   : > { %p1162_p2 = por %p1161_p1, %p1160_p0 }
  0x13   : > { %p1158_p13 = pneg %p1157_p12 }
  0x14   : > { %p1164_p4 = por %p1163_p3, %p1162_p2 }
  0x16   : > { %p1165_p5 = pnand %p1164_p4, %p1158_p13 }
  0x18   : > { %1168 = shalt.err (!%p1165_p5)
}
  0x19   : > { %s1169_s11 = scalar_lea.vmem %s1295_s30, 13568  ;;  %s1220_s12 = smov [#allocation2]  }
  0x1a   : > { %p1170_p6 = scmp.ne.s32.totalorder %s1295_s30, %s1169_s11  ;;  %s1174_s18 = sshll.u32 %s1220_s12, 4  ;;  %s1175_s18 = int_to_ptr.vmem [resolvable:$false] %s1174_s18 }
  0x1b   : > { %s1176_s19 = scalar_lea.vmem %s1175_s18, 27136  ;;  %p1177_p9 = scmp.lt.s32.totalorder %s1295_s30, %s1175_s18 }
  0x1c   : > { %p1172_p10 = pnand %p1170_p6, %p1156_p11  ;;  %p1178_p0 = scmp.lt.s32.totalorder %s1176_s19, %s1169_s11 }
  0x1e   : > { %p1173_p12 = pneg %p1172_p10  ;;  %p1179_p1 = por %p1178_p0, %p1177_p9 }
  0x20   : > { %p1180_p2 = pnand %p1179_p1, %p1173_p12 }
  0x22   : > { %1183 = shalt.err (!%p1180_p2)
}
  0x23   : > { %s1221_s22 = smov 256   ;;  %s1222_s23 = smov 16  }
  0x24   : > { %1116 = dma.hbm_to_vmem [thread:$0]  (!%p1286_p8), %s1293_s28, 13568, %s1295_s30, %s1298_s4, %s1221_s22, %s1221_s22, %s1222_s23  }
  0x25   : > { %p154_p11 = scmp.lt.s32.totalorder %s1218_s15, 54  ;;  %p1760_p13 = scmp.ge.s32.totalorder %s1218_s15, 1 }
  0x27   : > { %p155_p3 = pnand %p1760_p13, %p154_p11 }
  0x28   : > { %s160_s24 = sand.u32 (!%p155_p3), 1, %s1210_s13  }
  0x29   : > { %158 = sbr.rel (%p155_p3) target bundleno = 410 (0x19a), region = 32  ;;  %s161_s27 = scalar_lea.sflag (!%p155_p3), [#allocation3], %s160_s24 }
  0x2a   : > { %s1110_s26 = smul.u32 (!%p155_p3), 848, %s160_s24 }
  0x2c   : > { %s1330_s29 = scalar_lea.vmem (!%p155_p3), [#allocation2], %s1110_s26 }
  0x30   : > { %1201 = dma.done.wait (%p1280_p7), %s161_s27, 13568  }
  0x31   : > { %1203 = vsyncadd (%p1280_p7), %s161_s27, 4294953728  ;;  %v1223_v0 = vmov 0.0|0.0   ;;  %v300_v1 = vld [vmem:[%s1755_s1] sm:$0xff]  ;;  %v301_v2 = vld [vmem:[%s1755_s1 + $0x8] sm:$0xff]  ;;  %vm326_vm0 = vcmask 179200   ;;  %v1224_v30 = vmov 0.0  }
  0x32   : > { %1062 = vmatprep.subr.bf16.mxu0 %v1223_v0  ;;  %1089 = vmatprep.subr.bf16.mxu1 %v1223_v0  ;;  %v302_v3 = vld [vmem:[%s1755_s1 + $0x10] sm:$0xff]  ;;  %v1063_v4 = vpack.c.bf16 %v301_v2, %v300_v1  ;;  %v303_v5 = vld [vmem:[%s1755_s1 + $0x18] sm:$0xff]  ;;  %v304_v7 = vld [vmem:[%s1755_s1 + $0x20] sm:$0xff]  ;;  %vm486_vm1 = vcmask 1045504   ;;  %s188_s26 = smul.u32 53, %s994_s16  ;;  %vm873_vm2 = vcmask 130048  }
  0x33   : > { %v1066_v6 = vpack.c.bf16 %v303_v5, %v302_v3  ;;  %v305_v8 = vld [vmem:[%s1755_s1 + $0x28] sm:$0xff]  ;;  %v306_v12 = vld [vmem:[%s1755_s1 + $0x30] sm:$0xff]  ;;  %v307_v13 = vld [vmem:[%s1755_s1 + $0x38] sm:$0xff] }
  0x34   : > { %1064 = vmatpush1.bf16.msra.mxu0 %v1063_v4  ;;  %1099 = vmatpush1.bf16.msra.mxu1 %v1063_v4  ;;  %v195_v9 = vld [vmem:[%s1330_s29 + $0x8] sm:$0xff]  ;;  %v1069_v10 = vpack.c.bf16 %v305_v8, %v304_v7  ;;  %v249_v11 = vld [vmem:[%s1330_s29 + $0x1b8] sm:$0xff]  ;;  %v1072_v14 = vpack.c.bf16 %v307_v13, %v306_v12  ;;  %v308_v15 = vld [vmem:[%s1755_s1 + $0x40] sm:$0xff]  ;;  %p189_p7 = scmp.lt.s32.totalorder %s188_s26, 2808 }
  0x35   : > { %1065 = vmatprep.subr.bf16.mxu0 %v1223_v0  ;;  %1090 = vmatprep.subr.bf16.mxu1 %v1223_v0  ;;  %v309_v16 = vld [vmem:[%s1755_s1 + $0x48] sm:$0xff]  ;;  %v310_v18 = vld [vmem:[%s1755_s1 + $0x50] sm:$0xff]  ;;  %v311_v19 = vld [vmem:[%s1755_s1 + $0x58] sm:$0xff] }
  0x36   : > { %1004 = vmatprep.mubr.msk.f32.mxu0 %vm326_vm0, %v195_v9  ;;  %1031 = vmatprep.mubr.msk.f32.mxu1 %vm326_vm0, %v249_v11  ;;  %v1075_v17 = vpack.c.bf16 %v309_v16, %v308_v15  ;;  %v1078_v20 = vpack.c.bf16 %v311_v19, %v310_v18  ;;  %v312_v21 = vld [vmem:[%s1755_s1 + $0x60] sm:$0xff]  ;;  %v313_v22 = vld [vmem:[%s1755_s1 + $0x68] sm:$0xff]  ;;  %v314_v24 = vld [vmem:[%s1755_s1 + $0x70] sm:$0xff]  ;;  %s1766_s26 = smov (!%p189_p7, %s188_s26), 2808 }
  0x37   : > { %v1081_v23 = vpack.c.bf16 %v313_v22, %v312_v21  ;;  %v315_v25 = vld [vmem:[%s1755_s1 + $0x78] sm:$0xff]  ;;  %v316_v27 = vld [vmem:[%s1755_s1 + $0x80] sm:$0xff]  ;;  %v317_v28 = vld [vmem:[%s1755_s1 + $0x88] sm:$0xff]  ;;  %s1001_s28 = sshll.u32 %s1766_s26, 3 }
  0x38   : > { %1067 = vmatpush1.bf16.msra.mxu0 %v1066_v6  ;;  %1100 = vmatpush1.bf16.msra.mxu1 %v1066_v6  ;;  %v1084_v26 = vpack.c.bf16 %v315_v25, %v314_v24  ;;  %v1087_v29 = vpack.c.bf16 %v317_v28, %v316_v27  ;;  %v318_v31 = vld [vmem:[%s1755_s1 + $0x90] sm:$0x3f]  ;;  %v197_v34 = vld [vmem:[%s1330_s29 + $0x18] sm:$0xff]  ;;  %v251_v35 = vld [vmem:[%s1330_s29 + $0x1c8] sm:$0xff]  ;;  %s1582_s15 = scalar_lea.vmem %s1757_s3, %s1001_s28 }
  0x39   : > { %1068 = vmatprep.subr.bf16.mxu0 %v1223_v0  ;;  %1091 = vmatprep.subr.bf16.mxu1 %v1223_v0  ;;  %v194_v32 = vld [vmem:[%s1330_s29] sm:$0xff]  ;;  %v248_v33 = vld [vmem:[%s1330_s29 + $0x1b0] sm:$0xff]  ;;  %v199_v38 = vld [vmem:[%s1330_s29 + $0x28] sm:$0xff] }
  0x3a   : > { %v196_v36 = vld [vmem:[%s1330_s29 + $0x10] sm:$0xff]  ;;  %v250_v37 = vld [vmem:[%s1330_s29 + $0x1c0] sm:$0xff]  ;;  %v253_v39 = vld [vmem:[%s1330_s29 + $0x1d8] sm:$0xff] }
  0x3b   : > { %v198_v40 = vld [vmem:[%s1330_s29 + $0x20] sm:$0xff]  ;;  %v252_v41 = vld [vmem:[%s1330_s29 + $0x1d0] sm:$0xff]  ;;  %v201_v42 = vld [vmem:[%s1330_s29 + $0x38] sm:$0xff] }
  0x3c   : > { %1070 = vmatpush1.bf16.msra.mxu0 %v1069_v10  ;;  %1101 = vmatpush1.bf16.msra.mxu1 %v1069_v10  ;;  %v255_v43 = vld [vmem:[%s1330_s29 + $0x1e8] sm:$0xff]  ;;  %v200_v44 = vld [vmem:[%s1330_s29 + $0x30] sm:$0xff]  ;;  %v254_v45 = vld [vmem:[%s1330_s29 + $0x1e0] sm:$0xff] }
  0x3d   : > { %1071 = vmatprep.subr.bf16.mxu0 %v1223_v0  ;;  %1092 = vmatprep.subr.bf16.mxu1 %v1223_v0  ;;  %v203_v46 = vld [vmem:[%s1330_s29 + $0x48] sm:$0xff]  ;;  %v257_v47 = vld [vmem:[%s1330_s29 + $0x1f8] sm:$0xff]  ;;  %v202_v48 = vld [vmem:[%s1330_s29 + $0x40] sm:$0xff] }
  0x3e   : > { %v256_v49 = vld [vmem:[%s1330_s29 + $0x1f0] sm:$0xff]  ;;  %v205_v50 = vld [vmem:[%s1330_s29 + $0x58] sm:$0xff]  ;;  %v259_v51 = vld [vmem:[%s1330_s29 + $0x208] sm:$0xff] }
  0x3f   : > { %v204_v52 = vld [vmem:[%s1330_s29 + $0x50] sm:$0xff]  ;;  %v258_v53 = vld [vmem:[%s1330_s29 + $0x200] sm:$0xff]  ;;  %v207_v54 = vld [vmem:[%s1330_s29 + $0x68] sm:$0xff] }
  0x40   : > { %1073 = vmatpush1.bf16.msra.mxu0 %v1072_v14  ;;  %1102 = vmatpush1.bf16.msra.mxu1 %v1072_v14  ;;  %v261_v55 = vld [vmem:[%s1330_s29 + $0x218] sm:$0xff]  ;;  %v206_v56 = vld [vmem:[%s1330_s29 + $0x60] sm:$0xff]  ;;  %v260_v57 = vld [vmem:[%s1330_s29 + $0x210] sm:$0xff] }
  0x41   : > { %1074 = vmatprep.subr.bf16.mxu0 %v1223_v0  ;;  %1093 = vmatprep.subr.bf16.mxu1 %v1223_v0  ;;  %v209_v58 = vld [vmem:[%s1330_s29 + $0x78] sm:$0xff]  ;;  %v263_v59 = vld [vmem:[%s1330_s29 + $0x228] sm:$0xff]  ;;  %v208_v60 = vld [vmem:[%s1330_s29 + $0x70] sm:$0xff] }
  0x42   : > { %v262_v61 = vld [vmem:[%s1330_s29 + $0x220] sm:$0xff]  ;;  %v211_v62 = vld [vmem:[%s1330_s29 + $0x88] sm:$0xff]  ;;  %v265_v63 = vld [vmem:[%s1330_s29 + $0x238] sm:$0xff] }
  0x43   : > { %v264_v1 = vld [vmem:[%s1330_s29 + $0x230] sm:$0xff]  ;;  %v213_v2 = vld [vmem:[%s1330_s29 + $0x98] sm:$0xff]  ;;  %v267_v3 = vld [vmem:[%s1330_s29 + $0x248] sm:$0xff] }
  0x44   : > { %1076 = vmatpush1.bf16.msra.mxu0 %v1075_v17  ;;  %1103 = vmatpush1.bf16.msra.mxu1 %v1075_v17  ;;  %v212_v4 = vld [vmem:[%s1330_s29 + $0x90] sm:$0xff]  ;;  %v266_v5 = vld [vmem:[%s1330_s29 + $0x240] sm:$0xff]  ;;  %v215_v6 = vld [vmem:[%s1330_s29 + $0xa8] sm:$0xff] }
  0x45   : > { %1077 = vmatprep.subr.bf16.mxu0 %v1223_v0  ;;  %1094 = vmatprep.subr.bf16.mxu1 %v1223_v0  ;;  %v269_v7 = vld [vmem:[%s1330_s29 + $0x258] sm:$0xff]  ;;  %v214_v8 = vld [vmem:[%s1330_s29 + $0xa0] sm:$0xff]  ;;  %v268_v9 = vld [vmem:[%s1330_s29 + $0x250] sm:$0xff] }
  0x46   : > { %v217_v10 = vld [vmem:[%s1330_s29 + $0xb8] sm:$0xff]  ;;  %v271_v11 = vld [vmem:[%s1330_s29 + $0x268] sm:$0xff]  ;;  %v216_v12 = vld [vmem:[%s1330_s29 + $0xb0] sm:$0xff] }
  0x47   : > { %v270_v13 = vld [vmem:[%s1330_s29 + $0x260] sm:$0xff]  ;;  %v219_v14 = vld [vmem:[%s1330_s29 + $0xc8] sm:$0xff]  ;;  %v273_v15 = vld [vmem:[%s1330_s29 + $0x278] sm:$0xff] }
  0x48   : > { %1079 = vmatpush1.bf16.msra.mxu0 %v1078_v20  ;;  %1104 = vmatpush1.bf16.msra.mxu1 %v1078_v20  ;;  %v218_v16 = vld [vmem:[%s1330_s29 + $0xc0] sm:$0xff]  ;;  %v272_v17 = vld [vmem:[%s1330_s29 + $0x270] sm:$0xff]  ;;  %v221_v18 = vld [vmem:[%s1330_s29 + $0xd8] sm:$0xff] }
  0x49   : > { %1080 = vmatprep.subr.bf16.mxu0 %v1223_v0  ;;  %1095 = vmatprep.subr.bf16.mxu1 %v1223_v0  ;;  %v275_v19 = vld [vmem:[%s1330_s29 + $0x288] sm:$0xff]  ;;  %v220_v20 = vld [vmem:[%s1330_s29 + $0xd0] sm:$0xff]  ;;  %v274_v21 = vld [vmem:[%s1330_s29 + $0x280] sm:$0xff] }
  0x4a   : > { %v223_v22 = vld [vmem:[%s1330_s29 + $0xe8] sm:$0xff]  ;;  %v222_v24 = vld [vmem:[%s1330_s29 + $0xe0] sm:$0xff]  ;;  %v276_v25 = vld [vmem:[%s1330_s29 + $0x290] sm:$0xff] }
  0x4b   : > { %v279_v27 = vld [vmem:[%s1330_s29 + $0x2a8] sm:$0xff]  ;;  %v224_v28 = vld [vmem:[%s1330_s29 + $0xf0] sm:$0xff] }
  0x4c   : > { %1082 = vmatpush1.bf16.msra.mxu0 %v1081_v23  ;;  %1105 = vmatpush1.bf16.msra.mxu1 %v1081_v23  ;;  %v277_v23 = vld [vmem:[%s1330_s29 + $0x298] sm:$0xff] }
  0x4d   : > { %1083 = vmatprep.subr.bf16.mxu0 %v1223_v0  ;;  %1096 = vmatprep.subr.bf16.mxu1 %v1223_v0 }
  0x50   : > { %1085 = vmatpush1.bf16.msra.mxu0 %v1084_v26  ;;  %1106 = vmatpush1.bf16.msra.mxu1 %v1084_v26  ;;  %v225_v26 = vld [vmem:[%s1330_s29 + $0xf8] sm:$0xff] }
  0x51   : > { %1086 = vmatprep.subr.bf16.mxu0 %v1223_v0  ;;  %1097 = vmatprep.subr.bf16.mxu1 %v1223_v0  ;;  %v210_v0 = vld [vmem:[%s1330_s29 + $0x80] sm:$0xff] }
  0x54   : > { %1088 = vmatpush1.bf16.msra.mxu0 %v1087_v29  ;;  %1107 = vmatpush1.bf16.msra.mxu1 %v1087_v29  ;;  %v278_v29 = vld [vmem:[%s1330_s29 + $0x2a0] sm:$0xff] }
  0x55   : > { %526 = vmatprep.subr.mxu0 %v1224_v30  ;;  %1098 = vmatprep.subr.mxu1 %v1224_v30  ;;  %v227_v30 = vld [vmem:[%s1330_s29 + $0x108] sm:$0xff] }
  0x58   : > { %1003 = vmatpush1.msk.msra.mxu0 %vm486_vm1, %v318_v31  ;;  %1108 = vmatpush1.msk.msra.mxu1 %vm486_vm1, %v318_v31  ;;  %v281_v31 = vld [vmem:[%s1330_s29 + $0x2b8] sm:$0xff] }
  0x59   : > { %555 = vmatmul.mubr.f32.vlgmr.msra.gmra.mrb[0].mxu0 %v194_v32  ;;  %690 = vmatmul.mubr.f32.vlgmr.msra.gmra.mrb[0].mxu1 %v248_v33  ;;  %v226_v32 = vld [vmem:[%s1330_s29 + $0x100] sm:$0xff]  ;;  %v280_v33 = vld [vmem:[%s1330_s29 + $0x2b0] sm:$0xff] }
  0x5a   : > { %1005 = vmatprep.mubr.msk.f32.mxu0 %vm326_vm0, %v197_v34  ;;  %1032 = vmatprep.mubr.msk.f32.mxu1 %vm326_vm0, %v251_v35  ;;  %v229_v34 = vld [vmem:[%s1330_s29 + $0x118] sm:$0xff]  ;;  %v283_v35 = vld [vmem:[%s1330_s29 + $0x2c8] sm:$0xff] }
  0x5d   : > { %560 = vmatmul.mubr.f32.gmra.mrb[2].mxu0 %v196_v36  ;;  %695 = vmatmul.mubr.f32.gmra.mrb[2].mxu1 %v250_v37  ;;  %v228_v36 = vld [vmem:[%s1330_s29 + $0x110] sm:$0xff]  ;;  %v282_v37 = vld [vmem:[%s1330_s29 + $0x2c0] sm:$0xff] }
  0x5e   : > { %1006 = vmatprep.mubr.msk.f32.mxu0 %vm326_vm0, %v199_v38  ;;  %1033 = vmatprep.mubr.msk.f32.mxu1 %vm326_vm0, %v253_v39  ;;  %v231_v38 = vld [vmem:[%s1330_s29 + $0x128] sm:$0xff]  ;;  %v285_v39 = vld [vmem:[%s1330_s29 + $0x2d8] sm:$0xff] }
  0x61   : > { %565 = vmatmul.mubr.f32.gmra.mrb[4].mxu0 %v198_v40  ;;  %700 = vmatmul.mubr.f32.gmra.mrb[4].mxu1 %v252_v41  ;;  %v230_v40 = vld [vmem:[%s1330_s29 + $0x120] sm:$0xff]  ;;  %v284_v41 = vld [vmem:[%s1330_s29 + $0x2d0] sm:$0xff] }
  0x62   : > { %1007 = vmatprep.mubr.msk.f32.mxu0 %vm326_vm0, %v201_v42  ;;  %1034 = vmatprep.mubr.msk.f32.mxu1 %vm326_vm0, %v255_v43  ;;  %v233_v42 = vld [vmem:[%s1330_s29 + $0x138] sm:$0xff]  ;;  %v287_v43 = vld [vmem:[%s1330_s29 + $0x2e8] sm:$0xff] }
  0x65   : > { %570 = vmatmul.mubr.f32.gmra.mrb[6].mxu0 %v200_v44  ;;  %705 = vmatmul.mubr.f32.gmra.mrb[6].mxu1 %v254_v45  ;;  %v232_v44 = vld [vmem:[%s1330_s29 + $0x130] sm:$0xff]  ;;  %v286_v45 = vld [vmem:[%s1330_s29 + $0x2e0] sm:$0xff] }
  0x66   : > { %1008 = vmatprep.mubr.msk.f32.mxu0 %vm326_vm0, %v203_v46  ;;  %1035 = vmatprep.mubr.msk.f32.mxu1 %vm326_vm0, %v257_v47  ;;  %v235_v46 = vld [vmem:[%s1330_s29 + $0x148] sm:$0xff]  ;;  %v289_v47 = vld [vmem:[%s1330_s29 + $0x2f8] sm:$0xff] }
  0x69   : > { %575 = vmatmul.mubr.f32.gmra.mrb[8].mxu0 %v202_v48  ;;  %710 = vmatmul.mubr.f32.gmra.mrb[8].mxu1 %v256_v49  ;;  %v234_v48 = vld [vmem:[%s1330_s29 + $0x140] sm:$0xff]  ;;  %v288_v49 = vld [vmem:[%s1330_s29 + $0x2f0] sm:$0xff] }
  0x6a   : > { %1009 = vmatprep.mubr.msk.f32.mxu0 %vm326_vm0, %v205_v50  ;;  %1036 = vmatprep.mubr.msk.f32.mxu1 %vm326_vm0, %v259_v51  ;;  %v237_v50 = vld [vmem:[%s1330_s29 + $0x158] sm:$0xff]  ;;  %v291_v51 = vld [vmem:[%s1330_s29 + $0x308] sm:$0xff] }
  0x6d   : > { %580 = vmatmul.mubr.f32.gmra.mrb[10].mxu0 %v204_v52  ;;  %715 = vmatmul.mubr.f32.gmra.mrb[10].mxu1 %v258_v53  ;;  %v236_v52 = vld [vmem:[%s1330_s29 + $0x150] sm:$0xff]  ;;  %v290_v53 = vld [vmem:[%s1330_s29 + $0x300] sm:$0xff] }
  0x6e   : > { %1010 = vmatprep.mubr.msk.f32.mxu0 %vm326_vm0, %v207_v54  ;;  %1037 = vmatprep.mubr.msk.f32.mxu1 %vm326_vm0, %v261_v55  ;;  %v239_v54 = vld [vmem:[%s1330_s29 + $0x168] sm:$0xff]  ;;  %v293_v55 = vld [vmem:[%s1330_s29 + $0x318] sm:$0xff] }
  0x71   : > { %585 = vmatmul.mubr.f32.gmra.mrb[12].mxu0 %v206_v56  ;;  %720 = vmatmul.mubr.f32.gmra.mrb[12].mxu1 %v260_v57  ;;  %v238_v56 = vld [vmem:[%s1330_s29 + $0x160] sm:$0xff]  ;;  %v292_v57 = vld [vmem:[%s1330_s29 + $0x310] sm:$0xff] }
  0x72   : > { %1011 = vmatprep.mubr.msk.f32.mxu0 %vm326_vm0, %v209_v58  ;;  %1038 = vmatprep.mubr.msk.f32.mxu1 %vm326_vm0, %v263_v59  ;;  %v241_v58 = vld [vmem:[%s1330_s29 + $0x178] sm:$0xff]  ;;  %v295_v59 = vld [vmem:[%s1330_s29 + $0x328] sm:$0xff] }
  0x75   : > { %590 = vmatmul.mubr.f32.gmra.mrb[14].mxu0 %v208_v60  ;;  %725 = vmatmul.mubr.f32.gmra.mrb[14].mxu1 %v262_v61  ;;  %v240_v60 = vld [vmem:[%s1330_s29 + $0x170] sm:$0xff]  ;;  %v294_v61 = vld [vmem:[%s1330_s29 + $0x320] sm:$0xff] }
  0x76   : > { %1012 = vmatprep.mubr.msk.f32.mxu0 %vm326_vm0, %v211_v62  ;;  %1039 = vmatprep.mubr.msk.f32.mxu1 %vm326_vm0, %v265_v63  ;;  %v243_v62 = vld [vmem:[%s1330_s29 + $0x188] sm:$0xff]  ;;  %v297_v63 = vld [vmem:[%s1330_s29 + $0x338] sm:$0xff] }
  0x79   : > { %595 = vmatmul.mubr.f32.gmra.mrb[16].mxu0 %v210_v0  ;;  %730 = vmatmul.mubr.f32.gmra.mrb[16].mxu1 %v264_v1  ;;  %v242_v0 = vld [vmem:[%s1330_s29 + $0x180] sm:$0xff]  ;;  %v296_v1 = vld [vmem:[%s1330_s29 + $0x330] sm:$0xff] }
  0x7a   : > { %1013 = vmatprep.mubr.msk.f32.mxu0 %vm326_vm0, %v213_v2  ;;  %1040 = vmatprep.mubr.msk.f32.mxu1 %vm326_vm0, %v267_v3  ;;  %v245_v2 = vld [vmem:[%s1330_s29 + $0x198] sm:$0xff]  ;;  %v299_v3 = vld [vmem:[%s1330_s29 + $0x348] sm:$0xff] }
  0x7d   : > { %600 = vmatmul.mubr.f32.gmra.mrb[18].mxu0 %v212_v4  ;;  %735 = vmatmul.mubr.f32.gmra.mrb[18].mxu1 %v266_v5  ;;  %v244_v4 = vld [vmem:[%s1330_s29 + $0x190] sm:$0xff]  ;;  %v298_v5 = vld [vmem:[%s1330_s29 + $0x340] sm:$0xff] }
  0x7e   : > { %1014 = vmatprep.mubr.msk.f32.mxu0 %vm326_vm0, %v215_v6  ;;  %1041 = vmatprep.mubr.msk.f32.mxu1 %vm326_vm0, %v269_v7  ;;  %v247_v6 = vld [vmem:[%s1330_s29 + $0x1a8] sm:$0xff]  ;;  %v246_v7 = vld [vmem:[%s1330_s29 + $0x1a0] sm:$0xff] }
  0x81   : > { %605 = vmatmul.mubr.f32.gmra.mrb[20].mxu0 %v214_v8  ;;  %740 = vmatmul.mubr.f32.gmra.mrb[20].mxu1 %v268_v9  ;;  %v1575_v8 = vld [vmem:[%s1756_s2] ss:$0 sm:$0xff] }
  0x82   : > { %1015 = vmatprep.mubr.msk.f32.mxu0 %vm326_vm0, %v217_v10  ;;  %1042 = vmatprep.mubr.msk.f32.mxu1 %vm326_vm0, %v271_v11 }
  0x85   : > { %610 = vmatmul.mubr.f32.gmra.mrb[22].mxu0 %v216_v12  ;;  %745 = vmatmul.mubr.f32.gmra.mrb[22].mxu1 %v270_v13 }
  0x86   : > { %1016 = vmatprep.mubr.msk.f32.mxu0 %vm326_vm0, %v219_v14  ;;  %1043 = vmatprep.mubr.msk.f32.mxu1 %vm326_vm0, %v273_v15 }
  0x89   : > { %615 = vmatmul.mubr.f32.gmra.mrb[24].mxu0 %v218_v16  ;;  %750 = vmatmul.mubr.f32.gmra.mrb[24].mxu1 %v272_v17 }
  0x8a   : > { %1017 = vmatprep.mubr.msk.f32.mxu0 %vm326_vm0, %v221_v18  ;;  %1044 = vmatprep.mubr.msk.f32.mxu1 %vm326_vm0, %v275_v19 }
  0x8d   : > { %620 = vmatmul.mubr.f32.gmra.mrb[26].mxu0 %v220_v20  ;;  %755 = vmatmul.mubr.f32.gmra.mrb[26].mxu1 %v274_v21 }
  0x8e   : > { %1018 = vmatprep.mubr.msk.f32.mxu0 %vm326_vm0, %v223_v22  ;;  %1045 = vmatprep.mubr.msk.f32.mxu1 %vm326_vm0, %v277_v23 }
  0x91   : > { %625 = vmatmul.mubr.f32.gmra.mrb[28].mxu0 %v222_v24  ;;  %760 = vmatmul.mubr.f32.gmra.mrb[28].mxu1 %v276_v25 }
  0x92   : > { %1019 = vmatprep.mubr.msk.f32.mxu0 %vm326_vm0, %v225_v26  ;;  %1046 = vmatprep.mubr.msk.f32.mxu1 %vm326_vm0, %v279_v27 }
  0x95   : > { %630 = vmatmul.mubr.f32.gmra.mrb[30].mxu0 %v224_v28  ;;  %765 = vmatmul.mubr.f32.gmra.mrb[30].mxu1 %v278_v29 }
  0x96   : > { %1020 = vmatprep.mubr.msk.f32.mxu0 %vm326_vm0, %v227_v30  ;;  %1047 = vmatprep.mubr.msk.f32.mxu1 %vm326_vm0, %v281_v31 }
  0x99   : > { %635 = vmatmul.mubr.f32.gmra.mrb[32].mxu0 %v226_v32  ;;  %770 = vmatmul.mubr.f32.gmra.mrb[32].mxu1 %v280_v33 }
  0x9a   : > { %1021 = vmatprep.mubr.msk.f32.mxu0 %vm326_vm0, %v229_v34  ;;  %1048 = vmatprep.mubr.msk.f32.mxu1 %vm326_vm0, %v283_v35 }
  0x9d   : > { %640 = vmatmul.mubr.f32.gmra.mrb[34].mxu0 %v228_v36  ;;  %775 = vmatmul.mubr.f32.gmra.mrb[34].mxu1 %v282_v37 }
  0x9e   : > { %1022 = vmatprep.mubr.msk.f32.mxu0 %vm326_vm0, %v231_v38  ;;  %1049 = vmatprep.mubr.msk.f32.mxu1 %vm326_vm0, %v285_v39 }
  0xa1   : > { %645 = vmatmul.mubr.f32.gmra.mrb[36].mxu0 %v230_v40  ;;  %780 = vmatmul.mubr.f32.gmra.mrb[36].mxu1 %v284_v41 }
  0xa2   : > { %1023 = vmatprep.mubr.msk.f32.mxu0 %vm326_vm0, %v233_v42  ;;  %1050 = vmatprep.mubr.msk.f32.mxu1 %vm326_vm0, %v287_v43 }
  0xa5   : > { %650 = vmatmul.mubr.f32.gmra.mrb[38].mxu0 %v232_v44  ;;  %785 = vmatmul.mubr.f32.gmra.mrb[38].mxu1 %v286_v45 }
  0xa6   : > { %1024 = vmatprep.mubr.msk.f32.mxu0 %vm326_vm0, %v235_v46  ;;  %1051 = vmatprep.mubr.msk.f32.mxu1 %vm326_vm0, %v289_v47 }
  0xa9   : > { %655 = vmatmul.mubr.f32.gmra.mrb[40].mxu0 %v234_v48  ;;  %790 = vmatmul.mubr.f32.gmra.mrb[40].mxu1 %v288_v49 }
  0xaa   : > { %1025 = vmatprep.mubr.msk.f32.mxu0 %vm326_vm0, %v237_v50  ;;  %1052 = vmatprep.mubr.msk.f32.mxu1 %vm326_vm0, %v291_v51 }
  0xad   : > { %660 = vmatmul.mubr.f32.gmra.mrb[42].mxu0 %v236_v52  ;;  %795 = vmatmul.mubr.f32.gmra.mrb[42].mxu1 %v290_v53 }
  0xae   : > { %1026 = vmatprep.mubr.msk.f32.mxu0 %vm326_vm0, %v239_v54  ;;  %1053 = vmatprep.mubr.msk.f32.mxu1 %vm326_vm0, %v293_v55 }
  0xb1   : > { %665 = vmatmul.mubr.f32.gmra.mrb[44].mxu0 %v238_v56  ;;  %800 = vmatmul.mubr.f32.gmra.mrb[44].mxu1 %v292_v57 }
  0xb2   : > { %1027 = vmatprep.mubr.msk.f32.mxu0 %vm326_vm0, %v241_v58  ;;  %1054 = vmatprep.mubr.msk.f32.mxu1 %vm326_vm0, %v295_v59 }
  0xb5   : > { %670 = vmatmul.mubr.f32.gmra.mrb[46].mxu0 %v240_v60  ;;  %805 = vmatmul.mubr.f32.gmra.mrb[46].mxu1 %v294_v61 }
  0xb6   : > { %1028 = vmatprep.mubr.msk.f32.mxu0 %vm326_vm0, %v243_v62  ;;  %1055 = vmatprep.mubr.msk.f32.mxu1 %vm326_vm0, %v297_v63 }
  0xb9   : > { %675 = vmatmul.mubr.f32.gmra.mrb[48].mxu0 %v242_v0  ;;  %810 = vmatmul.mubr.f32.gmra.mrb[48].mxu1 %v296_v1 }
  0xba   : > { %1029 = vmatprep.mubr.msk.f32.mxu0 %vm326_vm0, %v245_v2  ;;  %1056 = vmatprep.mubr.msk.f32.mxu1 %vm326_vm0, %v299_v3 }
  0xbd   : > { %680 = vmatmul.mubr.f32.gmra.mrb[50].mxu0 %v244_v4  ;;  %815 = vmatmul.mubr.f32.gmra.mrb[50].mxu1 %v298_v5 }
  0xbe   : > { %1030 = vmatprep.mubr.msk.f32.mxu0 %vm326_vm0, %v247_v6 }
  0xc1   : > { %685 = vmatmul.mubr.f32.gmra.mrb[52].mxu0 %v246_v7 }
 0x12c   : > { %v556_v9 = vpop.f32.mrb[0].mxu0  ;;  %v691_v10 = vpop.f32.mrb[0].mxu1 }
 0x12d   : > { %v557_v11 = vadd.f32 %v1575_v8, %v556_v9  ;;  %v558_v12 = vpop.f32.mrb[1].mxu0  ;;  %v692_v13 = vadd.f32 %v1575_v8, %v691_v10  ;;  %v693_v14 = vpop.f32.mrb[1].mxu1 }
 0x12f   : > { %v820_v15 = vmax.f32 %v557_v11, 0.0  ;;  %v847_v16 = vmax.f32 %v692_v13, 0.0 }
 0x130   : > { %v561_v17 = vpop.f32.mrb[2].mxu0  ;;  %v696_v18 = vpop.f32.mrb[2].mxu1 }
 0x131   : > { %874 = vst.msk [vmem:[%s1582_s15] sm:$0xff] %vm873_vm2, %v820_v15  ;;  %901 = vst.msk [vmem:[%s1582_s15 + $0xd8] sm:$0xff] %vm873_vm2, %v847_v16  ;;  %v562_v19 = vadd.f32 %v1575_v8, %v561_v17  ;;  %v563_v20 = vpop.f32.mrb[3].mxu0  ;;  %v697_v21 = vadd.f32 %v1575_v8, %v696_v18  ;;  %v698_v22 = vpop.f32.mrb[3].mxu1 }
 0x133   : > { %v821_v23 = vmax.f32 %v562_v19, 0.0  ;;  %v848_v24 = vmax.f32 %v697_v21, 0.0 }
 0x134   : > { %v566_v25 = vpop.f32.mrb[4].mxu0  ;;  %v701_v26 = vpop.f32.mrb[4].mxu1 }
 0x135   : > { %875 = vst.msk [vmem:[%s1582_s15 + $0x8] sm:$0xff] %vm873_vm2, %v821_v23  ;;  %902 = vst.msk [vmem:[%s1582_s15 + $0xe0] sm:$0xff] %vm873_vm2, %v848_v24  ;;  %v567_v27 = vadd.f32 %v1575_v8, %v566_v25  ;;  %v568_v28 = vpop.f32.mrb[5].mxu0  ;;  %v702_v29 = vadd.f32 %v1575_v8, %v701_v26  ;;  %v703_v30 = vpop.f32.mrb[5].mxu1 }
 0x137   : > { %v822_v31 = vmax.f32 %v567_v27, 0.0  ;;  %v849_v32 = vmax.f32 %v702_v29, 0.0 }
 0x138   : > { %v571_v33 = vpop.f32.mrb[6].mxu0  ;;  %v706_v34 = vpop.f32.mrb[6].mxu1 }
 0x139   : > { %876 = vst.msk [vmem:[%s1582_s15 + $0x10] sm:$0xff] %vm873_vm2, %v822_v31  ;;  %903 = vst.msk [vmem:[%s1582_s15 + $0xe8] sm:$0xff] %vm873_vm2, %v849_v32  ;;  %v572_v35 = vadd.f32 %v1575_v8, %v571_v33  ;;  %v573_v36 = vpop.f32.mrb[7].mxu0  ;;  %v707_v37 = vadd.f32 %v1575_v8, %v706_v34  ;;  %v708_v38 = vpop.f32.mrb[7].mxu1 }
 0x13b   : > { %v823_v39 = vmax.f32 %v572_v35, 0.0  ;;  %v850_v40 = vmax.f32 %v707_v37, 0.0 }
 0x13c   : > { %v576_v41 = vpop.f32.mrb[8].mxu0  ;;  %v711_v42 = vpop.f32.mrb[8].mxu1 }
 0x13d   : > { %877 = vst.msk [vmem:[%s1582_s15 + $0x18] sm:$0xff] %vm873_vm2, %v823_v39  ;;  %904 = vst.msk [vmem:[%s1582_s15 + $0xf0] sm:$0xff] %vm873_vm2, %v850_v40  ;;  %v577_v43 = vadd.f32 %v1575_v8, %v576_v41  ;;  %v578_v44 = vpop.f32.mrb[9].mxu0  ;;  %v712_v45 = vadd.f32 %v1575_v8, %v711_v42  ;;  %v713_v46 = vpop.f32.mrb[9].mxu1 }
 0x13f   : > { %v824_v47 = vmax.f32 %v577_v43, 0.0  ;;  %v851_v48 = vmax.f32 %v712_v45, 0.0 }
 0x140   : > { %v581_v49 = vpop.f32.mrb[10].mxu0  ;;  %v716_v50 = vpop.f32.mrb[10].mxu1 }
 0x141   : > { %878 = vst.msk [vmem:[%s1582_s15 + $0x20] sm:$0xff] %vm873_vm2, %v824_v47  ;;  %905 = vst.msk [vmem:[%s1582_s15 + $0xf8] sm:$0xff] %vm873_vm2, %v851_v48  ;;  %v582_v51 = vadd.f32 %v1575_v8, %v581_v49  ;;  %v583_v52 = vpop.f32.mrb[11].mxu0  ;;  %v717_v53 = vadd.f32 %v1575_v8, %v716_v50  ;;  %v718_v54 = vpop.f32.mrb[11].mxu1 }
 0x143   : > { %v825_v55 = vmax.f32 %v582_v51, 0.0  ;;  %v852_v56 = vmax.f32 %v717_v53, 0.0 }
 0x144   : > { %v586_v57 = vpop.f32.mrb[12].mxu0  ;;  %v721_v58 = vpop.f32.mrb[12].mxu1 }
 0x145   : > { %879 = vst.msk [vmem:[%s1582_s15 + $0x28] sm:$0xff] %vm873_vm2, %v825_v55  ;;  %906 = vst.msk [vmem:[%s1582_s15 + $0x100] sm:$0xff] %vm873_vm2, %v852_v56  ;;  %v587_v59 = vadd.f32 %v1575_v8, %v586_v57  ;;  %v588_v60 = vpop.f32.mrb[13].mxu0  ;;  %v722_v61 = vadd.f32 %v1575_v8, %v721_v58  ;;  %v723_v62 = vpop.f32.mrb[13].mxu1 }
 0x147   : > { %v826_v63 = vmax.f32 %v587_v59, 0.0  ;;  %v853_v0 = vmax.f32 %v722_v61, 0.0 }
 0x148   : > { %v591_v1 = vpop.f32.mrb[14].mxu0  ;;  %v726_v2 = vpop.f32.mrb[14].mxu1 }
 0x149   : > { %880 = vst.msk [vmem:[%s1582_s15 + $0x30] sm:$0xff] %vm873_vm2, %v826_v63  ;;  %907 = vst.msk [vmem:[%s1582_s15 + $0x108] sm:$0xff] %vm873_vm2, %v853_v0  ;;  %v592_v3 = vadd.f32 %v1575_v8, %v591_v1  ;;  %v593_v4 = vpop.f32.mrb[15].mxu0  ;;  %v727_v5 = vadd.f32 %v1575_v8, %v726_v2  ;;  %v728_v6 = vpop.f32.mrb[15].mxu1 }
 0x14b   : > { %v827_v7 = vmax.f32 %v592_v3, 0.0  ;;  %v854_v9 = vmax.f32 %v727_v5, 0.0 }
 0x14c   : > { %v596_v10 = vpop.f32.mrb[16].mxu0  ;;  %v731_v11 = vpop.f32.mrb[16].mxu1 }
 0x14d   : > { %881 = vst.msk [vmem:[%s1582_s15 + $0x38] sm:$0xff] %vm873_vm2, %v827_v7  ;;  %908 = vst.msk [vmem:[%s1582_s15 + $0x110] sm:$0xff] %vm873_vm2, %v854_v9  ;;  %v597_v12 = vadd.f32 %v1575_v8, %v596_v10  ;;  %v598_v13 = vpop.f32.mrb[17].mxu0  ;;  %v732_v14 = vadd.f32 %v1575_v8, %v731_v11  ;;  %v733_v15 = vpop.f32.mrb[17].mxu1 }
 0x14f   : > { %v828_v16 = vmax.f32 %v597_v12, 0.0  ;;  %v855_v17 = vmax.f32 %v732_v14, 0.0 }
 0x150   : > { %v601_v18 = vpop.f32.mrb[18].mxu0  ;;  %v736_v19 = vpop.f32.mrb[18].mxu1 }
 0x151   : > { %882 = vst.msk [vmem:[%s1582_s15 + $0x40] sm:$0xff] %vm873_vm2, %v828_v16  ;;  %909 = vst.msk [vmem:[%s1582_s15 + $0x118] sm:$0xff] %vm873_vm2, %v855_v17  ;;  %v602_v20 = vadd.f32 %v1575_v8, %v601_v18  ;;  %v603_v21 = vpop.f32.mrb[19].mxu0  ;;  %v737_v22 = vadd.f32 %v1575_v8, %v736_v19  ;;  %v738_v23 = vpop.f32.mrb[19].mxu1 }
 0x153   : > { %v829_v24 = vmax.f32 %v602_v20, 0.0  ;;  %v856_v25 = vmax.f32 %v737_v22, 0.0 }
 0x154   : > { %v606_v26 = vpop.f32.mrb[20].mxu0  ;;  %v741_v27 = vpop.f32.mrb[20].mxu1 }
 0x155   : > { %883 = vst.msk [vmem:[%s1582_s15 + $0x48] sm:$0xff] %vm873_vm2, %v829_v24  ;;  %910 = vst.msk [vmem:[%s1582_s15 + $0x120] sm:$0xff] %vm873_vm2, %v856_v25  ;;  %v607_v28 = vadd.f32 %v1575_v8, %v606_v26  ;;  %v608_v29 = vpop.f32.mrb[21].mxu0  ;;  %v742_v30 = vadd.f32 %v1575_v8, %v741_v27  ;;  %v743_v31 = vpop.f32.mrb[21].mxu1 }
 0x157   : > { %v830_v32 = vmax.f32 %v607_v28, 0.0  ;;  %v857_v33 = vmax.f32 %v742_v30, 0.0 }
 0x158   : > { %v611_v34 = vpop.f32.mrb[22].mxu0  ;;  %v746_v35 = vpop.f32.mrb[22].mxu1 }
 0x159   : > { %884 = vst.msk [vmem:[%s1582_s15 + $0x50] sm:$0xff] %vm873_vm2, %v830_v32  ;;  %911 = vst.msk [vmem:[%s1582_s15 + $0x128] sm:$0xff] %vm873_vm2, %v857_v33  ;;  %v612_v36 = vadd.f32 %v1575_v8, %v611_v34  ;;  %v613_v37 = vpop.f32.mrb[23].mxu0  ;;  %v747_v38 = vadd.f32 %v1575_v8, %v746_v35  ;;  %v748_v39 = vpop.f32.mrb[23].mxu1 }
 0x15b   : > { %v831_v40 = vmax.f32 %v612_v36, 0.0  ;;  %v858_v41 = vmax.f32 %v747_v38, 0.0 }
 0x15c   : > { %v616_v42 = vpop.f32.mrb[24].mxu0  ;;  %v751_v43 = vpop.f32.mrb[24].mxu1 }
 0x15d   : > { %885 = vst.msk [vmem:[%s1582_s15 + $0x58] sm:$0xff] %vm873_vm2, %v831_v40  ;;  %912 = vst.msk [vmem:[%s1582_s15 + $0x130] sm:$0xff] %vm873_vm2, %v858_v41  ;;  %v617_v44 = vadd.f32 %v1575_v8, %v616_v42  ;;  %v618_v45 = vpop.f32.mrb[25].mxu0  ;;  %v752_v46 = vadd.f32 %v1575_v8, %v751_v43  ;;  %v753_v47 = vpop.f32.mrb[25].mxu1 }
 0x15f   : > { %v832_v48 = vmax.f32 %v617_v44, 0.0  ;;  %v859_v49 = vmax.f32 %v752_v46, 0.0 }
 0x160   : > { %v621_v50 = vpop.f32.mrb[26].mxu0  ;;  %v756_v51 = vpop.f32.mrb[26].mxu1 }
 0x161   : > { %886 = vst.msk [vmem:[%s1582_s15 + $0x60] sm:$0xff] %vm873_vm2, %v832_v48  ;;  %913 = vst.msk [vmem:[%s1582_s15 + $0x138] sm:$0xff] %vm873_vm2, %v859_v49  ;;  %v622_v52 = vadd.f32 %v1575_v8, %v621_v50  ;;  %v623_v53 = vpop.f32.mrb[27].mxu0  ;;  %v757_v54 = vadd.f32 %v1575_v8, %v756_v51  ;;  %v758_v55 = vpop.f32.mrb[27].mxu1 }
 0x163   : > { %v833_v56 = vmax.f32 %v622_v52, 0.0  ;;  %v860_v57 = vmax.f32 %v757_v54, 0.0 }
 0x164   : > { %v626_v58 = vpop.f32.mrb[28].mxu0  ;;  %v761_v59 = vpop.f32.mrb[28].mxu1 }
 0x165   : > { %887 = vst.msk [vmem:[%s1582_s15 + $0x68] sm:$0xff] %vm873_vm2, %v833_v56  ;;  %914 = vst.msk [vmem:[%s1582_s15 + $0x140] sm:$0xff] %vm873_vm2, %v860_v57  ;;  %v627_v60 = vadd.f32 %v1575_v8, %v626_v58  ;;  %v628_v61 = vpop.f32.mrb[29].mxu0  ;;  %v762_v62 = vadd.f32 %v1575_v8, %v761_v59  ;;  %v763_v63 = vpop.f32.mrb[29].mxu1 }
 0x167   : > { %v834_v0 = vmax.f32 %v627_v60, 0.0  ;;  %v861_v1 = vmax.f32 %v762_v62, 0.0 }
 0x168   : > { %v631_v2 = vpop.f32.mrb[30].mxu0  ;;  %v766_v3 = vpop.f32.mrb[30].mxu1 }
 0x169   : > { %888 = vst.msk [vmem:[%s1582_s15 + $0x70] sm:$0xff] %vm873_vm2, %v834_v0  ;;  %915 = vst.msk [vmem:[%s1582_s15 + $0x148] sm:$0xff] %vm873_vm2, %v861_v1  ;;  %v632_v4 = vadd.f32 %v1575_v8, %v631_v2  ;;  %v633_v5 = vpop.f32.mrb[31].mxu0  ;;  %v767_v6 = vadd.f32 %v1575_v8, %v766_v3  ;;  %v768_v7 = vpop.f32.mrb[31].mxu1 }
 0x16b   : > { %v835_v9 = vmax.f32 %v632_v4, 0.0  ;;  %v862_v10 = vmax.f32 %v767_v6, 0.0 }
 0x16c   : > { %v636_v11 = vpop.f32.mrb[32].mxu0  ;;  %v771_v12 = vpop.f32.mrb[32].mxu1 }
 0x16d   : > { %889 = vst.msk [vmem:[%s1582_s15 + $0x78] sm:$0xff] %vm873_vm2, %v835_v9  ;;  %916 = vst.msk [vmem:[%s1582_s15 + $0x150] sm:$0xff] %vm873_vm2, %v862_v10  ;;  %v637_v13 = vadd.f32 %v1575_v8, %v636_v11  ;;  %v638_v14 = vpop.f32.mrb[33].mxu0  ;;  %v772_v15 = vadd.f32 %v1575_v8, %v771_v12  ;;  %v773_v16 = vpop.f32.mrb[33].mxu1 }
 0x16f   : > { %v836_v17 = vmax.f32 %v637_v13, 0.0  ;;  %v863_v18 = vmax.f32 %v772_v15, 0.0 }
 0x170   : > { %v641_v19 = vpop.f32.mrb[34].mxu0  ;;  %v776_v20 = vpop.f32.mrb[34].mxu1 }
 0x171   : > { %890 = vst.msk [vmem:[%s1582_s15 + $0x80] sm:$0xff] %vm873_vm2, %v836_v17  ;;  %917 = vst.msk [vmem:[%s1582_s15 + $0x158] sm:$0xff] %vm873_vm2, %v863_v18  ;;  %v642_v21 = vadd.f32 %v1575_v8, %v641_v19  ;;  %v643_v22 = vpop.f32.mrb[35].mxu0  ;;  %v777_v23 = vadd.f32 %v1575_v8, %v776_v20  ;;  %v778_v24 = vpop.f32.mrb[35].mxu1 }
 0x173   : > { %v837_v25 = vmax.f32 %v642_v21, 0.0  ;;  %v864_v26 = vmax.f32 %v777_v23, 0.0 }
 0x174   : > { %v646_v27 = vpop.f32.mrb[36].mxu0  ;;  %v781_v28 = vpop.f32.mrb[36].mxu1 }
 0x175   : > { %891 = vst.msk [vmem:[%s1582_s15 + $0x88] sm:$0xff] %vm873_vm2, %v837_v25  ;;  %918 = vst.msk [vmem:[%s1582_s15 + $0x160] sm:$0xff] %vm873_vm2, %v864_v26  ;;  %v647_v29 = vadd.f32 %v1575_v8, %v646_v27  ;;  %v648_v30 = vpop.f32.mrb[37].mxu0  ;;  %v782_v31 = vadd.f32 %v1575_v8, %v781_v28  ;;  %v783_v32 = vpop.f32.mrb[37].mxu1 }
 0x177   : > { %v838_v33 = vmax.f32 %v647_v29, 0.0  ;;  %v865_v34 = vmax.f32 %v782_v31, 0.0 }
 0x178   : > { %v651_v35 = vpop.f32.mrb[38].mxu0  ;;  %v786_v36 = vpop.f32.mrb[38].mxu1 }
 0x179   : > { %892 = vst.msk [vmem:[%s1582_s15 + $0x90] sm:$0xff] %vm873_vm2, %v838_v33  ;;  %919 = vst.msk [vmem:[%s1582_s15 + $0x168] sm:$0xff] %vm873_vm2, %v865_v34  ;;  %v652_v37 = vadd.f32 %v1575_v8, %v651_v35  ;;  %v653_v38 = vpop.f32.mrb[39].mxu0  ;;  %v787_v39 = vadd.f32 %v1575_v8, %v786_v36  ;;  %v788_v40 = vpop.f32.mrb[39].mxu1 }
 0x17b   : > { %v839_v41 = vmax.f32 %v652_v37, 0.0  ;;  %v866_v42 = vmax.f32 %v787_v39, 0.0 }
 0x17c   : > { %v656_v43 = vpop.f32.mrb[40].mxu0  ;;  %v791_v44 = vpop.f32.mrb[40].mxu1 }
 0x17d   : > { %893 = vst.msk [vmem:[%s1582_s15 + $0x98] sm:$0xff] %vm873_vm2, %v839_v41  ;;  %920 = vst.msk [vmem:[%s1582_s15 + $0x170] sm:$0xff] %vm873_vm2, %v866_v42  ;;  %v657_v45 = vadd.f32 %v1575_v8, %v656_v43  ;;  %v658_v46 = vpop.f32.mrb[41].mxu0  ;;  %v792_v47 = vadd.f32 %v1575_v8, %v791_v44  ;;  %v793_v48 = vpop.f32.mrb[41].mxu1 }
 0x17f   : > { %v840_v49 = vmax.f32 %v657_v45, 0.0  ;;  %v867_v50 = vmax.f32 %v792_v47, 0.0 }
 0x180   : > { %v661_v51 = vpop.f32.mrb[42].mxu0  ;;  %v796_v52 = vpop.f32.mrb[42].mxu1 }
 0x181   : > { %894 = vst.msk [vmem:[%s1582_s15 + $0xa0] sm:$0xff] %vm873_vm2, %v840_v49  ;;  %921 = vst.msk [vmem:[%s1582_s15 + $0x178] sm:$0xff] %vm873_vm2, %v867_v50  ;;  %v662_v53 = vadd.f32 %v1575_v8, %v661_v51  ;;  %v663_v54 = vpop.f32.mrb[43].mxu0  ;;  %v797_v55 = vadd.f32 %v1575_v8, %v796_v52  ;;  %v798_v56 = vpop.f32.mrb[43].mxu1 }
 0x183   : > { %v841_v57 = vmax.f32 %v662_v53, 0.0  ;;  %v868_v58 = vmax.f32 %v797_v55, 0.0 }
 0x184   : > { %v666_v59 = vpop.f32.mrb[44].mxu0  ;;  %v801_v60 = vpop.f32.mrb[44].mxu1 }
 0x185   : > { %895 = vst.msk [vmem:[%s1582_s15 + $0xa8] sm:$0xff] %vm873_vm2, %v841_v57  ;;  %922 = vst.msk [vmem:[%s1582_s15 + $0x180] sm:$0xff] %vm873_vm2, %v868_v58  ;;  %v667_v61 = vadd.f32 %v1575_v8, %v666_v59  ;;  %v668_v62 = vpop.f32.mrb[45].mxu0  ;;  %v802_v63 = vadd.f32 %v1575_v8, %v801_v60  ;;  %v803_v0 = vpop.f32.mrb[45].mxu1 }
 0x187   : > { %v842_v1 = vmax.f32 %v667_v61, 0.0  ;;  %v869_v2 = vmax.f32 %v802_v63, 0.0 }
 0x188   : > { %v671_v3 = vpop.f32.mrb[46].mxu0  ;;  %v806_v4 = vpop.f32.mrb[46].mxu1 }
 0x189   : > { %896 = vst.msk [vmem:[%s1582_s15 + $0xb0] sm:$0xff] %vm873_vm2, %v842_v1  ;;  %923 = vst.msk [vmem:[%s1582_s15 + $0x188] sm:$0xff] %vm873_vm2, %v869_v2  ;;  %v672_v5 = vadd.f32 %v1575_v8, %v671_v3  ;;  %v673_v6 = vpop.f32.mrb[47].mxu0  ;;  %v807_v7 = vadd.f32 %v1575_v8, %v806_v4  ;;  %v808_v9 = vpop.f32.mrb[47].mxu1 }
 0x18b   : > { %v843_v10 = vmax.f32 %v672_v5, 0.0  ;;  %v870_v11 = vmax.f32 %v807_v7, 0.0 }
 0x18c   : > { %v676_v12 = vpop.f32.mrb[48].mxu0  ;;  %v811_v13 = vpop.f32.mrb[48].mxu1 }
 0x18d   : > { %897 = vst.msk [vmem:[%s1582_s15 + $0xb8] sm:$0xff] %vm873_vm2, %v843_v10  ;;  %924 = vst.msk [vmem:[%s1582_s15 + $0x190] sm:$0xff] %vm873_vm2, %v870_v11  ;;  %v677_v14 = vadd.f32 %v1575_v8, %v676_v12  ;;  %v678_v15 = vpop.f32.mrb[49].mxu0  ;;  %v812_v16 = vadd.f32 %v1575_v8, %v811_v13  ;;  %v813_v17 = vpop.f32.mrb[49].mxu1 }
 0x18f   : > { %v844_v18 = vmax.f32 %v677_v14, 0.0  ;;  %v871_v19 = vmax.f32 %v812_v16, 0.0 }
 0x190   : > { %v681_v20 = vpop.f32.mrb[50].mxu0  ;;  %v816_v21 = vpop.f32.mrb[50].mxu1 }
 0x191   : > { %898 = vst.msk [vmem:[%s1582_s15 + $0xc0] sm:$0xff] %vm873_vm2, %v844_v18  ;;  %925 = vst.msk [vmem:[%s1582_s15 + $0x198] sm:$0xff] %vm873_vm2, %v871_v19  ;;  %v682_v22 = vadd.f32 %v1575_v8, %v681_v20  ;;  %v683_v23 = vpop.f32.mrb[51].mxu0  ;;  %v817_v24 = vadd.f32 %v1575_v8, %v816_v21  ;;  %v818_v25 = vpop.f32.mrb[51].mxu1 }
 0x193   : > { %v845_v26 = vmax.f32 %v682_v22, 0.0  ;;  %v872_v27 = vmax.f32 %v817_v24, 0.0 }
 0x194   : > { %v686_v28 = vpop.f32.mrb[52].mxu0 }
 0x195   : > { %899 = vst.msk [vmem:[%s1582_s15 + $0xc8] sm:$0xff] %vm873_vm2, %v845_v26  ;;  %926 = vst.msk [vmem:[%s1582_s15 + $0x1a0] sm:$0xff] %vm873_vm2, %v872_v27  ;;  %v687_v29 = vadd.f32 %v1575_v8, %v686_v28  ;;  %v688_v30 = vpop.f32.mrb[53].mxu0 }
 0x197   : > { %v846_v31 = vmax.f32 %v687_v29, 0.0 }
 0x199   : > { %900 = vst.msk [vmem:[%s1582_s15 + $0xd0] sm:$0xff] %vm873_vm2, %v846_v31 }
 0x19a PF: > { %p13_p8 = scmp.ge.s32.totalorder %s1265_s17, 55   ;;  %s1761_s12 = smov %s1210_s13 }
 0x19b   : > { %s1762_s13 = smov %s1214_s14  ;;  %s1763_s14 = smov %s1275_s20 }
 0x19c   : > { %s1764_s15 = smov %s1265_s17  ;;  %15 = sbr.rel (!%p13_p8) target bundleno = 3 (0x3), region = 72 }
 0x1a3   :  { %949 = vsyncpa [#allocation3], 1 }
 0x1a4   :  { %951 = vsyncpa [#allocation3 + $0x1], 1 }

// kernel: net_forward.7
= control target key start
LH: loop header
LB: loop body
LE: loop exit
PB: predicated region body
PF: predicated region fallthrough
CT: control target
= control target key end

     0   :  { %s2713_s9 = smov 0   ;;  %s2715_s10 = smov 0   ;;  %s2924_s0 = inlined_call_operand.vmem [shape: f32[8,45056], index: 0, kind: input, shape index: {}]   ;;  %s2925_s1 = inlined_call_operand.vmem [shape: bf16[45056,120], index: 1, kind: input, shape index: {}]   ;;  %s2926_s2 = inlined_call_operand.vmem [shape: f32[2,8,120], index: 2, kind: output, shape index: {}]  }
   0x1   :  { %s2717_s11 = smov 0   ;;  %s2719_s12 = smov 0  }
   0x2   :  { %s2721_s13 = smov 0  }
   0x3 LB: > { %s24_s14 = sadd.s32 1, %s2687_s11  ;;  %s31_s15 = sadd.s32 1, %s2691_s12  ;;  %s2695_s13 = sphi %s2721_s13, %s12_s13   ;;  %s2691_s12 = sphi %s2719_s12, %s2930_s12   ;;  %s2687_s11 = sphi %s2717_s11, %s2929_s11   ;;  %s2683_s10 = sphi %s2715_s10, %s2928_s10   ;;  %s2679_s9 = sphi %s2713_s9, %s2927_s9  }
   0x4   : > { %p25_p0 = scmp.ge.s32.totalorder %s24_s14, 11  ;;  %p1432_p1 = scmp.ge.s32.totalorder %s2695_s13, 1 }
   0x5   : > { %p167_p2 = scmp.lt.s32.totalorder %s2695_s13, 23 }
   0x6   : > { %s2932_s14 = smov (%p25_p0, %s24_s14), 0  ;;  %s2934_s15 = smov (!%p25_p0, %s31_s15), %s2691_s12 }
   0x7   : > { %p168_p3 = pnand %p1432_p1, %p167_p2  ;;  %p33_p4 = scmp.ge.s32.totalorder %s2934_s15, 2 }
   0x8   : > { %s204_s16 = smul.u32 (!%p168_p3), 11, %s2683_s10  ;;  %p228_p5 = scmp.lt.s32.totalorder (!%p168_p3), %s2683_s10, 1 }
   0x9   : > { %s2936_s15 = smov (%p33_p4, %s2934_s15), 0  ;;  %171 = sbr.rel (%p168_p3) target bundleno = 379 (0x17b), region = 28 }
   0xa   : > { %s205_s17 = sadd.s32 (!%p168_p3), %s2679_s9, %s204_s16  ;;  %p1438_p8 = scmp.ne.s32.totalorder (!%p168_p3), %s2679_s9, 0 }
   0xb   : > { %s1433_s18 = sshll.u32 (!%p168_p3), %s205_s17, 4  ;;  %s1435_s19 = sshll.u32 (!%p168_p3), %s205_s17, 8 }
   0xc   : > { %p209_p6 = scmp.lt.s32.totalorder (!%p168_p3), %s1433_s18, 351  ;;  %p221_p7 = scmp.lt.s32.totalorder (!%p168_p3), %s1435_s19, 5631 }
  0x10   : > { %s2938_s10 = smov (!%p228_p5, %s2683_s10), 1  ;;  %s2940_s18 = smov (!%p209_p6, %s1433_s18), 351 }
  0x11   : > { %s2942_s19 = smov (!%p221_p7, %s1435_s19), 5631  ;;  %s1434_s20 = sshll.u32 %s2940_s18, 3  ;;  %vm239_vm0 = vcmask (!%p1438_p8), 982016   ;;  %v2697_v0 = vmov (!%p1438_p8), 0.0  }
  0x12   : > { %s1437_s21 = sshll.u32 %s2938_s10, 3  ;;  %s2749_s24 = scalar_lea.vmem %s2924_s0, %s1434_s20 }
  0x13   : > { %s1436_s25 = sshll.u32 %s2942_s19, 2  ;;  %s2759_s3 = scalar_lea.vmem %s2926_s2, %s1437_s21 }
  0x14   : > { %s2754_s28 = scalar_lea.vmem %s2925_s1, %s1436_s25  ;;  %238 = sbr.rel (%p1438_p8) target bundleno = 27 (0x1b), region = 32  ;;  %240 = vst.msk [vmem:[%s2759_s3] sm:$0xff] (!%p1438_p8), %vm239_vm0, %v2697_v0 }
  0x1b PF: > { %v1960_v1 = vld [vmem:[%s2754_s28 + $0x40] sm:$0xff]   ;;  %v1961_v5 = vld [vmem:[%s2754_s28 + $0x48] sm:$0xff]   ;;  %v1962_v9 = vld [vmem:[%s2754_s28 + $0x50] sm:$0xff]   ;;  %vm1331_vm1 = vcmask 982016  }
  0x1c   : > { %v1976_v2 = vld [vmem:[%s2754_s28 + $0xc0] sm:$0xff]   ;;  %2361 = vmatprep.subr.bf16.mxu0 %v1960_v1  ;;  %v1977_v6 = vld [vmem:[%s2754_s28 + $0xc8] sm:$0xff]   ;;  %v1978_v10 = vld [vmem:[%s2754_s28 + $0xd0] sm:$0xff]  }
  0x1d   : > { %v1442_v3 = vld [vmem:[%s2754_s28] sm:$0xff]   ;;  %2393 = vmatprep.subr.bf16.mxu1 %v1976_v2  ;;  %v1953_v7 = vld [vmem:[%s2754_s28 + $0x8] sm:$0xff]   ;;  %v1954_v11 = vld [vmem:[%s2754_s28 + $0x10] sm:$0xff]  }
  0x1e   : > { %v1968_v4 = vld [vmem:[%s2754_s28 + $0x80] sm:$0xff]   ;;  %2363 = vmatpush3.bf16.msra.mxu0 %v1442_v3  ;;  %v1969_v8 = vld [vmem:[%s2754_s28 + $0x88] sm:$0xff]   ;;  %v1970_v12 = vld [vmem:[%s2754_s28 + $0x90] sm:$0xff]  }
  0x1f   : > { %2395 = vmatpush3.bf16.msra.mxu1 %v1968_v4  ;;  %2365 = vmatprep.subr.bf16.mxu0 %v1961_v5  ;;  %v1963_v13 = vld [vmem:[%s2754_s28 + $0x58] sm:$0xff]   ;;  %v243_v15 = vld [vmem:[%s2749_s24 + $0x8] sm:$0xff]  ;;  %v1964_v19 = vld [vmem:[%s2754_s28 + $0x60] sm:$0xff]  }
  0x20   : > { %2397 = vmatprep.subr.bf16.mxu1 %v1977_v6  ;;  %v1979_v14 = vld [vmem:[%s2754_s28 + $0xd8] sm:$0xff]   ;;  %v1980_v20 = vld [vmem:[%s2754_s28 + $0xe0] sm:$0xff]   ;;  %834 = vmatprep.mubr.f32.mxu0 %v243_v15  ;;  %v1965_v23 = vld [vmem:[%s2754_s28 + $0x68] sm:$0xff]  }
  0x21   : > { %v1955_v16 = vld [vmem:[%s2754_s28 + $0x18] sm:$0xff]   ;;  %v1956_v21 = vld [vmem:[%s2754_s28 + $0x20] sm:$0xff]   ;;  %v1981_v24 = vld [vmem:[%s2754_s28 + $0xe8] sm:$0xff]  }
  0x22   : > { %2367 = vmatpush3.bf16.msra.mxu0 %v1953_v7  ;;  %v1971_v17 = vld [vmem:[%s2754_s28 + $0x98] sm:$0xff]   ;;  %v1972_v22 = vld [vmem:[%s2754_s28 + $0xa0] sm:$0xff]   ;;  %v1957_v25 = vld [vmem:[%s2754_s28 + $0x28] sm:$0xff]  }
  0x23   : > { %2399 = vmatpush3.bf16.msra.mxu1 %v1969_v8  ;;  %2369 = vmatprep.subr.bf16.mxu0 %v1962_v9  ;;  %v245_v18 = vld [vmem:[%s2749_s24 + $0x18] sm:$0xff]  ;;  %v1973_v26 = vld [vmem:[%s2754_s28 + $0xa8] sm:$0xff]   ;;  %v1966_v27 = vld [vmem:[%s2754_s28 + $0x70] sm:$0xff]  }
  0x24   : > { %2401 = vmatprep.subr.bf16.mxu1 %v1978_v10  ;;  %904 = vmatprep.mubr.f32.mxu1 %v245_v18  ;;  %v1982_v28 = vld [vmem:[%s2754_s28 + $0xf0] sm:$0xff]   ;;  %v1967_v31 = vld [vmem:[%s2754_s28 + $0x78] sm:$0xff]   ;;  %v1992_v35 = vld [vmem:[%s2754_s28 + $0x140] sm:$0xff]  }
  0x25   : > { %v1958_v29 = vld [vmem:[%s2754_s28 + $0x30] sm:$0xff]   ;;  %v1983_v32 = vld [vmem:[%s2754_s28 + $0xf8] sm:$0xff]   ;;  %v2008_v36 = vld [vmem:[%s2754_s28 + $0x1c0] sm:$0xff]  }
  0x26   : > { %2371 = vmatpush3.bf16.msra.mxu0 %v1954_v11  ;;  %v1974_v30 = vld [vmem:[%s2754_s28 + $0xb0] sm:$0xff]   ;;  %v1959_v33 = vld [vmem:[%s2754_s28 + $0x38] sm:$0xff]   ;;  %v242_v37 = vld [vmem:[%s2749_s24] sm:$0xff] }
  0x27   : > { %2403 = vmatpush3.bf16.msra.mxu1 %v1970_v12  ;;  %2373 = vmatprep.subr.bf16.mxu0 %v1963_v13  ;;  %v1975_v34 = vld [vmem:[%s2754_s28 + $0xb8] sm:$0xff]   ;;  %v244_v38 = vld [vmem:[%s2749_s24 + $0x10] sm:$0xff]  ;;  %v1984_v39 = vld [vmem:[%s2754_s28 + $0x100] sm:$0xff]  }
  0x28   : > { %2405 = vmatprep.subr.bf16.mxu1 %v1979_v14  ;;  %v2000_v40 = vld [vmem:[%s2754_s28 + $0x180] sm:$0xff]   ;;  %v1993_v41 = vld [vmem:[%s2754_s28 + $0x148] sm:$0xff]   ;;  %v249_v44 = vld [vmem:[%s2749_s24 + $0x38] sm:$0xff] }
  0x29   : > { %v2009_v42 = vld [vmem:[%s2754_s28 + $0x1c8] sm:$0xff]   ;;  %v1994_v47 = vld [vmem:[%s2754_s28 + $0x150] sm:$0xff]   ;;  %v1995_v51 = vld [vmem:[%s2754_s28 + $0x158] sm:$0xff]  }
  0x2a   : > { %2375 = vmatpush3.bf16.msra.mxu0 %v1955_v16  ;;  %v247_v43 = vld [vmem:[%s2749_s24 + $0x28] sm:$0xff]  ;;  %v2010_v48 = vld [vmem:[%s2754_s28 + $0x1d0] sm:$0xff]   ;;  %v2011_v52 = vld [vmem:[%s2754_s28 + $0x1d8] sm:$0xff]  }
  0x2b   : > { %2407 = vmatpush3.bf16.msra.mxu1 %v1971_v17  ;;  %2377 = vmatprep.subr.bf16.mxu0 %v1964_v19  ;;  %v1985_v45 = vld [vmem:[%s2754_s28 + $0x108] sm:$0xff]   ;;  %v1986_v49 = vld [vmem:[%s2754_s28 + $0x110] sm:$0xff]   ;;  %v1987_v53 = vld [vmem:[%s2754_s28 + $0x118] sm:$0xff]  }
  0x2c   : > { %2409 = vmatprep.subr.bf16.mxu1 %v1980_v20  ;;  %v2001_v46 = vld [vmem:[%s2754_s28 + $0x188] sm:$0xff]   ;;  %v2002_v50 = vld [vmem:[%s2754_s28 + $0x190] sm:$0xff]   ;;  %v2003_v54 = vld [vmem:[%s2754_s28 + $0x198] sm:$0xff]  }
  0x2d   : > { %v1996_v55 = vld [vmem:[%s2754_s28 + $0x160] sm:$0xff]   ;;  %v1997_v59 = vld [vmem:[%s2754_s28 + $0x168] sm:$0xff]   ;;  %v1998_v63 = vld [vmem:[%s2754_s28 + $0x170] sm:$0xff]  }
  0x2e   : > { %2379 = vmatpush3.bf16.msra.mxu0 %v1956_v21  ;;  %v2012_v56 = vld [vmem:[%s2754_s28 + $0x1e0] sm:$0xff]   ;;  %v2013_v60 = vld [vmem:[%s2754_s28 + $0x1e8] sm:$0xff]   ;;  %v2014_v0 = vld [vmem:[%s2754_s28 + $0x1f0] sm:$0xff]  }
  0x2f   : > { %2411 = vmatpush3.bf16.msra.mxu1 %v1972_v22  ;;  %2381 = vmatprep.subr.bf16.mxu0 %v1965_v23  ;;  %v1988_v57 = vld [vmem:[%s2754_s28 + $0x120] sm:$0xff]   ;;  %v1989_v61 = vld [vmem:[%s2754_s28 + $0x128] sm:$0xff]   ;;  %v1990_v1 = vld [vmem:[%s2754_s28 + $0x130] sm:$0xff]  }
  0x30   : > { %2413 = vmatprep.subr.bf16.mxu1 %v1981_v24  ;;  %v2004_v58 = vld [vmem:[%s2754_s28 + $0x1a0] sm:$0xff]   ;;  %v2005_v62 = vld [vmem:[%s2754_s28 + $0x1a8] sm:$0xff]   ;;  %v2006_v2 = vld [vmem:[%s2754_s28 + $0x1b0] sm:$0xff]  }
  0x31   : > { %v1999_v3 = vld [vmem:[%s2754_s28 + $0x178] sm:$0xff]   ;;  %v2024_v7 = vld [vmem:[%s2754_s28 + $0x240] sm:$0xff]   ;;  %v248_v10 = vld [vmem:[%s2749_s24 + $0x30] sm:$0xff] }
  0x32   : > { %2383 = vmatpush3.bf16.msra.mxu0 %v1957_v25  ;;  %v2015_v4 = vld [vmem:[%s2754_s28 + $0x1f8] sm:$0xff]   ;;  %v2040_v8 = vld [vmem:[%s2754_s28 + $0x2c0] sm:$0xff]   ;;  %v2025_v13 = vld [vmem:[%s2754_s28 + $0x248] sm:$0xff]  }
  0x33   : > { %2415 = vmatpush3.bf16.msra.mxu1 %v1973_v26  ;;  %2385 = vmatprep.subr.bf16.mxu0 %v1966_v27  ;;  %v1991_v5 = vld [vmem:[%s2754_s28 + $0x138] sm:$0xff]   ;;  %v246_v9 = vld [vmem:[%s2749_s24 + $0x20] sm:$0xff]  ;;  %v2041_v14 = vld [vmem:[%s2754_s28 + $0x2c8] sm:$0xff]  }
  0x34   : > { %2417 = vmatprep.subr.bf16.mxu1 %v1982_v28  ;;  %v2007_v6 = vld [vmem:[%s2754_s28 + $0x1b8] sm:$0xff]   ;;  %v2016_v11 = vld [vmem:[%s2754_s28 + $0x200] sm:$0xff]   ;;  %v251_v15 = vld [vmem:[%s2749_s24 + $0x48] sm:$0xff] }
  0x35   : > { %v2032_v12 = vld [vmem:[%s2754_s28 + $0x280] sm:$0xff]   ;;  %v253_v16 = vld [vmem:[%s2749_s24 + $0x58] sm:$0xff]  ;;  %v2017_v17 = vld [vmem:[%s2754_s28 + $0x208] sm:$0xff]  }
  0x36   : > { %2387 = vmatpush3.bf16.msra.mxu0 %v1958_v29  ;;  %v2033_v18 = vld [vmem:[%s2754_s28 + $0x288] sm:$0xff]   ;;  %v2026_v19 = vld [vmem:[%s2754_s28 + $0x250] sm:$0xff]   ;;  %v2027_v23 = vld [vmem:[%s2754_s28 + $0x258] sm:$0xff]  }
  0x37   : > { %2419 = vmatpush3.bf16.msra.mxu1 %v1974_v30  ;;  %2389 = vmatprep.subr.bf16.mxu0 %v1967_v31  ;;  %v2042_v20 = vld [vmem:[%s2754_s28 + $0x2d0] sm:$0xff]   ;;  %v2043_v24 = vld [vmem:[%s2754_s28 + $0x2d8] sm:$0xff]   ;;  %v2028_v27 = vld [vmem:[%s2754_s28 + $0x260] sm:$0xff]  }
  0x38   : > { %2421 = vmatprep.subr.bf16.mxu1 %v1983_v32  ;;  %v2018_v21 = vld [vmem:[%s2754_s28 + $0x210] sm:$0xff]   ;;  %v2019_v25 = vld [vmem:[%s2754_s28 + $0x218] sm:$0xff]   ;;  %v2044_v28 = vld [vmem:[%s2754_s28 + $0x2e0] sm:$0xff]  }
  0x39   : > { %v2034_v22 = vld [vmem:[%s2754_s28 + $0x290] sm:$0xff]   ;;  %v2035_v26 = vld [vmem:[%s2754_s28 + $0x298] sm:$0xff]   ;;  %v2020_v29 = vld [vmem:[%s2754_s28 + $0x220] sm:$0xff]  }
  0x3a   : > { %2391 = vmatpush3.bf16.msra.mxu0 %v1959_v33  ;;  %v2036_v30 = vld [vmem:[%s2754_s28 + $0x2a0] sm:$0xff]   ;;  %v2029_v31 = vld [vmem:[%s2754_s28 + $0x268] sm:$0xff]  }
  0x3b   : > { %2423 = vmatpush3.bf16.msra.mxu1 %v1975_v34  ;;  %2425 = vmatprep.subr.bf16.mxu0 %v1992_v35  ;;  %v2045_v32 = vld [vmem:[%s2754_s28 + $0x2e8] sm:$0xff]   ;;  %v2030_v35 = vld [vmem:[%s2754_s28 + $0x270] sm:$0xff]  }
  0x3c   : > { %2457 = vmatprep.subr.bf16.mxu1 %v2008_v36  ;;  %v2021_v33 = vld [vmem:[%s2754_s28 + $0x228] sm:$0xff]   ;;  %v2046_v36 = vld [vmem:[%s2754_s28 + $0x2f0] sm:$0xff]  }
  0x3d   : > { %835 = vmatmul.mubr.f32.vlgmr.msra.gmra.mrb[0].mxu0 %v242_v37  ;;  %v2037_v34 = vld [vmem:[%s2754_s28 + $0x2a8] sm:$0xff]   ;;  %v2022_v37 = vld [vmem:[%s2754_s28 + $0x230] sm:$0xff]  }
  0x3e   : > { %905 = vmatmul.mubr.f32.vlgmr.msra.gmra.mrb[0].mxu1 %v244_v38  ;;  %2427 = vmatpush3.bf16.msra.mxu0 %v1984_v39  ;;  %v2038_v38 = vld [vmem:[%s2754_s28 + $0x2b0] sm:$0xff]   ;;  %v2031_v39 = vld [vmem:[%s2754_s28 + $0x278] sm:$0xff]  }
  0x3f   : > { %2459 = vmatpush3.bf16.msra.mxu1 %v2000_v40  ;;  %2429 = vmatprep.subr.bf16.mxu0 %v1993_v41  ;;  %v2047_v40 = vld [vmem:[%s2754_s28 + $0x2f8] sm:$0xff]  }
  0x40   : > { %2461 = vmatprep.subr.bf16.mxu1 %v2009_v42  ;;  %974 = vmatprep.mubr.f32.mxu0 %v247_v43  ;;  %v2023_v41 = vld [vmem:[%s2754_s28 + $0x238] sm:$0xff]   ;;  %v2056_v43 = vld [vmem:[%s2754_s28 + $0x340] sm:$0xff]  }
  0x41   : > { %1044 = vmatprep.mubr.f32.mxu1 %v249_v44  ;;  %v2039_v42 = vld [vmem:[%s2754_s28 + $0x2b8] sm:$0xff]   ;;  %v2072_v44 = vld [vmem:[%s2754_s28 + $0x3c0] sm:$0xff]  }
  0x42   : > { %2431 = vmatpush3.bf16.msra.mxu0 %v1985_v45  ;;  %v250_v45 = vld [vmem:[%s2749_s24 + $0x40] sm:$0xff] }
  0x43   : > { %2463 = vmatpush3.bf16.msra.mxu1 %v2001_v46  ;;  %2433 = vmatprep.subr.bf16.mxu0 %v1994_v47  ;;  %v252_v46 = vld [vmem:[%s2749_s24 + $0x50] sm:$0xff]  ;;  %v2048_v47 = vld [vmem:[%s2754_s28 + $0x300] sm:$0xff]  }
  0x44   : > { %2465 = vmatprep.subr.bf16.mxu1 %v2010_v48  ;;  %v2064_v48 = vld [vmem:[%s2754_s28 + $0x380] sm:$0xff]  }
  0x46   : > { %2435 = vmatpush3.bf16.msra.mxu0 %v1986_v49  ;;  %v2057_v49 = vld [vmem:[%s2754_s28 + $0x348] sm:$0xff]  }
  0x47   : > { %2467 = vmatpush3.bf16.msra.mxu1 %v2002_v50  ;;  %2437 = vmatprep.subr.bf16.mxu0 %v1995_v51  ;;  %v2073_v50 = vld [vmem:[%s2754_s28 + $0x3c8] sm:$0xff]  }
  0x48   : > { %2469 = vmatprep.subr.bf16.mxu1 %v2011_v52  ;;  %v255_v51 = vld [vmem:[%s2749_s24 + $0x68] sm:$0xff]  ;;  %v257_v52 = vld [vmem:[%s2749_s24 + $0x78] sm:$0xff] }
  0x4a   : > { %2439 = vmatpush3.bf16.msra.mxu0 %v1987_v53  ;;  %v2049_v53 = vld [vmem:[%s2754_s28 + $0x308] sm:$0xff]  }
  0x4b   : > { %2471 = vmatpush3.bf16.msra.mxu1 %v2003_v54  ;;  %2441 = vmatprep.subr.bf16.mxu0 %v1996_v55  ;;  %v2065_v54 = vld [vmem:[%s2754_s28 + $0x388] sm:$0xff]   ;;  %v2058_v55 = vld [vmem:[%s2754_s28 + $0x350] sm:$0xff]  }
  0x4c   : > { %2473 = vmatprep.subr.bf16.mxu1 %v2012_v56  ;;  %v2074_v56 = vld [vmem:[%s2754_s28 + $0x3d0] sm:$0xff]  }
  0x4e   : > { %2443 = vmatpush3.bf16.msra.mxu0 %v1988_v57  ;;  %v2050_v57 = vld [vmem:[%s2754_s28 + $0x310] sm:$0xff]  }
  0x4f   : > { %2475 = vmatpush3.bf16.msra.mxu1 %v2004_v58  ;;  %2445 = vmatprep.subr.bf16.mxu0 %v1997_v59  ;;  %v2066_v58 = vld [vmem:[%s2754_s28 + $0x390] sm:$0xff]   ;;  %v2059_v59 = vld [vmem:[%s2754_s28 + $0x358] sm:$0xff]  }
  0x50   : > { %2477 = vmatprep.subr.bf16.mxu1 %v2013_v60  ;;  %v2075_v60 = vld [vmem:[%s2754_s28 + $0x3d8] sm:$0xff]  }
  0x52   : > { %2447 = vmatpush3.bf16.msra.mxu0 %v1989_v61  ;;  %v2051_v61 = vld [vmem:[%s2754_s28 + $0x318] sm:$0xff]  }
  0x53   : > { %2479 = vmatpush3.bf16.msra.mxu1 %v2005_v62  ;;  %2449 = vmatprep.subr.bf16.mxu0 %v1998_v63  ;;  %v2067_v62 = vld [vmem:[%s2754_s28 + $0x398] sm:$0xff]   ;;  %v2060_v63 = vld [vmem:[%s2754_s28 + $0x360] sm:$0xff]  }
  0x54   : > { %2481 = vmatprep.subr.bf16.mxu1 %v2014_v0  ;;  %v2076_v0 = vld [vmem:[%s2754_s28 + $0x3e0] sm:$0xff]  }
  0x56   : > { %2451 = vmatpush3.bf16.msra.mxu0 %v1990_v1  ;;  %v2052_v1 = vld [vmem:[%s2754_s28 + $0x320] sm:$0xff]  }
  0x57   : > { %2483 = vmatpush3.bf16.msra.mxu1 %v2006_v2  ;;  %2453 = vmatprep.subr.bf16.mxu0 %v1999_v3  ;;  %v2068_v2 = vld [vmem:[%s2754_s28 + $0x3a0] sm:$0xff]   ;;  %v2061_v3 = vld [vmem:[%s2754_s28 + $0x368] sm:$0xff]  }
  0x58   : > { %2485 = vmatprep.subr.bf16.mxu1 %v2015_v4  ;;  %v2077_v4 = vld [vmem:[%s2754_s28 + $0x3e8] sm:$0xff]  }
  0x5a   : > { %2455 = vmatpush3.bf16.msra.mxu0 %v1991_v5  ;;  %v2053_v5 = vld [vmem:[%s2754_s28 + $0x328] sm:$0xff]  }
  0x5b   : > { %2487 = vmatpush3.bf16.msra.mxu1 %v2007_v6  ;;  %2489 = vmatprep.subr.bf16.mxu0 %v2024_v7  ;;  %v2069_v6 = vld [vmem:[%s2754_s28 + $0x3a8] sm:$0xff]   ;;  %v2062_v7 = vld [vmem:[%s2754_s28 + $0x370] sm:$0xff]  }
  0x5c   : > { %2521 = vmatprep.subr.bf16.mxu1 %v2040_v8  ;;  %v2078_v8 = vld [vmem:[%s2754_s28 + $0x3f0] sm:$0xff]  }
  0x5d   : > { %975 = vmatmul.mubr.f32.vlgmr.msra.gmra.mrb[2].mxu0 %v246_v9  ;;  %v2054_v9 = vld [vmem:[%s2754_s28 + $0x330] sm:$0xff]  }
  0x5e   : > { %1045 = vmatmul.mubr.f32.vlgmr.msra.gmra.mrb[2].mxu1 %v248_v10  ;;  %2491 = vmatpush3.bf16.msra.mxu0 %v2016_v11  ;;  %v2070_v10 = vld [vmem:[%s2754_s28 + $0x3b0] sm:$0xff]   ;;  %v2063_v11 = vld [vmem:[%s2754_s28 + $0x378] sm:$0xff]  }
  0x5f   : > { %2523 = vmatpush3.bf16.msra.mxu1 %v2032_v12  ;;  %2493 = vmatprep.subr.bf16.mxu0 %v2025_v13  ;;  %v2079_v12 = vld [vmem:[%s2754_s28 + $0x3f8] sm:$0xff]  }
  0x60   : > { %2525 = vmatprep.subr.bf16.mxu1 %v2041_v14  ;;  %1114 = vmatprep.mubr.f32.mxu0 %v251_v15  ;;  %v2055_v13 = vld [vmem:[%s2754_s28 + $0x338] sm:$0xff]   ;;  %v254_v15 = vld [vmem:[%s2749_s24 + $0x60] sm:$0xff] }
  0x61   : > { %1184 = vmatprep.mubr.f32.mxu1 %v253_v16  ;;  %v2071_v14 = vld [vmem:[%s2754_s28 + $0x3b8] sm:$0xff]   ;;  %v256_v16 = vld [vmem:[%s2749_s24 + $0x70] sm:$0xff] }
  0x62   : > { %2495 = vmatpush3.bf16.msra.mxu0 %v2017_v17 }
  0x63   : > { %2527 = vmatpush3.bf16.msra.mxu1 %v2033_v18  ;;  %2497 = vmatprep.subr.bf16.mxu0 %v2026_v19 }
  0x64   : > { %2529 = vmatprep.subr.bf16.mxu1 %v2042_v20 }
  0x66   : > { %2499 = vmatpush3.bf16.msra.mxu0 %v2018_v21 }
  0x67   : > { %2531 = vmatpush3.bf16.msra.mxu1 %v2034_v22  ;;  %2501 = vmatprep.subr.bf16.mxu0 %v2027_v23 }
  0x68   : > { %2533 = vmatprep.subr.bf16.mxu1 %v2043_v24 }
  0x6a   : > { %2503 = vmatpush3.bf16.msra.mxu0 %v2019_v25 }
  0x6b   : > { %2535 = vmatpush3.bf16.msra.mxu1 %v2035_v26  ;;  %2505 = vmatprep.subr.bf16.mxu0 %v2028_v27 }
  0x6c   : > { %2537 = vmatprep.subr.bf16.mxu1 %v2044_v28 }
  0x6e   : > { %2507 = vmatpush3.bf16.msra.mxu0 %v2020_v29 }
  0x6f   : > { %2539 = vmatpush3.bf16.msra.mxu1 %v2036_v30  ;;  %2509 = vmatprep.subr.bf16.mxu0 %v2029_v31 }
  0x70   : > { %2541 = vmatprep.subr.bf16.mxu1 %v2045_v32 }
  0x72   : > { %2511 = vmatpush3.bf16.msra.mxu0 %v2021_v33 }
  0x73   : > { %2543 = vmatpush3.bf16.msra.mxu1 %v2037_v34  ;;  %2513 = vmatprep.subr.bf16.mxu0 %v2030_v35 }
  0x74   : > { %2545 = vmatprep.subr.bf16.mxu1 %v2046_v36 }
  0x76   : > { %2515 = vmatpush3.bf16.msra.mxu0 %v2022_v37 }
  0x77   : > { %2547 = vmatpush3.bf16.msra.mxu1 %v2038_v38  ;;  %2517 = vmatprep.subr.bf16.mxu0 %v2031_v39 }
  0x78   : > { %2549 = vmatprep.subr.bf16.mxu1 %v2047_v40 }
  0x7a   : > { %2519 = vmatpush3.bf16.msra.mxu0 %v2023_v41 }
  0x7b   : > { %2551 = vmatpush3.bf16.msra.mxu1 %v2039_v42  ;;  %2553 = vmatprep.subr.bf16.mxu0 %v2056_v43 }
  0x7c   : > { %2585 = vmatprep.subr.bf16.mxu1 %v2072_v44 }
  0x7d   : > { %1115 = vmatmul.mubr.f32.vlgmr.msra.gmra.mrb[4].mxu0 %v250_v45 }
  0x7e   : > { %1185 = vmatmul.mubr.f32.vlgmr.msra.gmra.mrb[4].mxu1 %v252_v46  ;;  %2555 = vmatpush3.bf16.msra.mxu0 %v2048_v47  ;;  %v241_v47 = vld [vmem:[%s2759_s3] sm:$0xff] }
  0x7f   : > { %2587 = vmatpush3.bf16.msra.mxu1 %v2064_v48  ;;  %2557 = vmatprep.subr.bf16.mxu0 %v2057_v49 }
  0x80   : > { %2589 = vmatprep.subr.bf16.mxu1 %v2073_v50  ;;  %1254 = vmatprep.mubr.f32.mxu0 %v255_v51 }
  0x81   : > { %1324 = vmatprep.mubr.f32.mxu1 %v257_v52 }
  0x82   : > { %2559 = vmatpush3.bf16.msra.mxu0 %v2049_v53 }
  0x83   : > { %2591 = vmatpush3.bf16.msra.mxu1 %v2065_v54  ;;  %2561 = vmatprep.subr.bf16.mxu0 %v2058_v55 }
  0x84   : > { %2593 = vmatprep.subr.bf16.mxu1 %v2074_v56 }
  0x86   : > { %2563 = vmatpush3.bf16.msra.mxu0 %v2050_v57 }
  0x87   : > { %2595 = vmatpush3.bf16.msra.mxu1 %v2066_v58  ;;  %2565 = vmatprep.subr.bf16.mxu0 %v2059_v59 }
  0x88   : > { %2597 = vmatprep.subr.bf16.mxu1 %v2075_v60 }
  0x8a   : > { %2567 = vmatpush3.bf16.msra.mxu0 %v2051_v61 }
  0x8b   : > { %2599 = vmatpush3.bf16.msra.mxu1 %v2067_v62  ;;  %2569 = vmatprep.subr.bf16.mxu0 %v2060_v63 }
  0x8c   : > { %2601 = vmatprep.subr.bf16.mxu1 %v2076_v0 }
  0x8e   : > { %2571 = vmatpush3.bf16.msra.mxu0 %v2052_v1 }
  0x8f   : > { %2603 = vmatpush3.bf16.msra.mxu1 %v2068_v2  ;;  %2573 = vmatprep.subr.bf16.mxu0 %v2061_v3 }
  0x90   : > { %2605 = vmatprep.subr.bf16.mxu1 %v2077_v4 }
  0x92   : > { %2575 = vmatpush3.bf16.msra.mxu0 %v2053_v5 }
  0x93   : > { %2607 = vmatpush3.bf16.msra.mxu1 %v2069_v6  ;;  %2577 = vmatprep.subr.bf16.mxu0 %v2062_v7 }
  0x94   : > { %2609 = vmatprep.subr.bf16.mxu1 %v2078_v8 }
  0x96   : > { %2579 = vmatpush3.bf16.msra.mxu0 %v2054_v9 }
  0x97   : > { %2611 = vmatpush3.bf16.msra.mxu1 %v2070_v10  ;;  %2581 = vmatprep.subr.bf16.mxu0 %v2063_v11 }
  0x98   : > { %2613 = vmatprep.subr.bf16.mxu1 %v2079_v12 }
  0x9a   : > { %2583 = vmatpush3.bf16.msra.mxu0 %v2055_v13 }
  0x9b   : > { %2615 = vmatpush3.bf16.msra.mxu1 %v2071_v14 }
  0x9d   : > { %1255 = vmatmul.mubr.f32.vlgmr.msra.gmra.mrb[6].mxu0 %v254_v15 }
  0x9e   : > { %1325 = vmatmul.mubr.f32.vlgmr.msra.gmra.mrb[6].mxu1 %v256_v16 }
 0x110   : > { %v2112_v17 = vpop.f32.mrb[0].mxu0 }
 0x111   : > { %v2147_v18 = vpop.f32.mrb[0].mxu1  ;;  %v2113_v19 = vpop.f32.mrb[1].mxu0 }
 0x112   : > { %v2148_v20 = vpop.f32.mrb[1].mxu1  ;;  %v2114_v21 = vadd.f32 %v2113_v19, %v2112_v17 }
 0x113   : > { %v2149_v22 = vadd.f32 %v2148_v20, %v2147_v18 }
 0x115   : > { %v907_v23 = vadd.f32 %v2149_v22, %v2114_v21 }
 0x130   : > { %v2182_v24 = vpop.f32.mrb[2].mxu0 }
 0x131   : > { %v2217_v25 = vpop.f32.mrb[2].mxu1  ;;  %v2183_v26 = vpop.f32.mrb[3].mxu0 }
 0x132   : > { %v2218_v27 = vpop.f32.mrb[3].mxu1  ;;  %v2184_v28 = vadd.f32 %v2183_v26, %v2182_v24 }
 0x133   : > { %v2219_v29 = vadd.f32 %v2218_v27, %v2217_v25 }
 0x134   : > { %v977_v30 = vadd.f32 %v2184_v28, %v907_v23 }
 0x136   : > { %v1047_v31 = vadd.f32 %v2219_v29, %v977_v30 }
 0x150   : > { %v2252_v32 = vpop.f32.mrb[4].mxu0 }
 0x151   : > { %v2287_v33 = vpop.f32.mrb[4].mxu1  ;;  %v2253_v34 = vpop.f32.mrb[5].mxu0 }
 0x152   : > { %v2288_v35 = vpop.f32.mrb[5].mxu1  ;;  %v2254_v36 = vadd.f32 %v2253_v34, %v2252_v32 }
 0x153   : > { %v2289_v37 = vadd.f32 %v2288_v35, %v2287_v33 }
 0x154   : > { %v1117_v38 = vadd.f32 %v2254_v36, %v1047_v31 }
 0x156   : > { %v1187_v39 = vadd.f32 %v2289_v37, %v1117_v38 }
 0x170   : > { %v2322_v40 = vpop.f32.mrb[6].mxu0 }
 0x171   : > { %v2357_v41 = vpop.f32.mrb[6].mxu1  ;;  %v2323_v42 = vpop.f32.mrb[7].mxu0 }
 0x172   : > { %v2358_v43 = vpop.f32.mrb[7].mxu1  ;;  %v2324_v44 = vadd.f32 %v2323_v42, %v2322_v40 }
 0x173   : > { %v2359_v45 = vadd.f32 %v2358_v43, %v2357_v41 }
 0x174   : > { %v1257_v46 = vadd.f32 %v2324_v44, %v1187_v39 }
 0x176   : > { %v1327_v48 = vadd.f32 %v2359_v45, %v1257_v46 }
 0x178   : > { %v1330_v49 = vadd.f32 %v1327_v48, %v241_v47 }
 0x17a   : > { %1332 = vst.msk [vmem:[%s2759_s3] sm:$0xff] %vm1331_vm1, %v1330_v49 }
 0x17b PF: > { %s12_s13 = sadd.s32 1, %s2695_s13   ;;  %s2927_s9 = smov %s2687_s11 }
 0x17c   : > { %p9_p9 = scmp.ge.s32.totalorder %s12_s13, 24   ;;  %s2928_s10 = smov %s2691_s12 }
 0x17d   : > { %s2929_s11 = smov %s2932_s14  ;;  %s2930_s12 = smov %s2936_s15 }
 0x17e   :  { %11 = sbr.rel (!%p9_p9) target bundleno = 3 (0x3), region = 65 }

// kernel: net_forward.8
= control target key start
LH: loop header
LB: loop body
LE: loop exit
PB: predicated region body
PF: predicated region fallthrough
CT: control target
= control target key end

     0   :  { %v193_v0 = vmov 0.0|0.0   ;;  %vm194_vm0 = vmmov 0   ;;  %v195_v4 = vmov 0.0   ;;  %vm37_vm1 = vcmask 982016   ;;  %s270_s1 = inlined_call_operand.vmem [shape: f32[120,84], index: 1, kind: input, shape index: {}]   ;;  %s271_s0 = inlined_call_operand.vmem [shape: f32[8,120], index: 0, kind: input, shape index: {}]   ;;  %s272_s2 = inlined_call_operand.vmem [shape: f32[1,84], index: 2, kind: input, shape index: {}]   ;;  %s273_s3 = inlined_call_operand.vmem [shape: f32[8,84], index: 3, kind: output, shape index: {}]  }
   0x1   :  { %169 = vmatprep.subr.bf16.mxu0 %v193_v0  ;;  %v15_v1 = vld [vmem:[%s270_s1] sm:$0xff]  ;;  %v16_v2 = vld [vmem:[%s270_s1 + $0x8] sm:$0xff]  ;;  %v17_v3 = vld [vmem:[%s270_s1 + $0x10] sm:$0xff]  ;;  %166 = vmatprep.mubr.msk.f32.mxu0 %vm194_vm0, %v195_v4  ;;  %vm112_vm2 = vcmask 687104  }
   0x2   :  { %v170_v5 = vpack.c.bf16 %v16_v2, %v15_v1  ;;  %v18_v6 = vld [vmem:[%s270_s1 + $0x18] sm:$0xff]  ;;  %v19_v8 = vld [vmem:[%s270_s1 + $0x20] sm:$0xff]  ;;  %v20_v9 = vld [vmem:[%s270_s1 + $0x28] sm:$0xff] }
   0x3   :  { %v173_v7 = vpack.c.bf16 %v18_v6, %v17_v3  ;;  %v176_v10 = vpack.c.bf16 %v20_v9, %v19_v8  ;;  %v21_v11 = vld [vmem:[%s270_s1 + $0x30] sm:$0xff]  ;;  %v22_v12 = vld [vmem:[%s270_s1 + $0x38] sm:$0xff]  ;;  %v23_v14 = vld [vmem:[%s270_s1 + $0x40] sm:$0xff] }
   0x4   :  { %171 = vmatpush3.bf16.msra.mxu0 %v170_v5  ;;  %v179_v13 = vpack.c.bf16 %v22_v12, %v21_v11  ;;  %v24_v15 = vld [vmem:[%s270_s1 + $0x48] sm:$0xff]  ;;  %v25_v17 = vld [vmem:[%s270_s1 + $0x50] sm:$0xff]  ;;  %v26_v18 = vld [vmem:[%s270_s1 + $0x58] sm:$0xff] }
   0x5   :  { %172 = vmatprep.subr.bf16.mxu0 %v193_v0  ;;  %v182_v16 = vpack.c.bf16 %v24_v15, %v23_v14  ;;  %v185_v19 = vpack.c.bf16 %v26_v18, %v25_v17  ;;  %v27_v20 = vld [vmem:[%s270_s1 + $0x60] sm:$0xff]  ;;  %v28_v21 = vld [vmem:[%s270_s1 + $0x68] sm:$0xff]  ;;  %v29_v23 = vld [vmem:[%s270_s1 + $0x70] sm:$0xff] }
   0x6   :  { %v188_v22 = vpack.c.bf16 %v28_v21, %v27_v20  ;;  %v14_v24 = vld [vmem:[%s271_s0] sm:$0xff] }
   0x7   :  { %v118_v25 = vld [vmem:[%s272_s2] ss:$0 sm:$0xff] }
   0x8   :  { %174 = vmatpush3.bf16.msra.mxu0 %v173_v7 }
   0x9   :  { %175 = vmatprep.subr.bf16.mxu0 %v193_v0 }
   0xc   :  { %177 = vmatpush3.bf16.msra.mxu0 %v176_v10 }
   0xd   :  { %178 = vmatprep.subr.bf16.mxu0 %v193_v0 }
  0x10   :  { %180 = vmatpush3.bf16.msra.mxu0 %v179_v13 }
  0x11   :  { %181 = vmatprep.subr.bf16.mxu0 %v193_v0 }
  0x14   :  { %183 = vmatpush3.bf16.msra.mxu0 %v182_v16 }
  0x15   :  { %184 = vmatprep.subr.bf16.mxu0 %v193_v0 }
  0x18   :  { %186 = vmatpush3.bf16.msra.mxu0 %v185_v19 }
  0x19   :  { %187 = vmatprep.subr.bf16.mxu0 %v193_v0 }
  0x1c   :  { %189 = vmatpush3.bf16.msra.mxu0 %v188_v22 }
  0x1d   :  { %164 = vmatprep.subr.mxu0 %v195_v4 }
  0x20   :  { %165 = vmatpush3.msra.mxu0 %v29_v23 }
  0x21   :  { %167 = vmatmul.mubr.msk.f32.vlgmr.msra.gmra.mrb[0].mxu0 %vm37_vm1, %v14_v24 }
  0xf4   :  { %v107_v26 = vpop.f32.mrb[0].mxu0 }
  0xf5   :  { %v108_v27 = vadd.f32 %v118_v25, %v107_v26  ;;  %v168_v28 = vpop.f32.mrb[1].mxu0 }
  0xf7   :  { %v111_v29 = vmax.f32 %v108_v27, 0.0 }
  0xf9   :  { %113 = vst.msk [vmem:[%s273_s3] sm:$0xff] %vm112_vm2, %v111_v29 }

// kernel: net_forward.9
= control target key start
LH: loop header
LB: loop body
LE: loop exit
PB: predicated region body
PF: predicated region fallthrough
CT: control target
= control target key end

     0   :  { %v175_v0 = vmov 0.0|0.0   ;;  %vm176_vm0 = vmmov 0   ;;  %v177_v4 = vmov 0.0   ;;  %vm37_vm1 = vcmask 1043456   ;;  %s240_s1 = inlined_call_operand.vmem [shape: f32[84,3], index: 1, kind: input, shape index: {}]   ;;  %s241_s0 = inlined_call_operand.vmem [shape: f32[8,84], index: 0, kind: input, shape index: {}]   ;;  %s242_s2 = inlined_call_operand.vmem [shape: f32[1,3], index: 2, kind: input, shape index: {}]   ;;  %s243_s3 = inlined_call_operand.vmem [shape: f32[8,3], index: 3, kind: output, shape index: {}]  }
   0x1   :  { %157 = vmatprep.subr.bf16.mxu0 %v175_v0  ;;  %v15_v1 = vld [vmem:[%s240_s1] sm:$0xff]  ;;  %v16_v2 = vld [vmem:[%s240_s1 + $0x8] sm:$0xff]  ;;  %v17_v3 = vld [vmem:[%s240_s1 + $0x10] sm:$0xff]  ;;  %154 = vmatprep.mubr.msk.f32.mxu0 %vm176_vm0, %v177_v4  ;;  %vm33_vm2 = vcmask 687104   ;;  %vm111_vm3 = vcmask 23552  }
   0x2   :  { %v158_v5 = vpack.c.bf16 %v16_v2, %v15_v1  ;;  %v18_v6 = vld [vmem:[%s240_s1 + $0x18] sm:$0xff]  ;;  %v19_v8 = vld [vmem:[%s240_s1 + $0x20] sm:$0xff]  ;;  %v20_v9 = vld [vmem:[%s240_s1 + $0x28] sm:$0xff] }
   0x3   :  { %v161_v7 = vpack.c.bf16 %v18_v6, %v17_v3  ;;  %v164_v10 = vpack.c.bf16 %v20_v9, %v19_v8  ;;  %v21_v11 = vld [vmem:[%s240_s1 + $0x30] sm:$0xff]  ;;  %v22_v12 = vld [vmem:[%s240_s1 + $0x38] sm:$0xff]  ;;  %v23_v14 = vld [vmem:[%s240_s1 + $0x40] sm:$0xff] }
   0x4   :  { %159 = vmatpush3.bf16.msra.mxu0 %v158_v5  ;;  %v167_v13 = vpack.c.bf16 %v22_v12, %v21_v11  ;;  %v24_v15 = vld [vmem:[%s240_s1 + $0x48] sm:$0xff]  ;;  %v25_v17 = vld [vmem:[%s240_s1 + $0x50] sm:$0xf]  ;;  %v14_v18 = vld [vmem:[%s241_s0] sm:$0xff] }
   0x5   :  { %160 = vmatprep.subr.bf16.mxu0 %v175_v0  ;;  %v170_v16 = vpack.c.bf16 %v24_v15, %v23_v14  ;;  %v117_v19 = vld [vmem:[%s242_s2] ss:$0 sm:$0xff] }
   0x8   :  { %162 = vmatpush3.bf16.msra.mxu0 %v161_v7 }
   0x9   :  { %163 = vmatprep.subr.bf16.mxu0 %v175_v0 }
   0xc   :  { %165 = vmatpush3.bf16.msra.mxu0 %v164_v10 }
   0xd   :  { %166 = vmatprep.subr.bf16.mxu0 %v175_v0 }
  0x10   :  { %168 = vmatpush3.bf16.msra.mxu0 %v167_v13 }
  0x11   :  { %169 = vmatprep.subr.bf16.mxu0 %v175_v0 }
  0x14   :  { %171 = vmatpush3.bf16.msra.mxu0 %v170_v16 }
  0x15   :  { %152 = vmatprep.subr.mxu0 %v177_v4 }
  0x18   :  { %153 = vmatpush3.msk.msra.mxu0 %vm37_vm1, %v25_v17 }
  0x19   :  { %155 = vmatmul.mubr.msk.f32.vlgmr.msra.gmra.mrb[0].mxu0 %vm33_vm2, %v14_v18 }
  0xec   :  { %v107_v20 = vpop.f32.mrb[0].mxu0 }
  0xed   :  { %v108_v21 = vadd.f32 %v117_v19, %v107_v20  ;;  %v156_v22 = vpop.f32.mrb[1].mxu0 }
  0xef   :  { %112 = vst.msk [vmem:[%s243_s3] sm:$0xff] %vm111_vm3, %v108_v21 }

</bundles_post_ra>
